<compile_context>
chip_gen: v7x
topology: tpu7x:2x2x1
jax: 0.10.0
libtpu: 0.0.40
codegen_flags: <defaults>
</compile_context>

<pallas_src>
import math
import jax
import jax.numpy as jnp
from jax import lax
from jax.experimental import pallas as pl
from jax.experimental.pallas import tpu as pltpu

LANE = 128   # lane width: channel (N) and contraction (K) dims are padded to this


def _round_up(x, m):
    return ((x + m - 1) // m) * m


# ---------------------------------------------------------------------------
# Fused per-layer Pallas kernel:
#   conv-transpose GEMM  +  batch-stat BatchNorm  +  LeakyReLU(0.3)
# The whole (Mp, Np) slab is processed in a single grid step, entirely in VMEM.
# ---------------------------------------------------------------------------
def _make_fused_layer_kernel(valid_m, *, neg_slope=0.3, eps=1e-5):
    inv_m = 1.0 / float(valid_m)

    def kernel(a_ref, w_ref, gamma_ref, beta_ref, o_ref):
        # Conv-transpose hot path as a single GEMM on the MXU (bf16 in, f32 acc).
        # Bias is dropped: it cancels exactly under training-mode BatchNorm.
        # TODO(synk): re-introduce the bias only if eval-mode BN (running stats) is needed.
        y = jnp.dot(a_ref[...], w_ref[...], preferred_element_type=jnp.float32)  # (Mp, Np)

        # Batch statistics over the M valid rows.  Padded rows of `y` are exactly
        # zero (zero patches, no bias), so they drop out of the plain column sums;
        # the row mask is only needed for the centred second moment.
        row = lax.broadcasted_iota(jnp.int32, y.shape, 0)
        mask = (row < valid_m).astype(jnp.float32)
        mean = jnp.sum(y, axis=0, keepdims=True) * inv_m            # (1, Np)
        d = (y - mean) * mask
        var = jnp.sum(d * d, axis=0, keepdims=True) * inv_m         # biased var (torch BN)

        scale = gamma_ref[...] * lax.rsqrt(var + eps)               # (1, Np)
        shift = beta_ref[...] - mean * scale
        z = y * scale + shift
        o_ref[...] = jnp.where(z >= 0, z, neg_slope * z).astype(o_ref.dtype)

    return kernel


def fused_convt_bn_lrelu(patches_p, wmat, gamma_row, beta_row, *, valid_m, out_dtype):
    """patches_p: (Mp, Kp) bf16; wmat: (Kp, Np) bf16; gamma/beta: (1, Np) f32."""
    Mp, Kp = patches_p.shape
    Kp2, Np = wmat.shape
    assert Kp == Kp2 and Np % LANE == 0 and Mp % 16 == 0
    # Whole-slab single-step kernel; worst-case VMEM footprint here is ~2 MiB.
    # TODO(synk): for much larger N*OH*OW switch to an M-tiled two-pass grid
    # ('arbitrary') accumulating (1, Np) sum / sum-of-squares in VMEM scratch.
    assert (Mp * Kp * 2 + Mp * Np * 6) < 24 * 1024 * 1024

    return pl.pallas_call(
        _make_fused_layer_kernel(valid_m),
        out_shape=jax.ShapeDtypeStruct((Mp, Np), out_dtype),
        grid=(1,),
        in_specs=[
            pl.BlockSpec((Mp, Kp), lambda i: (0, 0)),
            pl.BlockSpec((Kp, Np), lambda i: (0, 0)),
            pl.BlockSpec((1, Np), lambda i: (0, 0)),
            pl.BlockSpec((1, Np), lambda i: (0, 0)),
        ],
        out_specs=pl.BlockSpec((Mp, Np), lambda i: (0, 0)),
        compiler_params=pltpu.CompilerParams(
            dimension_semantics=("arbitrary",),
            vmem_limit_bytes=32 * 1024 * 1024,   # explicit budget; fits v7x's 64 MiB VMEM
        ),
    )(patches_p, wmat, gamma_row, beta_row)


# ---------------------------------------------------------------------------
# One decoder layer: ConvTranspose2d (no padding/output_padding, dilation 1)
#                    -> BatchNorm2d (batch stats) -> LeakyReLU(0.3), NHWC.
# ---------------------------------------------------------------------------
def dec_layer_forward(x, layer, *, last):
    """x: (N, H, W, Ci) NHWC (bf16). Returns (N, OH, OW, Co) NHWC."""
    N, H, W, Ci = x.shape
    kh, kw, Co = layer["kh"], layer["kw"], layer["co"]
    sh, sw = layer["stride"]
    K, Kp, Np = layer["K"], layer["Kp"], layer["Np"]
    OH = (H - 1) * sh + kh
    OW = (W - 1) * sw + kw
    M = N * OH * OW
    Mp = _round_up(M, 128)

    # Zero-dilate by stride, pad by (k-1), gather kh*kw shifted views (im2col), all in
    # bf16 so XLA fuses this into one small bf16 fusion feeding the kernel.
    # TODO(synk): for larger H/W, replace this zero-dilated im2col with the stride-phase
    # (sub-pixel) decomposition and/or gather taps inside the kernel via pl.ds; at these
    # sizes the single fused pallas_call below dominates the wall clock.
    xd = jnp.zeros((N, (H - 1) * sh + 1, (W - 1) * sw + 1, Ci), x.dtype)
    xd = xd.at[:, ::sh, ::sw, :].set(x)
    xp = jnp.pad(xd, ((0, 0), (kh - 1, kh - 1), (kw - 1, kw - 1), (0, 0)))
    taps = [xp[:, p:p + OH, q:q + OW, :] for p in range(kh) for q in range(kw)]
    patches = jnp.stack(taps, axis=3).reshape(M, K)                 # (M, kh*kw*Ci) bf16
    patches_p = jnp.pad(patches, ((0, Mp - M), (0, Kp - K)))        # (Mp, Kp) bf16

    out_dtype = jnp.float32 if last else jnp.bfloat16
    y = fused_convt_bn_lrelu(patches_p, layer["wmat"], layer["gamma_row"],
                             layer["beta_row"], valid_m=M, out_dtype=out_dtype)
    return y[:M, :Co].reshape(N, OH, OW, Co)


# ---------------------------------------------------------------------------
# DecByLayer forward (external interface is NCHW, like PyTorch)
# ---------------------------------------------------------------------------
def dec_by_layer_forward(x_nchw, layers):
    x = jnp.transpose(x_nchw, (0, 2, 3, 1)).astype(jnp.bfloat16)   # NCHW -> NHWC once
    for i, layer in enumerate(layers):
        x = dec_layer_forward(x, layer, last=(i == len(layers) - 1))
    return jnp.transpose(x, (0, 3, 1, 2)).astype(jnp.float32)      # NHWC -> NCHW once


def init_dec_by_layer(key, x_filters, y_filters, x_strides, y_strides):
    num_layers = len(x_filters)
    assert all(len(t) == num_layers for t in (y_filters, x_strides, y_strides))
    ncvs = [4 * 2 ** i for i in reversed(range(num_layers))] + [1]
    layers = []
    for i in range(num_layers):
        key, k_w = jax.random.split(key)
        ci, co = ncvs[i], ncvs[i + 1]
        kh, kw = x_filters[i], y_filters[i]
        fan = ci * kh * kw
        w = jax.random.normal(k_w, (ci, co, kh, kw), jnp.float32) / math.sqrt(fan)

        # Hoisted init-time weight prep: spatial flip, (tap, ci)-major reshape,
        # pad K to 128 lanes / Co to 128, cast to bf16 for native MXU rate.
        # ConvTranspose2d bias omitted entirely (cancels under batch-stat BN).
        K = kh * kw * ci
        Kp = _round_up(K, LANE)
        Np = _round_up(co, LANE)
        wflip = w[:, :, ::-1, ::-1].transpose(2, 3, 0, 1).reshape(K, co)
        wmat = jnp.pad(wflip, ((0, Kp - K), (0, Np - co))).astype(jnp.bfloat16)
        gamma_row = jnp.pad(jnp.ones((1, co), jnp.float32), ((0, 0), (0, Np - co)))
        beta_row = jnp.zeros((1, Np), jnp.float32)

        layers.append(dict(
            wmat=wmat, gamma_row=gamma_row, beta_row=beta_row,
            co=co, kh=kh, kw=kw, stride=(x_strides[i], y_strides[i]),
            K=K, Kp=Kp, Np=Np,
        ))
    return layers, ncvs, key


if __name__ == "__main__":
    # Two decoder layers: channels 8 -> 4 -> 1, 3x3 kernels, stride 2 (NCHW I/O).
    x_filters = (3, 3)
    y_filters = (3, 3)
    x_strides = (2, 2)
    y_strides = (2, 2)

    key = jax.random.PRNGKey(0)
    layers, ncvs, key = init_dec_by_layer(key, x_filters, y_filters,
                                          x_strides, y_strides)

    key, k_x = jax.random.split(key)
    x = jax.random.normal(k_x, (2, ncvs[0], 5, 5), jnp.float32)   # (N, C, H, W)

    # TODO(synk): `show_shapes` printing and BatchNorm running-stat updates are
    # host-side / stateful bookkeeping that do not affect the forward output; omitted.
    fwd = jax.jit(lambda inp: dec_by_layer_forward(inp, layers))
    y = fwd(x)
    jax.block_until_ready(y)
    assert y.shape == (2, 1, 23, 23) and y.dtype == jnp.float32
    print("KERNEL_OK")
</pallas_src>

<mosaic_0001>
module attributes {stable_mosaic.version = 11 : i64} {
  func.func @kernel(%arg0: i32, %arg1: memref<256x128xbf16, #tpu.memory_space<vmem>>, %arg2: memref<128x128xbf16, #tpu.memory_space<vmem>>, %arg3: memref<1x128xf32, #tpu.memory_space<vmem>>, %arg4: memref<1x128xf32, #tpu.memory_space<vmem>>, %arg5: memref<256x128xbf16, #tpu.memory_space<vmem>>) attributes {dimension_semantics = [#tpu.dimension_semantics<arbitrary>], iteration_bounds = array<i64: 1>, scalar_prefetch = 0 : i64, scratch_operands = 0 : i64, tpu.core_type = #tpu.core_type<tc>, window_params = [{pipeline_mode = #tpu.pipeline_mode<synchronous>, transform_indices = @transform_0, window_bounds = array<i64: 256, 128>}, {pipeline_mode = #tpu.pipeline_mode<synchronous>, transform_indices = @transform_1, window_bounds = array<i64: 128, 128>}, {pipeline_mode = #tpu.pipeline_mode<synchronous>, transform_indices = @transform_2, window_bounds = array<i64: 1, 128>}, {pipeline_mode = #tpu.pipeline_mode<synchronous>, transform_indices = @transform_3, window_bounds = array<i64: 1, 128>}, {pipeline_mode = #tpu.pipeline_mode<synchronous>, transform_indices = @transform_4, window_bounds = array<i64: 256, 128>}]} {
    %c0 = arith.constant 0 : index
    %c0_0 = arith.constant 0 : index
    %0 = vector.load %arg1[%c0, %c0_0] : memref<256x128xbf16, #tpu.memory_space<vmem>>, vector<256x128xbf16>
    %c0_1 = arith.constant 0 : index
    %c0_2 = arith.constant 0 : index
    %1 = vector.load %arg2[%c0_1, %c0_2] : memref<128x128xbf16, #tpu.memory_space<vmem>>, vector<128x128xbf16>
    %cst = arith.constant dense<0.000000e+00> : vector<256x128xf32>
    %2 = tpu.matmul %0, %1, %cst {dimension_numbers = #tpu.dot_dimension_numbers<[1], [0], [0], [1], [0, 0, 1, 1], [], []>} : vector<256x128xbf16>, vector<128x128xbf16>, vector<256x128xf32> -> vector<256x128xf32>
    %3 = tpu.iota {dimensions = array<i32: 0>} : vector<256x128xi32>
    %c242_i32 = arith.constant 242 : i32
    %4 = vector.broadcast %c242_i32 : i32 to vector<256x128xi32>
    %5 = arith.cmpi slt, %3, %4 : vector<256x128xi32>
    %6 = arith.extui %5 : vector<256x128xi1> to vector<256x128xi32>
    %7 = arith.sitofp %6 : vector<256x128xi32> to vector<256x128xf32>
    %cst_3 = arith.constant dense<0.000000e+00> : vector<128xf32>
    %8 = vector.multi_reduction <add>, %2, %cst_3 [0] : vector<256x128xf32> to vector<128xf32>
    %9 = vector.shape_cast %8 : vector<128xf32> to vector<1x128xf32>
    %cst_4 = arith.constant 0.00413223123 : f32
    %10 = vector.broadcast %cst_4 : f32 to vector<1x128xf32>
    %11 = arith.mulf %9, %10 : vector<1x128xf32>
    %12 = vector.broadcast %11 : vector<1x128xf32> to vector<256x128xf32>
    %13 = arith.subf %2, %12 : vector<256x128xf32>
    %14 = arith.mulf %13, %7 : vector<256x128xf32>
    %15 = arith.mulf %14, %14 : vector<256x128xf32>
    %cst_5 = arith.constant dense<0.000000e+00> : vector<128xf32>
    %16 = vector.multi_reduction <add>, %15, %cst_5 [0] : vector<256x128xf32> to vector<128xf32>
    %17 = vector.shape_cast %16 : vector<128xf32> to vector<1x128xf32>
    %cst_6 = arith.constant 0.00413223123 : f32
    %18 = vector.broadcast %cst_6 : f32 to vector<1x128xf32>
    %19 = arith.mulf %17, %18 : vector<1x128xf32>
    %c0_7 = arith.constant 0 : index
    %c0_8 = arith.constant 0 : index
    %20 = vector.load %arg3[%c0_7, %c0_8] : memref<1x128xf32, #tpu.memory_space<vmem>>, vector<1x128xf32>
    %cst_9 = arith.constant 9.99999974E-6 : f32
    %21 = vector.broadcast %cst_9 : f32 to vector<1x128xf32>
    %22 = arith.addf %19, %21 : vector<1x128xf32>
    %23 = math.rsqrt %22 : vector<1x128xf32>
    %24 = arith.mulf %20, %23 : vector<1x128xf32>
    %c0_10 = arith.constant 0 : index
    %c0_11 = arith.constant 0 : index
    %25 = vector.load %arg4[%c0_10, %c0_11] : memref<1x128xf32, #tpu.memory_space<vmem>>, vector<1x128xf32>
    %26 = arith.mulf %11, %24 : vector<1x128xf32>
    %27 = arith.subf %25, %26 : vector<1x128xf32>
    %28 = vector.broadcast %24 : vector<1x128xf32> to vector<256x128xf32>
    %29 = arith.mulf %2, %28 : vector<256x128xf32>
    %30 = vector.broadcast %27 : vector<1x128xf32> to vector<256x128xf32>
    %31 = arith.addf %29, %30 : vector<256x128xf32>
    %cst_12 = arith.constant 0.000000e+00 : f32
    %32 = vector.broadcast %cst_12 : f32 to vector<256x128xf32>
    %33 = arith.cmpf oge, %31, %32 : vector<256x128xf32>
    %cst_13 = arith.constant 3.000000e-01 : f32
    %34 = vector.broadcast %cst_13 : f32 to vector<256x128xf32>
    %35 = arith.mulf %34, %31 : vector<256x128xf32>
    %36 = arith.select %33, %31, %35 : vector<256x128xi1>, vector<256x128xf32>
    %37 = arith.truncf %36 : vector<256x128xf32> to vector<256x128xbf16>
    %c0_14 = arith.constant 0 : index
    %c0_15 = arith.constant 0 : index
    %38 = vector.load %arg5[%c0_14, %c0_15] : memref<256x128xbf16, #tpu.memory_space<vmem>>, vector<256x128xbf16>
    tpu.vector_store %arg5[%c0_14, %c0_15], %37 {strides = array<i32>} : memref<256x128xbf16, #tpu.memory_space<vmem>>, vector<256x128xbf16>,
    return
  }
  func.func @transform_0(%arg0: i32) -> (i32, i32) {
    %c0_i32 = arith.constant 0 : i32
    %c0_i32_0 = arith.constant 0 : i32
    %c0_i32_1 = arith.constant 0 : i32
    return %c0_i32, %c0_i32_0 : i32, i32
  }
  func.func @transform_1(%arg0: i32) -> (i32, i32) {
    %c0_i32 = arith.constant 0 : i32
    %c0_i32_0 = arith.constant 0 : i32
    %c0_i32_1 = arith.constant 0 : i32
    return %c0_i32, %c0_i32_0 : i32, i32
  }
  func.func @transform_2(%arg0: i32) -> (i32, i32) {
    %c0_i32 = arith.constant 0 : i32
    %c0_i32_0 = arith.constant 0 : i32
    %c0_i32_1 = arith.constant 0 : i32
    return %c0_i32, %c0_i32_0 : i32, i32
  }
  func.func @transform_3(%arg0: i32) -> (i32, i32) {
    %c0_i32 = arith.constant 0 : i32
    %c0_i32_0 = arith.constant 0 : i32
    %c0_i32_1 = arith.constant 0 : i32
    return %c0_i32, %c0_i32_0 : i32, i32
  }
  func.func @transform_4(%arg0: i32) -> (i32, i32) {
    %c0_i32 = arith.constant 0 : i32
    %c0_i32_0 = arith.constant 0 : i32
    %c0_i32_1 = arith.constant 0 : i32
    return %c0_i32, %c0_i32_0 : i32, i32
  }
}

module attributes {stable_mosaic.version = 11 : i64} {
  func.func @kernel(%arg0: i32, %arg1: memref<1152x128xbf16, #tpu.memory_space<vmem>>, %arg2: memref<128x128xbf16, #tpu.memory_space<vmem>>, %arg3: memref<1x128xf32, #tpu.memory_space<vmem>>, %arg4: memref<1x128xf32, #tpu.memory_space<vmem>>, %arg5: memref<1152x128xf32, #tpu.memory_space<vmem>>) attributes {dimension_semantics = [#tpu.dimension_semantics<arbitrary>], iteration_bounds = array<i64: 1>, scalar_prefetch = 0 : i64, scratch_operands = 0 : i64, tpu.core_type = #tpu.core_type<tc>, window_params = [{pipeline_mode = #tpu.pipeline_mode<synchronous>, transform_indices = @transform_0, window_bounds = array<i64: 1152, 128>}, {pipeline_mode = #tpu.pipeline_mode<synchronous>, transform_indices = @transform_1, window_bounds = array<i64: 128, 128>}, {pipeline_mode = #tpu.pipeline_mode<synchronous>, transform_indices = @transform_2, window_bounds = array<i64: 1, 128>}, {pipeline_mode = #tpu.pipeline_mode<synchronous>, transform_indices = @transform_3, window_bounds = array<i64: 1, 128>}, {pipeline_mode = #tpu.pipeline_mode<synchronous>, transform_indices = @transform_4, window_bounds = array<i64: 1152, 128>}]} {
    %c0 = arith.constant 0 : index
    %c0_0 = arith.constant 0 : index
    %0 = vector.load %arg1[%c0, %c0_0] : memref<1152x128xbf16, #tpu.memory_space<vmem>>, vector<1152x128xbf16>
    %c0_1 = arith.constant 0 : index
    %c0_2 = arith.constant 0 : index
    %1 = vector.load %arg2[%c0_1, %c0_2] : memref<128x128xbf16, #tpu.memory_space<vmem>>, vector<128x128xbf16>
    %cst = arith.constant dense<0.000000e+00> : vector<1152x128xf32>
    %2 = tpu.matmul %0, %1, %cst {dimension_numbers = #tpu.dot_dimension_numbers<[1], [0], [0], [1], [0, 0, 1, 1], [], []>} : vector<1152x128xbf16>, vector<128x128xbf16>, vector<1152x128xf32> -> vector<1152x128xf32>
    %3 = tpu.iota {dimensions = array<i32: 0>} : vector<1152x128xi32>
    %c1058_i32 = arith.constant 1058 : i32
    %4 = vector.broadcast %c1058_i32 : i32 to vector<1152x128xi32>
    %5 = arith.cmpi slt, %3, %4 : vector<1152x128xi32>
    %6 = arith.extui %5 : vector<1152x128xi1> to vector<1152x128xi32>
    %7 = arith.sitofp %6 : vector<1152x128xi32> to vector<1152x128xf32>
    %cst_3 = arith.constant dense<0.000000e+00> : vector<128xf32>
    %8 = vector.multi_reduction <add>, %2, %cst_3 [0] : vector<1152x128xf32> to vector<128xf32>
    %9 = vector.shape_cast %8 : vector<128xf32> to vector<1x128xf32>
    %cst_4 = arith.constant 9.45179606E-4 : f32
    %10 = vector.broadcast %cst_4 : f32 to vector<1x128xf32>
    %11 = arith.mulf %9, %10 : vector<1x128xf32>
    %12 = vector.broadcast %11 : vector<1x128xf32> to vector<1152x128xf32>
    %13 = arith.subf %2, %12 : vector<1152x128xf32>
    %14 = arith.mulf %13, %7 : vector<1152x128xf32>
    %15 = arith.mulf %14, %14 : vector<1152x128xf32>
    %cst_5 = arith.constant dense<0.000000e+00> : vector<128xf32>
    %16 = vector.multi_reduction <add>, %15, %cst_5 [0] : vector<1152x128xf32> to vector<128xf32>
    %17 = vector.shape_cast %16 : vector<128xf32> to vector<1x128xf32>
    %cst_6 = arith.constant 9.45179606E-4 : f32
    %18 = vector.broadcast %cst_6 : f32 to vector<1x128xf32>
    %19 = arith.mulf %17, %18 : vector<1x128xf32>
    %c0_7 = arith.constant 0 : index
    %c0_8 = arith.constant 0 : index
    %20 = vector.load %arg3[%c0_7, %c0_8] : memref<1x128xf32, #tpu.memory_space<vmem>>, vector<1x128xf32>
    %cst_9 = arith.constant 9.99999974E-6 : f32
    %21 = vector.broadcast %cst_9 : f32 to vector<1x128xf32>
    %22 = arith.addf %19, %21 : vector<1x128xf32>
    %23 = math.rsqrt %22 : vector<1x128xf32>
    %24 = arith.mulf %20, %23 : vector<1x128xf32>
    %c0_10 = arith.constant 0 : index
    %c0_11 = arith.constant 0 : index
    %25 = vector.load %arg4[%c0_10, %c0_11] : memref<1x128xf32, #tpu.memory_space<vmem>>, vector<1x128xf32>
    %26 = arith.mulf %11, %24 : vector<1x128xf32>
    %27 = arith.subf %25, %26 : vector<1x128xf32>
    %28 = vector.broadcast %24 : vector<1x128xf32> to vector<1152x128xf32>
    %29 = arith.mulf %2, %28 : vector<1152x128xf32>
    %30 = vector.broadcast %27 : vector<1x128xf32> to vector<1152x128xf32>
    %31 = arith.addf %29, %30 : vector<1152x128xf32>
    %cst_12 = arith.constant 0.000000e+00 : f32
    %32 = vector.broadcast %cst_12 : f32 to vector<1152x128xf32>
    %33 = arith.cmpf oge, %31, %32 : vector<1152x128xf32>
    %cst_13 = arith.constant 3.000000e-01 : f32
    %34 = vector.broadcast %cst_13 : f32 to vector<1152x128xf32>
    %35 = arith.mulf %34, %31 : vector<1152x128xf32>
    %36 = arith.select %33, %31, %35 : vector<1152x128xi1>, vector<1152x128xf32>
    %c0_14 = arith.constant 0 : index
    %c0_15 = arith.constant 0 : index
    %37 = vector.load %arg5[%c0_14, %c0_15] : memref<1152x128xf32, #tpu.memory_space<vmem>>, vector<1152x128xf32>
    tpu.vector_store %arg5[%c0_14, %c0_15], %36 {strides = array<i32>} : memref<1152x128xf32, #tpu.memory_space<vmem>>, vector<1152x128xf32>,
    return
  }
  func.func @transform_0(%arg0: i32) -> (i32, i32) {
    %c0_i32 = arith.constant 0 : i32
    %c0_i32_0 = arith.constant 0 : i32
    %c0_i32_1 = arith.constant 0 : i32
    return %c0_i32, %c0_i32_0 : i32, i32
  }
  func.func @transform_1(%arg0: i32) -> (i32, i32) {
    %c0_i32 = arith.constant 0 : i32
    %c0_i32_0 = arith.constant 0 : i32
    %c0_i32_1 = arith.constant 0 : i32
    return %c0_i32, %c0_i32_0 : i32, i32
  }
  func.func @transform_2(%arg0: i32) -> (i32, i32) {
    %c0_i32 = arith.constant 0 : i32
    %c0_i32_0 = arith.constant 0 : i32
    %c0_i32_1 = arith.constant 0 : i32
    return %c0_i32, %c0_i32_0 : i32, i32
  }
  func.func @transform_3(%arg0: i32) -> (i32, i32) {
    %c0_i32 = arith.constant 0 : i32
    %c0_i32_0 = arith.constant 0 : i32
    %c0_i32_1 = arith.constant 0 : i32
    return %c0_i32, %c0_i32_0 : i32, i32
  }
  func.func @transform_4(%arg0: i32) -> (i32, i32) {
    %c0_i32 = arith.constant 0 : i32
    %c0_i32_0 = arith.constant 0 : i32
    %c0_i32_1 = arith.constant 0 : i32
    return %c0_i32, %c0_i32_0 : i32, i32
  }
}

</mosaic_0001>

<bundles_post_ra>
// kernel: _lambda_.2
= control target key start
LH: loop header
LB: loop body
LE: loop exit
PB: predicated region body
PF: predicated region fallthrough
CT: control target
= control target key end

     0   :  { %s1895_s1 = inlined_call_operand.vmem [shape: bf16[128,128], index: 1, kind: input, shape index: {}]   ;;  %s1896_s0 = inlined_call_operand.vmem [shape: bf16[256,128], index: 0, kind: input, shape index: {}]   ;;  %s1897_s2 = inlined_call_operand.vmem [shape: f32[1,128], index: 2, kind: input, shape index: {}]   ;;  %s1898_s3 = inlined_call_operand.vmem [shape: f32[1,128], index: 3, kind: input, shape index: {}]   ;;  %s1899_s4 = inlined_call_operand.vmem [shape: bf16[256,128], index: 4, kind: output, shape index: {}]  }
   0x1   :  { %v1288_v0 = vld [vmem:[%s1895_s1] sm:$0xff]   ;;  %v1289_v1 = vld [vmem:[%s1895_s1 + $0x8] sm:$0xff]   ;;  %v1290_v2 = vld [vmem:[%s1895_s1 + $0x10] sm:$0xff]  }
   0x2   :  { %1223 = vmatprep.subr.bf16.mxu0 %v1288_v0  ;;  %1271 = vmatprep.subr.bf16.mxu1 %v1288_v0  ;;  %v1291_v3 = vld [vmem:[%s1895_s1 + $0x18] sm:$0xff]   ;;  %v1296_v4 = vld [vmem:[%s1896_s0] sm:$0xff]   ;;  %v1293_v6 = vld [vmem:[%s1895_s1 + $0x28] sm:$0xff]  }
   0x3   :  { %1224 = vmatpush3.bf16.msra.mxu0 %v1288_v0  ;;  %1279 = vmatpush3.bf16.msra.mxu1 %v1288_v0  ;;  %v1292_v5 = vld [vmem:[%s1895_s1 + $0x20] sm:$0xff]   ;;  %v1294_v8 = vld [vmem:[%s1895_s1 + $0x30] sm:$0xff]   ;;  %v1295_v9 = vld [vmem:[%s1895_s1 + $0x38] sm:$0xff]  }
   0x4   :  { %1225 = vmatprep.subr.bf16.mxu0 %v1289_v1  ;;  %1272 = vmatprep.subr.bf16.mxu1 %v1289_v1  ;;  %v1304_v7 = vld [vmem:[%s1896_s0 + $0x40] sm:$0xff]   ;;  %v1297_v10 = vld [vmem:[%s1896_s0 + $0x8] sm:$0xff]   ;;  %v1298_v12 = vld [vmem:[%s1896_s0 + $0x10] sm:$0xff]  }
   0x5   :  { %1239 = vmatprep.mubr.bf16.mxu0 %v1296_v4  ;;  %1255 = vmatprep.mubr.bf16.mxu1 %v1304_v7  ;;  %v1305_v11 = vld [vmem:[%s1896_s0 + $0x48] sm:$0xff]   ;;  %v1306_v13 = vld [vmem:[%s1896_s0 + $0x50] sm:$0xff]   ;;  %v1299_v14 = vld [vmem:[%s1896_s0 + $0x18] sm:$0xff]  }
   0x6   :  { %v1307_v15 = vld [vmem:[%s1896_s0 + $0x58] sm:$0xff]   ;;  %v1300_v16 = vld [vmem:[%s1896_s0 + $0x20] sm:$0xff]   ;;  %v1301_v18 = vld [vmem:[%s1896_s0 + $0x28] sm:$0xff]  }
   0x7   :  { %1226 = vmatpush3.bf16.msra.mxu0 %v1289_v1  ;;  %1280 = vmatpush3.bf16.msra.mxu1 %v1289_v1  ;;  %v1308_v17 = vld [vmem:[%s1896_s0 + $0x60] sm:$0xff]   ;;  %v1309_v19 = vld [vmem:[%s1896_s0 + $0x68] sm:$0xff]   ;;  %v1302_v20 = vld [vmem:[%s1896_s0 + $0x30] sm:$0xff]  }
   0x8   :  { %1227 = vmatprep.subr.bf16.mxu0 %v1290_v2  ;;  %1273 = vmatprep.subr.bf16.mxu1 %v1290_v2  ;;  %v1310_v21 = vld [vmem:[%s1896_s0 + $0x70] sm:$0xff]   ;;  %v1303_v22 = vld [vmem:[%s1896_s0 + $0x38] sm:$0xff]  }
   0x9   :  { %v1311_v23 = vld [vmem:[%s1896_s0 + $0x78] sm:$0xff]  }
   0xb   :  { %1228 = vmatpush3.bf16.msra.mxu0 %v1290_v2  ;;  %1281 = vmatpush3.bf16.msra.mxu1 %v1290_v2 }
   0xc   :  { %1229 = vmatprep.subr.bf16.mxu0 %v1291_v3  ;;  %1274 = vmatprep.subr.bf16.mxu1 %v1291_v3 }
   0xf   :  { %1230 = vmatpush3.bf16.msra.mxu0 %v1291_v3  ;;  %1282 = vmatpush3.bf16.msra.mxu1 %v1291_v3 }
  0x10   :  { %1231 = vmatprep.subr.bf16.mxu0 %v1292_v5  ;;  %1275 = vmatprep.subr.bf16.mxu1 %v1292_v5 }
  0x13   :  { %1232 = vmatpush3.bf16.msra.mxu0 %v1292_v5  ;;  %1283 = vmatpush3.bf16.msra.mxu1 %v1292_v5 }
  0x14   :  { %1233 = vmatprep.subr.bf16.mxu0 %v1293_v6  ;;  %1276 = vmatprep.subr.bf16.mxu1 %v1293_v6 }
  0x17   :  { %1234 = vmatpush3.bf16.msra.mxu0 %v1293_v6  ;;  %1284 = vmatpush3.bf16.msra.mxu1 %v1293_v6 }
  0x18   :  { %1235 = vmatprep.subr.bf16.mxu0 %v1294_v8  ;;  %1277 = vmatprep.subr.bf16.mxu1 %v1294_v8 }
  0x1b   :  { %1236 = vmatpush3.bf16.msra.mxu0 %v1294_v8  ;;  %1285 = vmatpush3.bf16.msra.mxu1 %v1294_v8 }
  0x1c   :  { %1237 = vmatprep.subr.bf16.mxu0 %v1295_v9  ;;  %1278 = vmatprep.subr.bf16.mxu1 %v1295_v9 }
  0x1f   :  { %1238 = vmatpush3.bf16.msra.mxu0 %v1295_v9  ;;  %1286 = vmatpush3.bf16.msra.mxu1 %v1295_v9 }
  0x22   :  { %1240 = vmatmul.mubr.bf16.vlgmr.msra.gmra.mrb[0].mxu0 %v1297_v10  ;;  %1256 = vmatmul.mubr.bf16.vlgmr.msra.gmra.mrb[0].mxu1 %v1305_v11 }
  0x23   :  { %1243 = vmatprep.mubr.bf16.mxu0 %v1298_v12  ;;  %1259 = vmatprep.mubr.bf16.mxu1 %v1306_v13 }
  0x2a   :  { %1244 = vmatmul.mubr.bf16.gmra.mrb[4].mxu0 %v1299_v14  ;;  %1260 = vmatmul.mubr.bf16.gmra.mrb[4].mxu1 %v1307_v15 }
  0x2b   :  { %1247 = vmatprep.mubr.bf16.mxu0 %v1300_v16  ;;  %1263 = vmatprep.mubr.bf16.mxu1 %v1308_v17 }
  0x32   :  { %1248 = vmatmul.mubr.bf16.gmra.mrb[8].mxu0 %v1301_v18  ;;  %1264 = vmatmul.mubr.bf16.gmra.mrb[8].mxu1 %v1309_v19 }
  0x33   :  { %1251 = vmatprep.mubr.bf16.mxu0 %v1302_v20  ;;  %1267 = vmatprep.mubr.bf16.mxu1 %v1310_v21 }
  0x3a   :  { %1252 = vmatmul.mubr.bf16.gmra.mrb[12].mxu0 %v1303_v22  ;;  %1268 = vmatmul.mubr.bf16.gmra.mrb[12].mxu1 %v1311_v23 }
  0xf5   :  { %v1412_v24 = vpop.f32.mrb[0].mxu0  ;;  %v1414_v25 = vpop.f32.mrb[0].mxu1 }
  0xf6   :  { %v1416_v26 = vpop.f32.mrb[1].mxu0  ;;  %v1418_v27 = vpop.f32.mrb[1].mxu1 }
  0xf7   :  { %v1420_v28 = vpop.f32.mrb[2].mxu0  ;;  %v1422_v29 = vpop.f32.mrb[2].mxu1 }
  0xf8   :  { %v1424_v30 = vpop.f32.mrb[3].mxu0  ;;  %v1426_v31 = vpop.f32.mrb[3].mxu1 }
  0xf9   :  { %v500_v32 = vadd.f32 %v1424_v30, %v1416_v26 }
  0xfb   :  { %v501_v33 = vadd.f32 %v1412_v24, %v500_v32 }
  0xfd   :  { %v1431_v34 = vpop.f32.mrb[4].mxu0  ;;  %v502_v35 = vadd.f32 %v1420_v28, %v501_v33  ;;  %v1434_v36 = vpop.f32.mrb[4].mxu1 }
  0xfe   :  { %v1436_v37 = vpop.f32.mrb[5].mxu0  ;;  %v1438_v38 = vpop.f32.mrb[5].mxu1 }
  0xff   :  { %v503_v39 = vadd.f32 %v502_v35, %v1436_v37  ;;  %v1441_v40 = vpop.f32.mrb[6].mxu0  ;;  %v1443_v41 = vpop.f32.mrb[6].mxu1 }
 0x100   :  { %v1445_v42 = vpop.f32.mrb[7].mxu0  ;;  %v1447_v43 = vpop.f32.mrb[7].mxu1 }
 0x101   :  { %v504_v44 = vadd.f32 %v503_v39, %v1445_v42 }
 0x103   :  { %v505_v45 = vadd.f32 %v1431_v34, %v504_v44 }
 0x105   :  { %v1451_v46 = vpop.f32.mrb[8].mxu0  ;;  %v506_v47 = vadd.f32 %v1441_v40, %v505_v45  ;;  %v1454_v48 = vpop.f32.mrb[8].mxu1 }
 0x106   :  { %v1456_v49 = vpop.f32.mrb[9].mxu0  ;;  %v1458_v50 = vpop.f32.mrb[9].mxu1 }
 0x107   :  { %v507_v51 = vadd.f32 %v506_v47, %v1456_v49  ;;  %v1461_v52 = vpop.f32.mrb[10].mxu0  ;;  %v1463_v53 = vpop.f32.mrb[10].mxu1 }
 0x108   :  { %v1465_v54 = vpop.f32.mrb[11].mxu0  ;;  %v1467_v55 = vpop.f32.mrb[11].mxu1 }
 0x109   :  { %v508_v56 = vadd.f32 %v507_v51, %v1465_v54 }
 0x10b   :  { %v509_v57 = vadd.f32 %v1451_v46, %v508_v56 }
 0x10d   :  { %v1471_v58 = vpop.f32.mrb[12].mxu0  ;;  %v510_v59 = vadd.f32 %v1461_v52, %v509_v57  ;;  %v1474_v60 = vpop.f32.mrb[12].mxu1 }
 0x10e   :  { %v1476_v61 = vpop.f32.mrb[13].mxu0  ;;  %v1478_v62 = vpop.f32.mrb[13].mxu1 }
 0x10f   :  { %v511_v63 = vadd.f32 %v510_v59, %v1476_v61  ;;  %v1481_v0 = vpop.f32.mrb[14].mxu0  ;;  %v1483_v1 = vpop.f32.mrb[14].mxu1 }
 0x110   :  { %v1485_v2 = vpop.f32.mrb[15].mxu0  ;;  %v1487_v3 = vpop.f32.mrb[15].mxu1 }
 0x111   :  { %v512_v4 = vadd.f32 %v511_v63, %v1485_v2 }
 0x113   :  { %v513_v5 = vadd.f32 %v1471_v58, %v512_v4 }
 0x115   :  { %v514_v6 = vadd.f32 %v1481_v0, %v513_v5 }
 0x117   :  { %v515_v7 = vadd.f32 %v514_v6, %v1418_v27 }
 0x119   :  { %v516_v8 = vadd.f32 %v515_v7, %v1426_v31 }
 0x11b   :  { %v517_v9 = vadd.f32 %v1414_v25, %v516_v8 }
 0x11d   :  { %v518_v10 = vadd.f32 %v1422_v29, %v517_v9 }
 0x11f   :  { %v519_v11 = vadd.f32 %v518_v10, %v1438_v38 }
 0x121   :  { %v520_v12 = vadd.f32 %v519_v11, %v1447_v43 }
 0x123   :  { %v521_v13 = vadd.f32 %v1434_v36, %v520_v12 }
 0x125   :  { %v522_v14 = vadd.f32 %v1443_v41, %v521_v13 }
 0x127   :  { %v523_v15 = vadd.f32 %v522_v14, %v1458_v50 }
 0x129   :  { %v524_v16 = vadd.f32 %v523_v15, %v1467_v55 }
 0x12b   :  { %v525_v17 = vadd.f32 %v1454_v48, %v524_v16 }
 0x12d   :  { %v526_v18 = vadd.f32 %v1463_v53, %v525_v17 }
 0x12f   :  { %v527_v19 = vadd.f32 %v526_v18, %v1478_v62 }
 0x131   :  { %v528_v20 = vadd.f32 %v527_v19, %v1487_v3 }
 0x133   :  { %v529_v21 = vadd.f32 %v1474_v60, %v528_v20 }
 0x135   :  { %v530_v22 = vadd.f32 %v1483_v1, %v529_v21 }
 0x137   :  { %v531_v23 = vrot.slane %v530_v22, 4 }
 0x139   :  { %v532_v32 = vadd.f32 %v531_v23, %v530_v22 }
 0x13b   :  { %v533_v33 = vrot.slane %v532_v32, 2 }
 0x13d   :  { %v534_v35 = vadd.f32 %v533_v33, %v532_v32 }
 0x13f   :  { %v535_v39 = vrot.slane %v534_v35, 1 }
 0x141   :  { %v536_v44 = vadd.f32 %v535_v39, %v534_v35 }
 0x143   :  { %v1508_v45 = vmul.f32 0.004132231, %v536_v44 }
 0x145   :  { %v538_v47 = vsub.f32 %v1416_v26, %v1508_v45  ;;  %v539_v51 = vsub.f32 %v1424_v30, %v1508_v45  ;;  %v540_v56 = vsub.f32 %v1412_v24, %v1508_v45  ;;  %v541_v63 = vsub.f32 %v1420_v28, %v1508_v45 }
 0x146   :  { %v542_v4 = vsub.f32 %v1436_v37, %v1508_v45  ;;  %v543_v7 = vsub.f32 %v1445_v42, %v1508_v45  ;;  %v544_v10 = vsub.f32 %v1431_v34, %v1508_v45  ;;  %v545_v13 = vsub.f32 %v1441_v40, %v1508_v45 }
 0x147   :  { %v602_v57 = vmul.f32 %v538_v47, %v538_v47  ;;  %v603_v59 = vmul.f32 %v539_v51, %v539_v51  ;;  %v604_v5 = vmul.f32 %v540_v56, %v540_v56  ;;  %v605_v8 = vmul.f32 %v541_v63, %v541_v63 }
 0x148   :  { %v606_v11 = vmul.f32 %v542_v4, %v542_v4  ;;  %v607_v14 = vmul.f32 %v543_v7, %v543_v7  ;;  %v546_v16 = vsub.f32 %v1456_v49, %v1508_v45  ;;  %v608_v17 = vmul.f32 %v544_v10, %v544_v10 }
 0x149   :  { %v634_v6 = vadd.f32 %v603_v59, %v602_v57  ;;  %v547_v19 = vsub.f32 %v1465_v54, %v1508_v45  ;;  %v609_v20 = vmul.f32 %v545_v13, %v545_v13  ;;  %v548_v22 = vsub.f32 %v1451_v46, %v1508_v45 }
 0x14a   :  { %v610_v23 = vmul.f32 %v546_v16, %v546_v16  ;;  %v549_v33 = vsub.f32 %v1461_v52, %v1508_v45  ;;  %v550_v44 = vsub.f32 %v1476_v61, %v1508_v45  ;;  %v551_v56 = vsub.f32 %v1485_v2, %v1508_v45 }
 0x14b   :  { %v635_v9 = vadd.f32 %v634_v6, %v604_v5  ;;  %v611_v35 = vmul.f32 %v547_v19, %v547_v19  ;;  %v612_v47 = vmul.f32 %v548_v22, %v548_v22  ;;  %v552_v63 = vsub.f32 %v1471_v58, %v1508_v45 }
 0x14c   :  { %v613_v57 = vmul.f32 %v549_v33, %v549_v33  ;;  %v614_v4 = vmul.f32 %v550_v44, %v550_v44  ;;  %v553_v6 = vsub.f32 %v1481_v0, %v1508_v45  ;;  %v615_v7 = vmul.f32 %v551_v56, %v551_v56 }
 0x14d   :  { %v636_v12 = vadd.f32 %v635_v9, %v605_v8  ;;  %v554_v9 = vsub.f32 %v1418_v27, %v1508_v45  ;;  %v616_v10 = vmul.f32 %v552_v63, %v552_v63  ;;  %v559_v33 = vsub.f32 %v1447_v43, %v1508_v45 }
 0x14e   :  { %v617_v13 = vmul.f32 %v553_v6, %v553_v6  ;;  %v560_v44 = vsub.f32 %v1434_v36, %v1508_v45 }
 0x14f   :  { %v637_v15 = vadd.f32 %v636_v12, %v606_v11  ;;  %v555_v12 = vsub.f32 %v1426_v31, %v1508_v45  ;;  %v618_v16 = vmul.f32 %v554_v9, %v554_v9 }
 0x151   :  { %v638_v18 = vadd.f32 %v637_v15, %v607_v14  ;;  %v556_v15 = vsub.f32 %v1414_v25, %v1508_v45  ;;  %v619_v19 = vmul.f32 %v555_v12, %v555_v12 }
 0x153   :  { %v639_v21 = vadd.f32 %v638_v18, %v608_v17  ;;  %v557_v18 = vsub.f32 %v1422_v29, %v1508_v45  ;;  %v620_v22 = vmul.f32 %v556_v15, %v556_v15 }
 0x155   :  { %v640_v32 = vadd.f32 %v639_v21, %v609_v20  ;;  %v558_v21 = vsub.f32 %v1438_v38, %v1508_v45 }
 0x157   :  { %v641_v39 = vadd.f32 %v640_v32, %v610_v23  ;;  %v371_v32 = vlaneseq }
 0x159   :  { %v642_v51 = vadd.f32 %v641_v39, %v611_v35  ;;  %v621_v35 = vmul.f32 %v557_v18, %v557_v18  ;;  %v1556_v56 = vshrl.u32 %v371_v32, 7  ;;  %v568_v18 = vsub.f32 %v1474_v60, %v1508_v45 }
 0x15a   :  { %v569_v32 = vsub.f32 %v1483_v1, %v1508_v45 }
 0x15b   :  { %v643_v59 = vadd.f32 %v642_v51, %v612_v47  ;;  %v622_v47 = vmul.f32 %v558_v21, %v558_v21  ;;  %v1314_v21 = vmov 0.0  }
 0x15d   :  { %v644_v5 = vadd.f32 %v643_v59, %v613_v57  ;;  %v561_v57 = vsub.f32 %v1443_v41, %v1508_v45  ;;  %v623_v59 = vmul.f32 %v559_v33, %v559_v33 }
 0x15f   :  { %v645_v8 = vadd.f32 %v644_v5, %v614_v4  ;;  %v562_v4 = vsub.f32 %v1458_v50, %v1508_v45  ;;  %v624_v5 = vmul.f32 %v560_v44, %v560_v44  ;;  %v625_v9 = vmul.f32 %v561_v57, %v561_v57 }
 0x161   :  { %v646_v11 = vadd.f32 %v645_v8, %v615_v7  ;;  %v402_v7 = vadd.s32 240, %v1556_v56  ;;  %v563_v8 = vsub.f32 %v1467_v55, %v1508_v45  ;;  %v626_v12 = vmul.f32 %v562_v4, %v562_v4 }
 0x163   :  { %v647_v14 = vadd.f32 %v646_v11, %v616_v10  ;;  %v564_v11 = vsub.f32 %v1454_v48, %v1508_v45  ;;  %vm434_vm0 = vcmp.lt.s32.totalorder %v402_v7, 242  ;;  %v627_v15 = vmul.f32 %v563_v8, %v563_v8 }
 0x165   :  { %v648_v17 = vadd.f32 %v647_v14, %v617_v13  ;;  %v565_v14 = vsub.f32 %v1463_v53, %v1508_v45 }
 0x167   :  { %v649_v20 = vadd.f32 %v648_v17, %v618_v16  ;;  %v566_v17 = vsub.f32 %v1478_v62, %v1508_v45  ;;  %v629_v33 = vmul.f32 %v565_v14, %v565_v14 }
 0x169   :  { %v650_v23 = vadd.f32 %v649_v20, %v619_v19  ;;  %v628_v19 = vmul.f32 %v564_v11, %v564_v11  ;;  %v630_v44 = vmul.f32 %v566_v17, %v566_v17  ;;  %v682_v17 = vsub.s32 0, %v1556_v56 }
 0x16b   :  { %v651_v39 = vadd.f32 %v650_v23, %v620_v22  ;;  %v1039_v22 = vsel %vm434_vm0, 1.0, %v1314_v21  ;;  %v567_v23 = vsub.f32 %v1487_v3, %v1508_v45 }
 0x16d   :  { %v652_v51 = vadd.f32 %v651_v39, %v621_v35  ;;  %v600_v39 = vmul.f32 %v1039_v22, %v568_v18  ;;  %v631_v57 = vmul.f32 %v567_v23, %v567_v23 }
 0x16f   :  { %v653_v63 = vadd.f32 %v652_v51, %v622_v47  ;;  %v601_v51 = vmul.f32 0.0, %v569_v32 }
 0x171   :  { %v654_v6 = vadd.f32 %v653_v63, %v623_v59  ;;  %v632_v63 = vmul.f32 %v600_v39, %v600_v39 }
 0x173   :  { %v655_v10 = vadd.f32 %v654_v6, %v624_v5  ;;  %v633_v5 = vmul.f32 %v601_v51, %v601_v51 }
 0x175   :  { %v656_v13 = vadd.f32 %v655_v10, %v625_v9 }
 0x177   :  { %v657_v16 = vadd.f32 %v656_v13, %v626_v12 }
 0x179   :  { %v658_v20 = vadd.f32 %v657_v16, %v627_v15  ;;  %v672_v16 = vld [vmem:[%s1897_s2] sm:$0x1] }
 0x17b   :  { %v659_v35 = vadd.f32 %v658_v20, %v628_v19  ;;  %v676_v20 = vld [vmem:[%s1898_s3] sm:$0x1] }
 0x17d   :  { %v660_v47 = vadd.f32 %v659_v35, %v629_v33 }
 0x17f   :  { %v661_v59 = vadd.f32 %v660_v47, %v630_v44 }
 0x181   :  { %v662_v4 = vadd.f32 %v661_v59, %v631_v57 }
 0x183   :  { %v663_v6 = vadd.f32 %v662_v4, %v632_v63 }
 0x185   :  { %v664_v7 = vadd.f32 %v663_v6, %v633_v5 }
 0x187   :  { %v665_v8 = vrot.slane %v664_v7, 4 }
 0x189   :  { %v666_v9 = vadd.f32 %v665_v8, %v664_v7 }
 0x18b   :  { %v667_v10 = vrot.slane %v666_v9, 2 }
 0x18d   :  { %v668_v11 = vadd.f32 %v667_v10, %v666_v9 }
 0x18f   :  { %v669_v12 = vrot.slane %v668_v11, 1 }
 0x191   :  { %v670_v13 = vadd.f32 %v669_v12, %v668_v11 }
 0x193   :  { %v671_v15 = vmul.f32 0.004132231, %v670_v13 }
 0x195   :  { %v673_v14 = vadd.f32 1e-05, %v671_v15 }
 0x197   :  { %1312 = vrsqrt.f32 %v673_v14 }
 0x1a1   :  { %v1313_v18 = vpop.eup %1312 }
 0x1a2   :  { %v675_v19 = vmul.f32 %v1313_v18, %v672_v16 }
 0x1a4   :  { %v677_v21 = vmul.f32 %v675_v19, %v1508_v45  ;;  %v683_v22 = vrot.slane %v675_v19, %v682_v17 }
 0x1a6   :  { %v678_v23 = vsub.f32 %v676_v20, %v677_v21  ;;  %v685_v32 = vmul.f32 %v683_v22, %v1416_v26  ;;  %v686_v33 = vmul.f32 %v683_v22, %v1424_v30  ;;  %v687_v35 = vmul.f32 %v1412_v24, %v683_v22 }
 0x1a7   :  { %v688_v39 = vmul.f32 %v1420_v28, %v683_v22  ;;  %v689_v56 = vmul.f32 %v683_v22, %v1436_v37  ;;  %v690_v44 = vmul.f32 %v683_v22, %v1445_v42  ;;  %v691_v47 = vmul.f32 %v1431_v34, %v683_v22 }
 0x1a8   :  { %v692_v51 = vmul.f32 %v1441_v40, %v683_v22  ;;  %v693_v45 = vmul.f32 %v683_v22, %v1456_v49  ;;  %v694_v57 = vmul.f32 %v683_v22, %v1465_v54  ;;  %v695_v26 = vmul.f32 %v1451_v46, %v683_v22 }
 0x1a9   :  { %v696_v30 = vmul.f32 %v1461_v52, %v683_v22  ;;  %v697_v24 = vmul.f32 %v683_v22, %v1476_v61  ;;  %v698_v28 = vmul.f32 %v683_v22, %v1485_v2  ;;  %v699_v37 = vmul.f32 %v1471_v58, %v683_v22 }
 0x1aa   :  { %v700_v42 = vmul.f32 %v1481_v0, %v683_v22  ;;  %v701_v34 = vmul.f32 %v683_v22, %v1418_v27  ;;  %v702_v40 = vmul.f32 %v683_v22, %v1426_v31  ;;  %v703_v49 = vmul.f32 %v1414_v25, %v683_v22 }
 0x1ab   :  { %v704_v54 = vmul.f32 %v1422_v29, %v683_v22  ;;  %v705_v46 = vmul.f32 %v683_v22, %v1438_v38  ;;  %v706_v52 = vmul.f32 %v683_v22, %v1447_v43  ;;  %v707_v61 = vmul.f32 %v1434_v36, %v683_v22 }
 0x1ac   :  { %v708_v2 = vmul.f32 %v1443_v41, %v683_v22  ;;  %v709_v58 = vmul.f32 %v683_v22, %v1458_v50  ;;  %v710_v0 = vmul.f32 %v683_v22, %v1467_v55  ;;  %v711_v27 = vmul.f32 %v1454_v48, %v683_v22 }
 0x1ad   :  { %v712_v31 = vmul.f32 %v1463_v53, %v683_v22  ;;  %v713_v25 = vmul.f32 %v683_v22, %v1478_v62  ;;  %v714_v29 = vmul.f32 %v683_v22, %v1487_v3  ;;  %v715_v38 = vmul.f32 %v1474_v60, %v683_v22 }
 0x1ae   :  { %v716_v43 = vmul.f32 %v1483_v1, %v683_v22  ;;  %v721_v59 = vrot.slane %v678_v23, %v682_v17 }
 0x1b0   :  { %v1617_v36 = vadd.f32 %v721_v59, %v685_v32  ;;  %v1619_v41 = vadd.f32 %v721_v59, %v686_v33  ;;  %v1621_v50 = vadd.f32 %v721_v59, %v687_v35  ;;  %v1623_v55 = vadd.f32 %v721_v59, %v688_v39 }
 0x1b1   :  { %v1625_v48 = vadd.f32 %v721_v59, %v689_v56  ;;  %v1627_v53 = vadd.f32 %v721_v59, %v690_v44  ;;  %v1629_v62 = vadd.f32 %v721_v59, %v691_v47  ;;  %v1631_v3 = vadd.f32 %v721_v59, %v692_v51 }
 0x1b2   :  { %v1633_v60 = vadd.f32 %v721_v59, %v693_v45  ;;  %v1635_v1 = vadd.f32 %v721_v59, %v694_v57  ;;  %v1637_v63 = vadd.f32 %v721_v59, %v695_v26  ;;  %v1639_v4 = vadd.f32 %v721_v59, %v696_v30 }
 0x1b3   :  { %v1641_v5 = vadd.f32 %v721_v59, %v697_v24  ;;  %v1643_v6 = vadd.f32 %v721_v59, %v698_v28  ;;  %v1645_v7 = vadd.f32 %v721_v59, %v699_v37  ;;  %v1647_v8 = vadd.f32 %v721_v59, %v700_v42 }
 0x1b4   :  { %v1649_v9 = vadd.f32 %v721_v59, %v701_v34  ;;  %v1651_v10 = vadd.f32 %v721_v59, %v702_v40  ;;  %v1653_v11 = vadd.f32 %v721_v59, %v703_v49  ;;  %v1655_v12 = vadd.f32 %v721_v59, %v704_v54 }
 0x1b5   :  { %v1657_v13 = vadd.f32 %v721_v59, %v705_v46  ;;  %v1659_v15 = vadd.f32 %v721_v59, %v706_v52  ;;  %v1661_v14 = vadd.f32 %v721_v59, %v707_v61  ;;  %v1663_v16 = vadd.f32 %v721_v59, %v708_v2 }
 0x1b6   :  { %v1665_v17 = vadd.f32 %v721_v59, %v709_v58  ;;  %v1667_v18 = vadd.f32 %v721_v59, %v710_v0  ;;  %v1669_v19 = vadd.f32 %v721_v59, %v711_v27  ;;  %v1671_v20 = vadd.f32 %v721_v59, %v712_v31 }
 0x1b7   :  { %v1673_v21 = vadd.f32 %v721_v59, %v713_v25  ;;  %v1675_v22 = vadd.f32 %v721_v59, %v714_v29  ;;  %v1677_v23 = vadd.f32 %v721_v59, %v715_v38  ;;  %v1679_v32 = vadd.f32 %v721_v59, %v716_v43 }
 0x1b8   :  { %vm755_vm1 = vcmp.ge.f32.partialorder %v1617_v36, 0.0  ;;  %vm756_vm2 = vcmp.ge.f32.partialorder %v1619_v41, 0.0  ;;  %vm757_vm3 = vcmp.ge.f32.partialorder %v1621_v50, 0.0  ;;  %vm758_vm4 = vcmp.ge.f32.partialorder %v1623_v55, 0.0 }
 0x1b9   :  { %vm759_vm5 = vcmp.ge.f32.partialorder %v1625_v48, 0.0  ;;  %vm760_vm6 = vcmp.ge.f32.partialorder %v1627_v53, 0.0  ;;  %vm761_vm7 = vcmp.ge.f32.partialorder %v1629_v62, 0.0  ;;  %vm762_vm8 = vcmp.ge.f32.partialorder %v1631_v3, 0.0 }
 0x1ba   :  { %vm763_vm9 = vcmp.ge.f32.partialorder %v1633_v60, 0.0  ;;  %v787_v33 = vmul.f32 0.3, %v1617_v36  ;;  %v788_v35 = vmul.f32 0.3, %v1619_v41  ;;  %vm770_vm0 = vcmp.ge.f32.partialorder %v1647_v8, 0.0 }
 0x1bb   :  { %v789_v39 = vmul.f32 0.3, %v1621_v50  ;;  %vm771_vm10 = vcmp.ge.f32.partialorder %v1649_v9, 0.0  ;;  %v790_v56 = vmul.f32 0.3, %v1623_v55  ;;  %vm776_vm15 = vcmp.ge.f32.partialorder %v1659_v15, 0.0 }
 0x1bc   :  { %v791_v44 = vmul.f32 0.3, %v1625_v48  ;;  %v792_v47 = vmul.f32 0.3, %v1627_v53  ;;  %v793_v51 = vmul.f32 0.3, %v1629_v62  ;;  %v1715_v26 = vsel %vm755_vm1, %v1617_v36, %v787_v33 }
 0x1bd   :  { %v794_v45 = vmul.f32 0.3, %v1631_v3  ;;  %v795_v57 = vmul.f32 0.3, %v1633_v60  ;;  %vm780_vm12 = vcmp.ge.f32.partialorder %v1667_v18, 0.0  ;;  %v1727_v37 = vsel %vm756_vm2, %v1619_v41, %v788_v35 }
 0x1be   :  { %v796_v30 = vmul.f32 0.3, %v1635_v1  ;;  %v797_v24 = vmul.f32 0.3, %v1637_v63  ;;  %v798_v28 = vmul.f32 0.3, %v1639_v4  ;;  %v821_v49 = vsel %vm757_vm3, %v1621_v50, %v789_v39 }
 0x1bf   :  { %vm782_vm11 = vcmp.ge.f32.partialorder %v1671_v20, 0.0  ;;  %vm783_vm14 = vcmp.ge.f32.partialorder %v1673_v21, 0.0  ;;  %vm784_vm13 = vcmp.ge.f32.partialorder %v1675_v22, 0.0  ;;  %v799_v42 = vmul.f32 0.3, %v1641_v5 }
 0x1c0   :  { %v800_v34 = vmul.f32 0.3, %v1643_v6  ;;  %v801_v40 = vmul.f32 0.3, %v1645_v7  ;;  %vm785_vm2 = vcmp.ge.f32.partialorder %v1677_v23, 0.0  ;;  %vm786_vm1 = vcmp.ge.f32.partialorder %v1679_v32, 0.0 }
 0x1c1   :  { %v802_v54 = vmul.f32 0.3, %v1647_v8  ;;  %v803_v46 = vmul.f32 0.3, %v1649_v9  ;;  %v804_v52 = vmul.f32 0.3, %v1651_v10  ;;  %v822_v61 = vsel %vm758_vm4, %v1623_v55, %v790_v56 }
 0x1c2   :  { %v805_v2 = vmul.f32 0.3, %v1653_v11  ;;  %v806_v58 = vmul.f32 0.3, %v1655_v12  ;;  %v807_v0 = vmul.f32 0.3, %v1657_v13  ;;  %v823_v27 = vsel %vm759_vm5, %v1625_v48, %v791_v44 }
 0x1c3   :  { %v808_v31 = vmul.f32 0.3, %v1659_v15  ;;  %v809_v25 = vmul.f32 0.3, %v1661_v14  ;;  %v810_v29 = vmul.f32 0.3, %v1663_v16  ;;  %v824_v38 = vsel %vm760_vm6, %v1627_v53, %v792_v47 }
 0x1c4   :  { %v811_v43 = vmul.f32 0.3, %v1665_v17  ;;  %v812_v59 = vmul.f32 0.3, %v1667_v18  ;;  %v813_v36 = vmul.f32 0.3, %v1669_v19  ;;  %v825_v41 = vsel %vm761_vm7, %v1629_v62, %v793_v51 }
 0x1c5   :  { %v814_v50 = vmul.f32 0.3, %v1671_v20  ;;  %v815_v55 = vmul.f32 0.3, %v1673_v21  ;;  %v816_v48 = vmul.f32 0.3, %v1675_v22  ;;  %v826_v53 = vsel %vm762_vm8, %v1631_v3, %v794_v45 }
 0x1c6   :  { %v817_v33 = vmul.f32 0.3, %v1677_v23  ;;  %v818_v35 = vmul.f32 0.3, %v1679_v32  ;;  %v827_v39 = vsel %vm763_vm9, %v1633_v60, %v795_v57  ;;  %vm1900_vm3 = vcmp.ge.f32.partialorder %v1635_v1, 0.0 }
 0x1c7   :  { %v828_v62 = vsel %vm1900_vm3, %v1635_v1, %v796_v30  ;;  %vm1901_vm4 = vcmp.ge.f32.partialorder %v1637_v63, 0.0  ;;  %vm1902_vm5 = vcmp.ge.f32.partialorder %v1639_v4, 0.0  ;;  %vm1903_vm6 = vcmp.ge.f32.partialorder %v1641_v5, 0.0 }
 0x1c8   :  { %v829_v56 = vsel %vm1901_vm4, %v1637_v63, %v797_v24  ;;  %v830_v3 = vsel %vm1902_vm5, %v1639_v4, %v798_v28  ;;  %v831_v44 = vsel %vm1903_vm6, %v1641_v5, %v799_v42  ;;  %vm1904_vm7 = vcmp.ge.f32.partialorder %v1643_v6, 0.0 }
 0x1c9   :  { %v832_v60 = vsel %vm1904_vm7, %v1643_v6, %v800_v34  ;;  %vm1905_vm8 = vcmp.ge.f32.partialorder %v1645_v7, 0.0  ;;  %v834_v63 = vsel %vm770_vm0, %v1647_v8, %v802_v54  ;;  %v835_v4 = vsel %vm771_vm10, %v1649_v9, %v803_v46 }
 0x1ca   :  { %v833_v1 = vsel %vm1905_vm8, %v1645_v7, %v801_v40  ;;  %vm1906_vm9 = vcmp.ge.f32.partialorder %v1651_v10, 0.0  ;;  %vm1907_vm3 = vcmp.ge.f32.partialorder %v1653_v11, 0.0  ;;  %vm1908_vm4 = vcmp.ge.f32.partialorder %v1655_v12, 0.0 }
 0x1cb   :  { %v836_v5 = vsel %vm1906_vm9, %v1651_v10, %v804_v52  ;;  %v837_v6 = vsel %vm1907_vm3, %v1653_v11, %v805_v2  ;;  %v838_v7 = vsel %vm1908_vm4, %v1655_v12, %v806_v58  ;;  %vm1909_vm5 = vcmp.ge.f32.partialorder %v1657_v13, 0.0 }
 0x1cc   :  { %v839_v8 = vsel %vm1909_vm5, %v1657_v13, %v807_v0  ;;  %v840_v9 = vsel %vm776_vm15, %v1659_v15, %v808_v31  ;;  %vm1910_vm10 = vcmp.ge.f32.partialorder %v1661_v14, 0.0  ;;  %vm1911_vm0 = vcmp.ge.f32.partialorder %v1663_v16, 0.0 }
 0x1cd   :  { %v841_v10 = vsel %vm1910_vm10, %v1661_v14, %v809_v25  ;;  %v842_v11 = vsel %vm1911_vm0, %v1663_v16, %v810_v29  ;;  %vm1912_vm6 = vcmp.ge.f32.partialorder %v1665_v17, 0.0  ;;  %v844_v13 = vsel %vm780_vm12, %v1667_v18, %v812_v59 }
 0x1ce   :  { %v843_v12 = vsel %vm1912_vm6, %v1665_v17, %v811_v43  ;;  %vm1913_vm7 = vcmp.ge.f32.partialorder %v1669_v19, 0.0  ;;  %v846_v14 = vsel %vm782_vm11, %v1671_v20, %v814_v50  ;;  %v847_v16 = vsel %vm783_vm14, %v1673_v21, %v815_v55 }
 0x1cf   :  { %v845_v15 = vsel %vm1913_vm7, %v1669_v19, %v813_v36  ;;  %v848_v17 = vsel %vm784_vm13, %v1675_v22, %v816_v48  ;;  %v849_v18 = vsel %vm785_vm2, %v1677_v23, %v817_v33  ;;  %v850_v19 = vsel %vm786_vm1, %v1679_v32, %v818_v35 }
 0x1d0   :  { %v1107_v47 = vpack.c.bf16 %v1727_v37, %v1715_v26  ;;  %v1112_v20 = vpack.c.bf16 %v822_v61, %v821_v49  ;;  %v1117_v51 = vpack.c.bf16 %v824_v38, %v823_v27  ;;  %v1122_v45 = vpack.c.bf16 %v826_v53, %v825_v41 }
 0x1d1   :  { %v1127_v57 = vpack.c.bf16 %v828_v62, %v827_v39  ;;  %v1132_v21 = vpack.c.bf16 %v830_v3, %v829_v56  ;;  %v1137_v22 = vpack.c.bf16 %v832_v60, %v831_v44  ;;  %v1142_v23 = vpack.c.bf16 %v834_v63, %v833_v1 }
 0x1d2   :  { %1108 = vst [vmem:[%s1899_s4] sm:$0xff] %v1107_v47   ;;  %1184 = vst [vmem:[%s1899_s4 + $0x8] sm:$0xff] %v1112_v20   ;;  %v1147_v30 = vpack.c.bf16 %v836_v5, %v835_v4  ;;  %v1152_v32 = vpack.c.bf16 %v838_v7, %v837_v6  ;;  %v1157_v26 = vpack.c.bf16 %v840_v9, %v839_v8 }
 0x1d3   :  { %1185 = vst [vmem:[%s1899_s4 + $0x10] sm:$0xff] %v1117_v51   ;;  %1186 = vst [vmem:[%s1899_s4 + $0x18] sm:$0xff] %v1122_v45   ;;  %v1162_v24 = vpack.c.bf16 %v842_v11, %v841_v10  ;;  %v1167_v28 = vpack.c.bf16 %v844_v13, %v843_v12  ;;  %v1172_v37 = vpack.c.bf16 %v846_v14, %v845_v15 }
 0x1d4   :  { %1187 = vst [vmem:[%s1899_s4 + $0x20] sm:$0xff] %v1127_v57   ;;  %1188 = vst [vmem:[%s1899_s4 + $0x28] sm:$0xff] %v1132_v21   ;;  %v1177_v42 = vpack.c.bf16 %v848_v17, %v847_v16  ;;  %v1182_v34 = vpack.c.bf16 %v850_v19, %v849_v18 }
 0x1d5   :  { %1189 = vst [vmem:[%s1899_s4 + $0x30] sm:$0xff] %v1137_v22   ;;  %1190 = vst [vmem:[%s1899_s4 + $0x38] sm:$0xff] %v1142_v23  }
 0x1d6   :  { %1191 = vst [vmem:[%s1899_s4 + $0x40] sm:$0xff] %v1147_v30   ;;  %1192 = vst [vmem:[%s1899_s4 + $0x48] sm:$0xff] %v1152_v32  }
 0x1d7   :  { %1193 = vst [vmem:[%s1899_s4 + $0x50] sm:$0xff] %v1157_v26   ;;  %1194 = vst [vmem:[%s1899_s4 + $0x58] sm:$0xff] %v1162_v24  }
 0x1d8   :  { %1195 = vst [vmem:[%s1899_s4 + $0x60] sm:$0xff] %v1167_v28   ;;  %1196 = vst [vmem:[%s1899_s4 + $0x68] sm:$0xff] %v1172_v37  }
 0x1d9   :  { %1197 = vst [vmem:[%s1899_s4 + $0x70] sm:$0xff] %v1177_v42   ;;  %1198 = vst [vmem:[%s1899_s4 + $0x78] sm:$0xff] %v1182_v34  }

// kernel: _lambda_.3
= control target key start
LH: loop header
LB: loop body
LE: loop exit
PB: predicated region body
PF: predicated region fallthrough
CT: control target
= control target key end

     0   :  { %s7599_s1 = inlined_call_operand.vmem [shape: bf16[128,128], index: 1, kind: input, shape index: {}]   ;;  %s7600_s0 = inlined_call_operand.vmem [shape: bf16[1152,128], index: 0, kind: input, shape index: {}]   ;;  %s7601_s2 = inlined_call_operand.vmem [shape: f32[1,128], index: 2, kind: input, shape index: {}]   ;;  %s7602_s3 = inlined_call_operand.vmem [shape: f32[1,128], index: 3, kind: input, shape index: {}]   ;;  %s7603_s4 = inlined_call_operand.vmem [shape: f32[1152,128], index: 4, kind: output, shape index: {}]  }
   0x1   :  { %v3801_v0 = vld [vmem:[%s7599_s1] sm:$0xff]   ;;  %v3802_v1 = vld [vmem:[%s7599_s1 + $0x8] sm:$0xff]   ;;  %v3803_v2 = vld [vmem:[%s7599_s1 + $0x10] sm:$0xff]  }
   0x2   :  { %3624 = vmatprep.subr.bf16.mxu0 %v3801_v0  ;;  %3784 = vmatprep.subr.bf16.mxu1 %v3801_v0  ;;  %v3804_v3 = vld [vmem:[%s7599_s1 + $0x18] sm:$0xff]   ;;  %v3809_v4 = vld [vmem:[%s7600_s0] sm:$0xff]   ;;  %v3806_v6 = vld [vmem:[%s7599_s1 + $0x28] sm:$0xff]  }
   0x3   :  { %3625 = vmatpush3.bf16.msra.mxu0 %v3801_v0  ;;  %3792 = vmatpush3.bf16.msra.mxu1 %v3801_v0  ;;  %v3805_v5 = vld [vmem:[%s7599_s1 + $0x20] sm:$0xff]   ;;  %v3807_v7 = vld [vmem:[%s7599_s1 + $0x30] sm:$0xff]   ;;  %v3808_v8 = vld [vmem:[%s7599_s1 + $0x38] sm:$0xff]  }
   0x4   :  { %3626 = vmatprep.subr.bf16.mxu0 %v3802_v1  ;;  %3785 = vmatprep.subr.bf16.mxu1 %v3802_v1  ;;  %v3810_v9 = vld [vmem:[%s7600_s0 + $0x8] sm:$0xff]   ;;  %v3811_v10 = vld [vmem:[%s7600_s0 + $0x10] sm:$0xff]   ;;  %v3812_v11 = vld [vmem:[%s7600_s0 + $0x18] sm:$0xff]  }
   0x5   :  { %3640 = vmatprep.mubr.bf16.mxu0 %v3809_v4  ;;  %v3813_v12 = vld [vmem:[%s7600_s0 + $0x20] sm:$0xff]   ;;  %v3814_v13 = vld [vmem:[%s7600_s0 + $0x28] sm:$0xff]   ;;  %v3847_v16 = vld [vmem:[%s7600_s0 + $0x130] sm:$0xff]  }
   0x6   :  { %v3845_v14 = vld [vmem:[%s7600_s0 + $0x120] sm:$0xff]   ;;  %v3846_v15 = vld [vmem:[%s7600_s0 + $0x128] sm:$0xff]   ;;  %v3815_v17 = vld [vmem:[%s7600_s0 + $0x30] sm:$0xff]  }
   0x7   :  { %3627 = vmatpush3.bf16.msra.mxu0 %v3802_v1  ;;  %3793 = vmatpush3.bf16.msra.mxu1 %v3802_v1  ;;  %v3848_v18 = vld [vmem:[%s7600_s0 + $0x138] sm:$0xff]   ;;  %v3849_v19 = vld [vmem:[%s7600_s0 + $0x140] sm:$0xff]   ;;  %v3850_v22 = vld [vmem:[%s7600_s0 + $0x148] sm:$0xff]  }
   0x8   :  { %3628 = vmatprep.subr.bf16.mxu0 %v3803_v2  ;;  %3786 = vmatprep.subr.bf16.mxu1 %v3803_v2  ;;  %v3816_v20 = vld [vmem:[%s7600_s0 + $0x38] sm:$0xff]   ;;  %v3817_v21 = vld [vmem:[%s7600_s0 + $0x40] sm:$0xff]   ;;  %v3818_v23 = vld [vmem:[%s7600_s0 + $0x48] sm:$0xff]  }
   0x9   :  { %3712 = vmatprep.mubr.bf16.mxu1 %v3845_v14  ;;  %v3851_v24 = vld [vmem:[%s7600_s0 + $0x150] sm:$0xff]   ;;  %v3852_v26 = vld [vmem:[%s7600_s0 + $0x158] sm:$0xff]   ;;  %v3853_v27 = vld [vmem:[%s7600_s0 + $0x160] sm:$0xff]  }
   0xa   :  { %v3819_v25 = vld [vmem:[%s7600_s0 + $0x50] sm:$0xff]   ;;  %v3820_v28 = vld [vmem:[%s7600_s0 + $0x58] sm:$0xff]   ;;  %v3821_v29 = vld [vmem:[%s7600_s0 + $0x60] sm:$0xff]  }
   0xb   :  { %3629 = vmatpush3.bf16.msra.mxu0 %v3803_v2  ;;  %3794 = vmatpush3.bf16.msra.mxu1 %v3803_v2  ;;  %v3854_v30 = vld [vmem:[%s7600_s0 + $0x168] sm:$0xff]   ;;  %v3855_v31 = vld [vmem:[%s7600_s0 + $0x170] sm:$0xff]   ;;  %v3856_v34 = vld [vmem:[%s7600_s0 + $0x178] sm:$0xff]  }
   0xc   :  { %3630 = vmatprep.subr.bf16.mxu0 %v3804_v3  ;;  %3787 = vmatprep.subr.bf16.mxu1 %v3804_v3  ;;  %v3822_v32 = vld [vmem:[%s7600_s0 + $0x68] sm:$0xff]   ;;  %v3823_v33 = vld [vmem:[%s7600_s0 + $0x70] sm:$0xff]   ;;  %v3857_v35 = vld [vmem:[%s7600_s0 + $0x180] sm:$0xff]  }
   0xd   :  { %v3824_v36 = vld [vmem:[%s7600_s0 + $0x78] sm:$0xff]   ;;  %v3825_v37 = vld [vmem:[%s7600_s0 + $0x80] sm:$0xff]   ;;  %v3858_v38 = vld [vmem:[%s7600_s0 + $0x188] sm:$0xff]  }
   0xe   :  { %v3859_v39 = vld [vmem:[%s7600_s0 + $0x190] sm:$0xff]   ;;  %v3826_v40 = vld [vmem:[%s7600_s0 + $0x88] sm:$0xff]   ;;  %v3860_v42 = vld [vmem:[%s7600_s0 + $0x198] sm:$0xff]  }
   0xf   :  { %3631 = vmatpush3.bf16.msra.mxu0 %v3804_v3  ;;  %3795 = vmatpush3.bf16.msra.mxu1 %v3804_v3  ;;  %v3827_v41 = vld [vmem:[%s7600_s0 + $0x90] sm:$0xff]   ;;  %v3861_v43 = vld [vmem:[%s7600_s0 + $0x1a0] sm:$0xff]   ;;  %v3828_v44 = vld [vmem:[%s7600_s0 + $0x98] sm:$0xff]  }
  0x10   :  { %3632 = vmatprep.subr.bf16.mxu0 %v3805_v5  ;;  %3788 = vmatprep.subr.bf16.mxu1 %v3805_v5  ;;  %v3829_v45 = vld [vmem:[%s7600_s0 + $0xa0] sm:$0xff]   ;;  %v3862_v46 = vld [vmem:[%s7600_s0 + $0x1a8] sm:$0xff]   ;;  %v3831_v48 = vld [vmem:[%s7600_s0 + $0xb0] sm:$0xff]  }
  0x11   :  { %v3830_v47 = vld [vmem:[%s7600_s0 + $0xa8] sm:$0xff]   ;;  %v3863_v49 = vld [vmem:[%s7600_s0 + $0x1b0] sm:$0xff]   ;;  %v3864_v50 = vld [vmem:[%s7600_s0 + $0x1b8] sm:$0xff]  }
  0x12   :  { %v3832_v51 = vld [vmem:[%s7600_s0 + $0xb8] sm:$0xff]   ;;  %v3833_v52 = vld [vmem:[%s7600_s0 + $0xc0] sm:$0xff]   ;;  %v3866_v54 = vld [vmem:[%s7600_s0 + $0x1c8] sm:$0xff]  }
  0x13   :  { %3633 = vmatpush3.bf16.msra.mxu0 %v3805_v5  ;;  %3796 = vmatpush3.bf16.msra.mxu1 %v3805_v5  ;;  %v3865_v53 = vld [vmem:[%s7600_s0 + $0x1c0] sm:$0xff]   ;;  %v3834_v55 = vld [vmem:[%s7600_s0 + $0xc8] sm:$0xff]   ;;  %v3835_v56 = vld [vmem:[%s7600_s0 + $0xd0] sm:$0xff]  }
  0x14   :  { %3634 = vmatprep.subr.bf16.mxu0 %v3806_v6  ;;  %3789 = vmatprep.subr.bf16.mxu1 %v3806_v6  ;;  %v3867_v57 = vld [vmem:[%s7600_s0 + $0x1d0] sm:$0xff]   ;;  %v3868_v58 = vld [vmem:[%s7600_s0 + $0x1d8] sm:$0xff]   ;;  %v3837_v60 = vld [vmem:[%s7600_s0 + $0xe0] sm:$0xff]  }
  0x15   :  { %v3836_v59 = vld [vmem:[%s7600_s0 + $0xd8] sm:$0xff]   ;;  %v3869_v61 = vld [vmem:[%s7600_s0 + $0x1e0] sm:$0xff]   ;;  %v3870_v62 = vld [vmem:[%s7600_s0 + $0x1e8] sm:$0xff]  }
  0x16   :  { %v3838_v63 = vld [vmem:[%s7600_s0 + $0xe8] sm:$0xff]   ;;  %v3839_v0 = vld [vmem:[%s7600_s0 + $0xf0] sm:$0xff]   ;;  %v3872_v2 = vld [vmem:[%s7600_s0 + $0x1f8] sm:$0xff]  }
  0x17   :  { %3635 = vmatpush3.bf16.msra.mxu0 %v3806_v6  ;;  %3797 = vmatpush3.bf16.msra.mxu1 %v3806_v6  ;;  %v3871_v1 = vld [vmem:[%s7600_s0 + $0x1f0] sm:$0xff]   ;;  %v3840_v3 = vld [vmem:[%s7600_s0 + $0xf8] sm:$0xff]   ;;  %v3841_v4 = vld [vmem:[%s7600_s0 + $0x100] sm:$0xff]  }
  0x18   :  { %3636 = vmatprep.subr.bf16.mxu0 %v3807_v7  ;;  %3790 = vmatprep.subr.bf16.mxu1 %v3807_v7  ;;  %v3873_v5 = vld [vmem:[%s7600_s0 + $0x200] sm:$0xff]   ;;  %v3874_v6 = vld [vmem:[%s7600_s0 + $0x208] sm:$0xff]   ;;  %v3879_v14 = vld [vmem:[%s7600_s0 + $0x230] sm:$0xff]  }
  0x1b   :  { %3637 = vmatpush3.bf16.msra.mxu0 %v3807_v7  ;;  %3798 = vmatpush3.bf16.msra.mxu1 %v3807_v7  ;;  %v3842_v7 = vld [vmem:[%s7600_s0 + $0x108] sm:$0xff]  }
  0x1c   :  { %3638 = vmatprep.subr.bf16.mxu0 %v3808_v8  ;;  %3791 = vmatprep.subr.bf16.mxu1 %v3808_v8 }
  0x1f   :  { %3639 = vmatpush3.bf16.msra.mxu0 %v3808_v8  ;;  %3799 = vmatpush3.bf16.msra.mxu1 %v3808_v8  ;;  %v3843_v8 = vld [vmem:[%s7600_s0 + $0x110] sm:$0xff]  }
  0x22   :  { %3641 = vmatmul.mubr.bf16.vlgmr.msra.gmra.mrb[0].mxu0 %v3810_v9  ;;  %3713 = vmatmul.mubr.bf16.vlgmr.msra.gmra.mrb[0].mxu1 %v3846_v15  ;;  %v3875_v9 = vld [vmem:[%s7600_s0 + $0x210] sm:$0xff]   ;;  %v3880_v15 = vld [vmem:[%s7600_s0 + $0x238] sm:$0xff]  }
  0x23   :  { %3644 = vmatprep.mubr.bf16.mxu0 %v3811_v10  ;;  %3716 = vmatprep.mubr.bf16.mxu1 %v3847_v16  ;;  %v3876_v10 = vld [vmem:[%s7600_s0 + $0x218] sm:$0xff]  }
  0x2a   :  { %3645 = vmatmul.mubr.bf16.gmra.mrb[4].mxu0 %v3812_v11  ;;  %3717 = vmatmul.mubr.bf16.gmra.mrb[4].mxu1 %v3848_v18  ;;  %v3844_v11 = vld [vmem:[%s7600_s0 + $0x118] sm:$0xff]  }
  0x2b   :  { %3648 = vmatprep.mubr.bf16.mxu0 %v3813_v12  ;;  %3720 = vmatprep.mubr.bf16.mxu1 %v3849_v19  ;;  %v3877_v12 = vld [vmem:[%s7600_s0 + $0x220] sm:$0xff]  }
  0x32   :  { %3649 = vmatmul.mubr.bf16.gmra.mrb[8].mxu0 %v3814_v13  ;;  %3721 = vmatmul.mubr.bf16.gmra.mrb[8].mxu1 %v3850_v22  ;;  %v3878_v13 = vld [vmem:[%s7600_s0 + $0x228] sm:$0xff]  }
  0x33   :  { %3652 = vmatprep.mubr.bf16.mxu0 %v3815_v17  ;;  %3724 = vmatprep.mubr.bf16.mxu1 %v3851_v24 }
  0x3a   :  { %3653 = vmatmul.mubr.bf16.gmra.mrb[12].mxu0 %v3816_v20  ;;  %3725 = vmatmul.mubr.bf16.gmra.mrb[12].mxu1 %v3852_v26 }
  0x3b   :  { %3656 = vmatprep.mubr.bf16.mxu0 %v3817_v21  ;;  %3728 = vmatprep.mubr.bf16.mxu1 %v3853_v27 }
  0x42   :  { %3657 = vmatmul.mubr.bf16.gmra.mrb[16].mxu0 %v3818_v23  ;;  %3729 = vmatmul.mubr.bf16.gmra.mrb[16].mxu1 %v3854_v30 }
  0x43   :  { %3660 = vmatprep.mubr.bf16.mxu0 %v3819_v25  ;;  %3732 = vmatprep.mubr.bf16.mxu1 %v3855_v31 }
  0x4a   :  { %3661 = vmatmul.mubr.bf16.gmra.mrb[20].mxu0 %v3820_v28  ;;  %3733 = vmatmul.mubr.bf16.gmra.mrb[20].mxu1 %v3856_v34 }
  0x4b   :  { %3664 = vmatprep.mubr.bf16.mxu0 %v3821_v29  ;;  %3736 = vmatprep.mubr.bf16.mxu1 %v3857_v35 }
  0x52   :  { %3665 = vmatmul.mubr.bf16.gmra.mrb[24].mxu0 %v3822_v32  ;;  %3737 = vmatmul.mubr.bf16.gmra.mrb[24].mxu1 %v3858_v38 }
  0x53   :  { %3668 = vmatprep.mubr.bf16.mxu0 %v3823_v33  ;;  %3740 = vmatprep.mubr.bf16.mxu1 %v3859_v39 }
  0x5a   :  { %3669 = vmatmul.mubr.bf16.gmra.mrb[28].mxu0 %v3824_v36  ;;  %3741 = vmatmul.mubr.bf16.gmra.mrb[28].mxu1 %v3860_v42 }
  0x5b   :  { %3672 = vmatprep.mubr.bf16.mxu0 %v3825_v37  ;;  %3744 = vmatprep.mubr.bf16.mxu1 %v3861_v43 }
  0x62   :  { %3673 = vmatmul.mubr.bf16.gmra.mrb[32].mxu0 %v3826_v40  ;;  %3745 = vmatmul.mubr.bf16.gmra.mrb[32].mxu1 %v3862_v46 }
  0x63   :  { %3676 = vmatprep.mubr.bf16.mxu0 %v3827_v41  ;;  %3748 = vmatprep.mubr.bf16.mxu1 %v3863_v49 }
  0x6a   :  { %3677 = vmatmul.mubr.bf16.gmra.mrb[36].mxu0 %v3828_v44  ;;  %3749 = vmatmul.mubr.bf16.gmra.mrb[36].mxu1 %v3864_v50 }
  0x6b   :  { %3680 = vmatprep.mubr.bf16.mxu0 %v3829_v45  ;;  %3752 = vmatprep.mubr.bf16.mxu1 %v3865_v53 }
  0x72   :  { %3681 = vmatmul.mubr.bf16.gmra.mrb[40].mxu0 %v3830_v47  ;;  %3753 = vmatmul.mubr.bf16.gmra.mrb[40].mxu1 %v3866_v54 }
  0x73   :  { %3684 = vmatprep.mubr.bf16.mxu0 %v3831_v48  ;;  %3756 = vmatprep.mubr.bf16.mxu1 %v3867_v57 }
  0x7a   :  { %3685 = vmatmul.mubr.bf16.gmra.mrb[44].mxu0 %v3832_v51  ;;  %3757 = vmatmul.mubr.bf16.gmra.mrb[44].mxu1 %v3868_v58 }
  0x7b   :  { %3688 = vmatprep.mubr.bf16.mxu0 %v3833_v52  ;;  %3760 = vmatprep.mubr.bf16.mxu1 %v3869_v61 }
  0x82   :  { %3689 = vmatmul.mubr.bf16.gmra.mrb[48].mxu0 %v3834_v55  ;;  %3761 = vmatmul.mubr.bf16.gmra.mrb[48].mxu1 %v3870_v62 }
  0x83   :  { %3692 = vmatprep.mubr.bf16.mxu0 %v3835_v56  ;;  %3764 = vmatprep.mubr.bf16.mxu1 %v3871_v1 }
  0x8a   :  { %3693 = vmatmul.mubr.bf16.gmra.mrb[52].mxu0 %v3836_v59  ;;  %3765 = vmatmul.mubr.bf16.gmra.mrb[52].mxu1 %v3872_v2 }
  0x8b   :  { %3696 = vmatprep.mubr.bf16.mxu0 %v3837_v60  ;;  %3768 = vmatprep.mubr.bf16.mxu1 %v3873_v5 }
  0x92   :  { %3697 = vmatmul.mubr.bf16.gmra.mrb[56].mxu0 %v3838_v63  ;;  %3769 = vmatmul.mubr.bf16.gmra.mrb[56].mxu1 %v3874_v6 }
  0x93   :  { %3700 = vmatprep.mubr.bf16.mxu0 %v3839_v0  ;;  %3772 = vmatprep.mubr.bf16.mxu1 %v3875_v9 }
  0x9a   :  { %3701 = vmatmul.mubr.bf16.gmra.mrb[60].mxu0 %v3840_v3  ;;  %3773 = vmatmul.mubr.bf16.gmra.mrb[60].mxu1 %v3876_v10 }
  0x9b   :  { %3704 = vmatprep.mubr.bf16.mxu0 %v3841_v4  ;;  %3776 = vmatprep.mubr.bf16.mxu1 %v3877_v12 }
  0xa2   :  { %3705 = vmatmul.mubr.bf16.gmra.mrb[64].mxu0 %v3842_v7  ;;  %3777 = vmatmul.mubr.bf16.gmra.mrb[64].mxu1 %v3878_v13 }
  0xa3   :  { %3708 = vmatprep.mubr.bf16.mxu0 %v3843_v8  ;;  %3780 = vmatprep.mubr.bf16.mxu1 %v3879_v14 }
  0xaa   :  { %3709 = vmatmul.mubr.bf16.gmra.mrb[68].mxu0 %v3844_v11  ;;  %3781 = vmatmul.mubr.bf16.gmra.mrb[68].mxu1 %v3880_v15 }
  0xf5   :  { %v4149_v16 = vpop.f32.mrb[0].mxu0  ;;  %v4171_v29 = vpop.f32.mrb[0].mxu1 }
  0xf6   :  { %7935 = vst [vmem:[#allocation2_spill] sm:$0xff] %v4149_v16  ;;  %v4151_v17 = vpop.f32.mrb[1].mxu0  ;;  %7943 = vst [vmem:[#allocation10_spill] sm:$0xff] %v4171_v29  ;;  %v4174_v31 = vpop.f32.mrb[1].mxu1 }
  0xf7   :  { %7936 = vst [vmem:[#allocation3_spill] sm:$0xff] %v4151_v17  ;;  %v4153_v18 = vpop.f32.mrb[2].mxu0  ;;  %7944 = vst [vmem:[#allocation11_spill] sm:$0xff] %v4174_v31  ;;  %v4176_v32 = vpop.f32.mrb[2].mxu1 }
  0xf8   :  { %7937 = vst [vmem:[#allocation4_spill] sm:$0xff] %v4153_v18  ;;  %v4155_v19 = vpop.f32.mrb[3].mxu0  ;;  %7945 = vst [vmem:[#allocation12_spill] sm:$0xff] %v4176_v32  ;;  %v4181_v35 = vpop.f32.mrb[3].mxu1 }
  0xf9   :  { %7938 = vst [vmem:[#allocation5_spill] sm:$0xff] %v4155_v19  ;;  %v1844_v20 = vadd.f32 %v4155_v19, %v4151_v17  ;;  %7947 = vst [vmem:[#allocation14_spill] sm:$0xff] %v4181_v35 }
  0xfb   :  { %v1845_v21 = vadd.f32 %v4149_v16, %v1844_v20 }
  0xfd   :  { %v1846_v22 = vadd.f32 %v4153_v18, %v1845_v21  ;;  %v4161_v23 = vpop.f32.mrb[4].mxu0  ;;  %v4191_v41 = vpop.f32.mrb[4].mxu1 }
  0xfe   :  { %7939 = vst [vmem:[#allocation6_spill] sm:$0xff] %v4161_v23  ;;  %v4163_v24 = vpop.f32.mrb[5].mxu0  ;;  %v4194_v43 = vpop.f32.mrb[5].mxu1 }
  0xff   :  { %7940 = vst [vmem:[#allocation7_spill] sm:$0xff] %v4163_v24  ;;  %v1847_v25 = vadd.f32 %v1846_v22, %v4163_v24  ;;  %v4166_v26 = vpop.f32.mrb[6].mxu0  ;;  %v4196_v44 = vpop.f32.mrb[6].mxu1 }
 0x100   :  { %7941 = vst [vmem:[#allocation8_spill] sm:$0xff] %v4166_v26  ;;  %v4168_v27 = vpop.f32.mrb[7].mxu0  ;;  %v4201_v47 = vpop.f32.mrb[7].mxu1 }
 0x101   :  { %7942 = vst [vmem:[#allocation9_spill] sm:$0xff] %v4168_v27  ;;  %v1848_v28 = vadd.f32 %v1847_v25, %v4168_v27 }
 0x103   :  { %v1849_v30 = vadd.f32 %v4161_v23, %v1848_v28 }
 0x105   :  { %v1850_v33 = vadd.f32 %v4166_v26, %v1849_v30  ;;  %v4179_v34 = vpop.f32.mrb[8].mxu0  ;;  %v4211_v53 = vpop.f32.mrb[8].mxu1 }
 0x106   :  { %7946 = vst [vmem:[#allocation13_spill] sm:$0xff] %v4179_v34  ;;  %v4183_v36 = vpop.f32.mrb[9].mxu0  ;;  %v4214_v55 = vpop.f32.mrb[9].mxu1 }
 0x107   :  { %7948 = vst [vmem:[#allocation15_spill] sm:$0xff] %v4183_v36  ;;  %v1851_v37 = vadd.f32 %v1850_v33, %v4183_v36  ;;  %v4186_v38 = vpop.f32.mrb[10].mxu0  ;;  %v4216_v56 = vpop.f32.mrb[10].mxu1 }
 0x108   :  { %7949 = vst [vmem:[#allocation16_spill] sm:$0xff] %v4186_v38  ;;  %v4188_v39 = vpop.f32.mrb[11].mxu0  ;;  %v4221_v59 = vpop.f32.mrb[11].mxu1 }
 0x109   :  { %7950 = vst [vmem:[#allocation17_spill] sm:$0xff] %v4188_v39  ;;  %v1852_v40 = vadd.f32 %v1851_v37, %v4188_v39 }
 0x10b   :  { %v1853_v42 = vadd.f32 %v4179_v34, %v1852_v40 }
 0x10d   :  { %v1854_v45 = vadd.f32 %v4186_v38, %v1853_v42  ;;  %v4199_v46 = vpop.f32.mrb[12].mxu0  ;;  %v4231_v1 = vpop.f32.mrb[12].mxu1 }
 0x10e   :  { %7951 = vst [vmem:[#allocation18_spill] sm:$0xff] %v4199_v46  ;;  %v4203_v48 = vpop.f32.mrb[13].mxu0  ;;  %v4234_v3 = vpop.f32.mrb[13].mxu1 }
 0x10f   :  { %7952 = vst [vmem:[#allocation19_spill] sm:$0xff] %v4203_v48  ;;  %v1855_v49 = vadd.f32 %v1854_v45, %v4203_v48  ;;  %v4206_v50 = vpop.f32.mrb[14].mxu0  ;;  %v4236_v4 = vpop.f32.mrb[14].mxu1 }
 0x110   :  { %7953 = vst [vmem:[#allocation20_spill] sm:$0xff] %v4206_v50  ;;  %v4208_v51 = vpop.f32.mrb[15].mxu0  ;;  %v4241_v7 = vpop.f32.mrb[15].mxu1 }
 0x111   :  { %7954 = vst [vmem:[#allocation21_spill] sm:$0xff] %v4208_v51  ;;  %v1856_v52 = vadd.f32 %v1855_v49, %v4208_v51 }
 0x113   :  { %v1857_v54 = vadd.f32 %v4199_v46, %v1856_v52 }
 0x115   :  { %v4218_v57 = vpop.f32.mrb[16].mxu0  ;;  %v1858_v58 = vadd.f32 %v4206_v50, %v1857_v54  ;;  %v4251_v13 = vpop.f32.mrb[16].mxu1 }
 0x116   :  { %7955 = vst [vmem:[#allocation22_spill] sm:$0xff] %v4218_v57  ;;  %v4223_v60 = vpop.f32.mrb[17].mxu0  ;;  %v4254_v15 = vpop.f32.mrb[17].mxu1 }
 0x117   :  { %7956 = vst [vmem:[#allocation23_spill] sm:$0xff] %v4223_v60  ;;  %v1859_v61 = vadd.f32 %v1858_v58, %v4223_v60  ;;  %v4226_v62 = vpop.f32.mrb[18].mxu0  ;;  %v4256_v20 = vpop.f32.mrb[18].mxu1 }
 0x118   :  { %7957 = vst [vmem:[#allocation24_spill] sm:$0xff] %v4226_v62  ;;  %v4228_v63 = vpop.f32.mrb[19].mxu0  ;;  %v4261_v25 = vpop.f32.mrb[19].mxu1 }
 0x119   :  { %7958 = vst [vmem:[#allocation25_spill] sm:$0xff] %v4228_v63  ;;  %v1860_v0 = vadd.f32 %v1859_v61, %v4228_v63 }
 0x11b   :  { %v1861_v2 = vadd.f32 %v4218_v57, %v1860_v0 }
 0x11d   :  { %v4238_v5 = vpop.f32.mrb[20].mxu0  ;;  %v1862_v6 = vadd.f32 %v4226_v62, %v1861_v2  ;;  %v4271_v42 = vpop.f32.mrb[20].mxu1 }
 0x11e   :  { %7959 = vst [vmem:[#allocation26_spill] sm:$0xff] %v4238_v5  ;;  %v4243_v8 = vpop.f32.mrb[21].mxu0  ;;  %v4274_v49 = vpop.f32.mrb[21].mxu1 }
 0x11f   :  { %7960 = vst [vmem:[#allocation27_spill] sm:$0xff] %v4243_v8  ;;  %v1863_v9 = vadd.f32 %v1862_v6, %v4243_v8  ;;  %v4246_v10 = vpop.f32.mrb[22].mxu0  ;;  %v4276_v52 = vpop.f32.mrb[22].mxu1 }
 0x120   :  { %7961 = vst [vmem:[#allocation28_spill] sm:$0xff] %v4246_v10  ;;  %v4248_v11 = vpop.f32.mrb[23].mxu0  ;;  %v4281_v61 = vpop.f32.mrb[23].mxu1 }
 0x121   :  { %7962 = vst [vmem:[#allocation29_spill] sm:$0xff] %v4248_v11  ;;  %v1864_v12 = vadd.f32 %v1863_v9, %v4248_v11 }
 0x123   :  { %v1865_v14 = vadd.f32 %v4238_v5, %v1864_v12 }
 0x125   :  { %v4258_v21 = vpop.f32.mrb[24].mxu0  ;;  %v1866_v22 = vadd.f32 %v4246_v10, %v1865_v14  ;;  %v4291_v14 = vpop.f32.mrb[24].mxu1 }
 0x126   :  { %7963 = vst [vmem:[#allocation30_spill] sm:$0xff] %v4258_v21  ;;  %v4263_v28 = vpop.f32.mrb[25].mxu0 }
 0x127   :  { %7964 = vst [vmem:[#allocation31_spill] sm:$0xff] %v4263_v28  ;;  %v1867_v30 = vadd.f32 %v1866_v22, %v4263_v28  ;;  %v4266_v33 = vpop.f32.mrb[26].mxu0 }
 0x128   :  { %7965 = vst [vmem:[#allocation32_spill] sm:$0xff] %v4266_v33  ;;  %v4268_v37 = vpop.f32.mrb[27].mxu0 }
 0x129   :  { %7966 = vst [vmem:[#allocation33_spill] sm:$0xff] %v4268_v37  ;;  %v1868_v40 = vadd.f32 %v1867_v30, %v4268_v37  ;;  %v4294_v30 = vpop.f32.mrb[25].mxu1 }
 0x12b   :  { %v1869_v45 = vadd.f32 %v4258_v21, %v1868_v40  ;;  %v4296_v40 = vpop.f32.mrb[26].mxu1 }
 0x12c   :  { %v4301_v21 = vpop.f32.mrb[27].mxu1 }
 0x12d   :  { %v4278_v54 = vpop.f32.mrb[28].mxu0  ;;  %v1870_v58 = vadd.f32 %v4266_v33, %v1869_v45 }
 0x12e   :  { %7967 = vst [vmem:[#allocation34_spill] sm:$0xff] %v4278_v54  ;;  %v4283_v0 = vpop.f32.mrb[29].mxu0 }
 0x12f   :  { %7968 = vst [vmem:[#allocation35_spill] sm:$0xff] %v4283_v0  ;;  %v1871_v2 = vadd.f32 %v1870_v58, %v4283_v0  ;;  %v4286_v6 = vpop.f32.mrb[30].mxu0 }
 0x130   :  { %7969 = vst [vmem:[#allocation36_spill] sm:$0xff] %v4286_v6  ;;  %v4288_v9 = vpop.f32.mrb[31].mxu0 }
 0x131   :  { %7970 = vst [vmem:[#allocation37_spill] sm:$0xff] %v4288_v9  ;;  %v1872_v12 = vadd.f32 %v1871_v2, %v4288_v9 }
 0x133   :  { %v1873_v22 = vadd.f32 %v4278_v54, %v1872_v12  ;;  %v4311_v54 = vpop.f32.mrb[28].mxu1 }
 0x134   :  { %v4314_v28 = vpop.f32.mrb[29].mxu1 }
 0x135   :  { %v4298_v45 = vpop.f32.mrb[32].mxu0  ;;  %v1874_v33 = vadd.f32 %v4286_v6, %v1873_v22  ;;  %v4316_v10 = vpop.f32.mrb[30].mxu1 }
 0x136   :  { %7971 = vst [vmem:[#allocation38_spill] sm:$0xff] %v4298_v45  ;;  %v4303_v58 = vpop.f32.mrb[33].mxu0  ;;  %v4321_v5 = vpop.f32.mrb[31].mxu1 }
 0x137   :  { %7972 = vst [vmem:[#allocation39_spill] sm:$0xff] %v4303_v58  ;;  %v1875_v0 = vadd.f32 %v1874_v33, %v4303_v58  ;;  %v4306_v37 = vpop.f32.mrb[34].mxu0 }
 0x138   :  { %7973 = vst [vmem:[#allocation40_spill] sm:$0xff] %v4306_v37  ;;  %v4308_v2 = vpop.f32.mrb[35].mxu0 }
 0x139   :  { %7974 = vst [vmem:[#allocation41_spill] sm:$0xff] %v4308_v2  ;;  %v1876_v12 = vadd.f32 %v1875_v0, %v4308_v2 }
 0x13b   :  { %v1877_v9 = vadd.f32 %v4298_v45, %v1876_v12  ;;  %v4331_v45 = vpop.f32.mrb[32].mxu1 }
 0x13c   :  { %7979 = vst [vmem:[#allocation46_spill] sm:$0xff] %v4331_v45  ;;  %v4334_v8 = vpop.f32.mrb[33].mxu1 }
 0x13d   :  { %v4318_v22 = vpop.f32.mrb[36].mxu0  ;;  %v1878_v6 = vadd.f32 %v4306_v37, %v1877_v9  ;;  %v4336_v62 = vpop.f32.mrb[34].mxu1 }
 0x13e   :  { %7975 = vst [vmem:[#allocation42_spill] sm:$0xff] %v4318_v22  ;;  %v4323_v33 = vpop.f32.mrb[37].mxu0  ;;  %7980 = vst [vmem:[#allocation47_spill] sm:$0xff] %v4336_v62  ;;  %v4341_v57 = vpop.f32.mrb[35].mxu1 }
 0x13f   :  { %7976 = vst [vmem:[#allocation43_spill] sm:$0xff] %v4323_v33  ;;  %v1879_v58 = vadd.f32 %v1878_v6, %v4323_v33  ;;  %v4326_v11 = vpop.f32.mrb[38].mxu0 }
 0x140   :  { %7977 = vst [vmem:[#allocation44_spill] sm:$0xff] %v4326_v11  ;;  %v4328_v0 = vpop.f32.mrb[39].mxu0 }
 0x141   :  { %7978 = vst [vmem:[#allocation45_spill] sm:$0xff] %v4328_v0  ;;  %v1880_v12 = vadd.f32 %v1879_v58, %v4328_v0 }
 0x143   :  { %v1881_v2 = vadd.f32 %v4318_v22, %v1880_v12  ;;  %v4351_v22 = vpop.f32.mrb[36].mxu1 }
 0x144   :  { %7985 = vst [vmem:[#allocation52_spill] sm:$0xff] %v4351_v22  ;;  %v4354_v60 = vpop.f32.mrb[37].mxu1 }
 0x145   :  { %v4338_v9 = vpop.f32.mrb[40].mxu0  ;;  %v1882_v37 = vadd.f32 %v4326_v11, %v1881_v2  ;;  %7986 = vst [vmem:[#allocation53_spill] sm:$0xff] %v4354_v60  ;;  %v4356_v50 = vpop.f32.mrb[38].mxu1 }
 0x146   :  { %7981 = vst [vmem:[#allocation48_spill] sm:$0xff] %v4338_v9  ;;  %v4343_v6 = vpop.f32.mrb[41].mxu0  ;;  %7987 = vst [vmem:[#allocation54_spill] sm:$0xff] %v4356_v50  ;;  %v4361_v46 = vpop.f32.mrb[39].mxu1 }
 0x147   :  { %7982 = vst [vmem:[#allocation49_spill] sm:$0xff] %v4343_v6  ;;  %v1883_v33 = vadd.f32 %v1882_v37, %v4343_v6  ;;  %v4346_v63 = vpop.f32.mrb[42].mxu0  ;;  %7989 = vst [vmem:[#allocation56_spill] sm:$0xff] %v4361_v46 }
 0x148   :  { %7983 = vst [vmem:[#allocation50_spill] sm:$0xff] %v4346_v63  ;;  %v4348_v58 = vpop.f32.mrb[43].mxu0 }
 0x149   :  { %7984 = vst [vmem:[#allocation51_spill] sm:$0xff] %v4348_v58  ;;  %v1884_v12 = vadd.f32 %v1883_v33, %v4348_v58 }
 0x14b   :  { %v1885_v0 = vadd.f32 %v4338_v9, %v1884_v12  ;;  %v4371_v9 = vpop.f32.mrb[40].mxu1 }
 0x14c   :  { %7993 = vst [vmem:[#allocation60_spill] sm:$0xff] %v4371_v9  ;;  %v4374_v48 = vpop.f32.mrb[41].mxu1 }
 0x14d   :  { %v4358_v2 = vpop.f32.mrb[44].mxu0  ;;  %v1886_v11 = vadd.f32 %v4346_v63, %v1885_v0  ;;  %7994 = vst [vmem:[#allocation61_spill] sm:$0xff] %v4374_v48  ;;  %v4376_v38 = vpop.f32.mrb[42].mxu1 }
 0x14e   :  { %7988 = vst [vmem:[#allocation55_spill] sm:$0xff] %v4358_v2  ;;  %v4363_v37 = vpop.f32.mrb[45].mxu0  ;;  %7995 = vst [vmem:[#allocation62_spill] sm:$0xff] %v4376_v38  ;;  %v4381_v34 = vpop.f32.mrb[43].mxu1 }
 0x14f   :  { %7990 = vst [vmem:[#allocation57_spill] sm:$0xff] %v4363_v37  ;;  %v1887_v6 = vadd.f32 %v1886_v11, %v4363_v37  ;;  %v4366_v51 = vpop.f32.mrb[46].mxu0  ;;  %7997 = vst [vmem:[#allocation64_spill] sm:$0xff] %v4381_v34 }
 0x150   :  { %7991 = vst [vmem:[#allocation58_spill] sm:$0xff] %v4366_v51  ;;  %v4368_v33 = vpop.f32.mrb[47].mxu0 }
 0x151   :  { %7992 = vst [vmem:[#allocation59_spill] sm:$0xff] %v4368_v33  ;;  %v1888_v12 = vadd.f32 %v1887_v6, %v4368_v33 }
 0x153   :  { %v1889_v58 = vadd.f32 %v4358_v2, %v1888_v12  ;;  %v4391_v2 = vpop.f32.mrb[44].mxu1 }
 0x154   :  { %8001 = vst [vmem:[#allocation68_spill] sm:$0xff] %v4391_v2  ;;  %v4394_v36 = vpop.f32.mrb[45].mxu1 }
 0x155   :  { %v4378_v0 = vpop.f32.mrb[48].mxu0  ;;  %v1890_v63 = vadd.f32 %v4366_v51, %v1889_v58  ;;  %8002 = vst [vmem:[#allocation69_spill] sm:$0xff] %v4394_v36  ;;  %v4396_v26 = vpop.f32.mrb[46].mxu1 }
 0x156   :  { %7996 = vst [vmem:[#allocation63_spill] sm:$0xff] %v4378_v0  ;;  %v4383_v11 = vpop.f32.mrb[49].mxu0  ;;  %8003 = vst [vmem:[#allocation70_spill] sm:$0xff] %v4396_v26  ;;  %v4401_v23 = vpop.f32.mrb[47].mxu1 }
 0x157   :  { %7998 = vst [vmem:[#allocation65_spill] sm:$0xff] %v4383_v11  ;;  %v1891_v37 = vadd.f32 %v1890_v63, %v4383_v11  ;;  %v4386_v39 = vpop.f32.mrb[50].mxu0  ;;  %8005 = vst [vmem:[#allocation72_spill] sm:$0xff] %v4401_v23 }
 0x158   :  { %7999 = vst [vmem:[#allocation66_spill] sm:$0xff] %v4386_v39  ;;  %v4388_v6 = vpop.f32.mrb[51].mxu0 }
 0x159   :  { %8000 = vst [vmem:[#allocation67_spill] sm:$0xff] %v4388_v6  ;;  %v1892_v12 = vadd.f32 %v1891_v37, %v4388_v6 }
 0x15b   :  { %v1893_v33 = vadd.f32 %v4378_v0, %v1892_v12  ;;  %v4411_v0 = vpop.f32.mrb[48].mxu1 }
 0x15c   :  { %8009 = vst [vmem:[#allocation76_spill] sm:$0xff] %v4411_v0  ;;  %v4414_v24 = vpop.f32.mrb[49].mxu1 }
 0x15d   :  { %v4398_v58 = vpop.f32.mrb[52].mxu0  ;;  %v1894_v51 = vadd.f32 %v4386_v39, %v1893_v33  ;;  %8010 = vst [vmem:[#allocation77_spill] sm:$0xff] %v4414_v24  ;;  %v4416_v18 = vpop.f32.mrb[50].mxu1 }
 0x15e   :  { %8004 = vst [vmem:[#allocation71_spill] sm:$0xff] %v4398_v58  ;;  %v4403_v63 = vpop.f32.mrb[53].mxu0  ;;  %8011 = vst [vmem:[#allocation78_spill] sm:$0xff] %v4416_v18  ;;  %v4421_v16 = vpop.f32.mrb[51].mxu1 }
 0x15f   :  { %8006 = vst [vmem:[#allocation73_spill] sm:$0xff] %v4403_v63  ;;  %v1895_v11 = vadd.f32 %v1894_v51, %v4403_v63  ;;  %v4406_v27 = vpop.f32.mrb[54].mxu0  ;;  %8013 = vst [vmem:[#allocation80_spill] sm:$0xff] %v4421_v16 }
 0x160   :  { %8007 = vst [vmem:[#allocation74_spill] sm:$0xff] %v4406_v27  ;;  %v4408_v37 = vpop.f32.mrb[55].mxu0 }
 0x161   :  { %8008 = vst [vmem:[#allocation75_spill] sm:$0xff] %v4408_v37  ;;  %v1896_v12 = vadd.f32 %v1895_v11, %v4408_v37 }
 0x163   :  { %v1897_v6 = vadd.f32 %v4398_v58, %v1896_v12  ;;  %v4431_v58 = vpop.f32.mrb[52].mxu1 }
 0x164   :  { %8017 = vst [vmem:[#allocation84_spill] sm:$0xff] %v4431_v58  ;;  %v4434_v17 = vpop.f32.mrb[53].mxu1 }
 0x165   :  { %v4418_v33 = vpop.f32.mrb[56].mxu0  ;;  %v1898_v39 = vadd.f32 %v4406_v27, %v1897_v6  ;;  %8018 = vst [vmem:[#allocation85_spill] sm:$0xff] %v4434_v17  ;;  %v4436_v18 = vpop.f32.mrb[54].mxu1 }
 0x166   :  { %8012 = vst [vmem:[#allocation79_spill] sm:$0xff] %v4418_v33  ;;  %v4423_v51 = vpop.f32.mrb[57].mxu0  ;;  %8019 = vst [vmem:[#allocation86_spill] sm:$0xff] %v4436_v18  ;;  %v4441_v0 = vpop.f32.mrb[55].mxu1 }
 0x167   :  { %8014 = vst [vmem:[#allocation81_spill] sm:$0xff] %v4423_v51  ;;  %v1899_v63 = vadd.f32 %v1898_v39, %v4423_v51  ;;  %v4426_v19 = vpop.f32.mrb[58].mxu0  ;;  %8021 = vst [vmem:[#allocation88_spill] sm:$0xff] %v4441_v0 }
 0x168   :  { %8015 = vst [vmem:[#allocation82_spill] sm:$0xff] %v4426_v19  ;;  %v4428_v11 = vpop.f32.mrb[59].mxu0 }
 0x169   :  { %8016 = vst [vmem:[#allocation83_spill] sm:$0xff] %v4428_v11  ;;  %v1900_v12 = vadd.f32 %v1899_v63, %v4428_v11 }
 0x16b   :  { %v1901_v37 = vadd.f32 %v4418_v33, %v1900_v12  ;;  %v4451_v33 = vpop.f32.mrb[56].mxu1 }
 0x16c   :  { %8025 = vst [vmem:[#allocation92_spill] sm:$0xff] %v4451_v33  ;;  %v4454_v18 = vpop.f32.mrb[57].mxu1 }
 0x16d   :  { %v4438_v6 = vpop.f32.mrb[60].mxu0  ;;  %v1902_v27 = vadd.f32 %v4426_v19, %v1901_v37  ;;  %8026 = vst [vmem:[#allocation93_spill] sm:$0xff] %v4454_v18  ;;  %v4456_v58 = vpop.f32.mrb[58].mxu1 }
 0x16e   :  { %8020 = vst [vmem:[#allocation87_spill] sm:$0xff] %v4438_v6  ;;  %v4443_v39 = vpop.f32.mrb[61].mxu0  ;;  %8027 = vst [vmem:[#allocation94_spill] sm:$0xff] %v4456_v58  ;;  %v4461_v0 = vpop.f32.mrb[59].mxu1 }
 0x16f   :  { %8022 = vst [vmem:[#allocation89_spill] sm:$0xff] %v4443_v39  ;;  %v1903_v51 = vadd.f32 %v1902_v27, %v4443_v39  ;;  %v4446_v16 = vpop.f32.mrb[62].mxu0  ;;  %8029 = vst [vmem:[#allocation96_spill] sm:$0xff] %v4461_v0 }
 0x170   :  { %8023 = vst [vmem:[#allocation90_spill] sm:$0xff] %v4446_v16  ;;  %v4448_v63 = vpop.f32.mrb[63].mxu0 }
 0x171   :  { %8024 = vst [vmem:[#allocation91_spill] sm:$0xff] %v4448_v63  ;;  %v1904_v12 = vadd.f32 %v1903_v51, %v4448_v63 }
 0x173   :  { %v1905_v11 = vadd.f32 %v4438_v6, %v1904_v12  ;;  %v4471_v6 = vpop.f32.mrb[60].mxu1 }
 0x174   :  { %8033 = vst [vmem:[#allocation100_spill] sm:$0xff] %v4471_v6  ;;  %v4474_v58 = vpop.f32.mrb[61].mxu1 }
 0x175   :  { %v4458_v37 = vpop.f32.mrb[64].mxu0  ;;  %v1906_v19 = vadd.f32 %v4446_v16, %v1905_v11  ;;  %8034 = vst [vmem:[#allocation101_spill] sm:$0xff] %v4474_v58  ;;  %v4476_v33 = vpop.f32.mrb[62].mxu1 }
 0x176   :  { %8028 = vst [vmem:[#allocation95_spill] sm:$0xff] %v4458_v37  ;;  %v4463_v27 = vpop.f32.mrb[65].mxu0  ;;  %8035 = vst [vmem:[#allocation102_spill] sm:$0xff] %v4476_v33  ;;  %v4481_v0 = vpop.f32.mrb[63].mxu1 }
 0x177   :  { %8030 = vst [vmem:[#allocation97_spill] sm:$0xff] %v4463_v27  ;;  %v1907_v39 = vadd.f32 %v1906_v19, %v4463_v27  ;;  %v4466_v17 = vpop.f32.mrb[66].mxu0  ;;  %8037 = vst [vmem:[#allocation104_spill] sm:$0xff] %v4481_v0 }
 0x178   :  { %8031 = vst [vmem:[#allocation98_spill] sm:$0xff] %v4466_v17  ;;  %v4468_v51 = vpop.f32.mrb[67].mxu0 }
 0x179   :  { %8032 = vst [vmem:[#allocation99_spill] sm:$0xff] %v4468_v51  ;;  %v1908_v12 = vadd.f32 %v1907_v39, %v4468_v51 }
 0x17b   :  { %v1909_v63 = vadd.f32 %v4458_v37, %v1908_v12  ;;  %v4491_v37 = vpop.f32.mrb[64].mxu1 }
 0x17c   :  { %8041 = vst [vmem:[#allocation108_spill] sm:$0xff] %v4491_v37  ;;  %v4494_v33 = vpop.f32.mrb[65].mxu1 }
 0x17d   :  { %v4478_v11 = vpop.f32.mrb[68].mxu0  ;;  %v1910_v16 = vadd.f32 %v4466_v17, %v1909_v63  ;;  %8042 = vst [vmem:[#allocation109_spill] sm:$0xff] %v4494_v33  ;;  %v4496_v6 = vpop.f32.mrb[66].mxu1 }
 0x17e   :  { %8036 = vst [vmem:[#allocation103_spill] sm:$0xff] %v4478_v11  ;;  %v4483_v19 = vpop.f32.mrb[69].mxu0  ;;  %8043 = vst [vmem:[#allocation110_spill] sm:$0xff] %v4496_v6  ;;  %v4499_v17 = vpop.f32.mrb[67].mxu1 }
 0x17f   :  { %8038 = vst [vmem:[#allocation105_spill] sm:$0xff] %v4483_v19  ;;  %v1911_v27 = vadd.f32 %v1910_v16, %v4483_v19  ;;  %v4486_v18 = vpop.f32.mrb[70].mxu0  ;;  %8044 = vst [vmem:[#allocation111_spill] sm:$0xff] %v4499_v17  ;;  %v4503_v0 = vpop.f32.mrb[68].mxu1 }
 0x180   :  { %8039 = vst [vmem:[#allocation106_spill] sm:$0xff] %v4486_v18  ;;  %v4488_v39 = vpop.f32.mrb[71].mxu0  ;;  %8045 = vst [vmem:[#allocation112_spill] sm:$0xff] %v4503_v0 }
 0x181   :  { %8040 = vst [vmem:[#allocation107_spill] sm:$0xff] %v4488_v39  ;;  %v1912_v12 = vadd.f32 %v1911_v27, %v4488_v39  ;;  %v4506_v39 = vpop.f32.mrb[69].mxu1 }
 0x182   :  { %8046 = vst [vmem:[#allocation113_spill] sm:$0xff] %v4506_v39  ;;  %v4508_v37 = vpop.f32.mrb[70].mxu1 }
 0x183   :  { %v1913_v51 = vadd.f32 %v4478_v11, %v1912_v12  ;;  %8047 = vst [vmem:[#allocation114_spill] sm:$0xff] %v4508_v37  ;;  %v4511_v11 = vpop.f32.mrb[71].mxu1 }
 0x184   :  { %8048 = vst [vmem:[#allocation115_spill] sm:$0xff] %v4511_v11 }
 0x185   :  { %v1914_v63 = vadd.f32 %v4486_v18, %v1913_v51 }
 0x187   :  { %v1915_v16 = vadd.f32 %v1914_v63, %v4174_v31 }
 0x189   :  { %v1916_v19 = vadd.f32 %v1915_v16, %v4181_v35 }
 0x18b   :  { %v1917_v27 = vadd.f32 %v4171_v29, %v1916_v19 }
 0x18d   :  { %v1918_v12 = vadd.f32 %v4176_v32, %v1917_v27 }
 0x18f   :  { %v1919_v51 = vadd.f32 %v1918_v12, %v4194_v43 }
 0x191   :  { %v1920_v18 = vadd.f32 %v1919_v51, %v4201_v47 }
 0x193   :  { %v1921_v63 = vadd.f32 %v4191_v41, %v1920_v18 }
 0x195   :  { %v1922_v16 = vadd.f32 %v4196_v44, %v1921_v63 }
 0x197   :  { %v1923_v35 = vadd.f32 %v1922_v16, %v4214_v55 }
 0x199   :  { %v1924_v19 = vadd.f32 %v1923_v35, %v4221_v59 }
 0x19b   :  { %v1925_v29 = vadd.f32 %v4211_v53, %v1924_v19 }
 0x19d   :  { %v1926_v31 = vadd.f32 %v4216_v56, %v1925_v29 }
 0x19f   :  { %v1927_v27 = vadd.f32 %v1926_v31, %v4234_v3 }
 0x1a1   :  { %v1928_v32 = vadd.f32 %v1927_v27, %v4241_v7 }
 0x1a3   :  { %v1929_v12 = vadd.f32 %v4231_v1, %v1928_v32 }
 0x1a5   :  { %v1930_v51 = vadd.f32 %v4236_v4, %v1929_v12 }
 0x1a7   :  { %v1931_v18 = vadd.f32 %v1930_v51, %v4254_v15 }
 0x1a9   :  { %v1932_v63 = vadd.f32 %v1931_v18, %v4261_v25 }
 0x1ab   :  { %v1933_v16 = vadd.f32 %v4251_v13, %v1932_v63 }
 0x1ad   :  { %v1934_v35 = vadd.f32 %v4256_v20, %v1933_v16 }
 0x1af   :  { %v1935_v19 = vadd.f32 %v1934_v35, %v4274_v49 }
 0x1b1   :  { %v1936_v29 = vadd.f32 %v1935_v19, %v4281_v61 }
 0x1b3   :  { %v1937_v31 = vadd.f32 %v4271_v42, %v1936_v29 }
 0x1b5   :  { %v1938_v27 = vadd.f32 %v4276_v52, %v1937_v31 }
 0x1b7   :  { %v1939_v32 = vadd.f32 %v1938_v27, %v4294_v30 }
 0x1b9   :  { %v1940_v12 = vadd.f32 %v1939_v32, %v4301_v21 }
 0x1bb   :  { %v1941_v51 = vadd.f32 %v4291_v14, %v1940_v12 }
 0x1bd   :  { %v1942_v18 = vadd.f32 %v4296_v40, %v1941_v51 }
 0x1bf   :  { %v1943_v63 = vadd.f32 %v1942_v18, %v4314_v28 }
 0x1c1   :  { %v1944_v16 = vadd.f32 %v1943_v63, %v4321_v5 }
 0x1c3   :  { %v1945_v35 = vadd.f32 %v4311_v54, %v1944_v16 }
 0x1c5   :  { %v1946_v19 = vadd.f32 %v4316_v10, %v1945_v35 }
 0x1c7   :  { %v1947_v29 = vadd.f32 %v1946_v19, %v4334_v8 }
 0x1c9   :  { %v1948_v31 = vadd.f32 %v1947_v29, %v4341_v57 }
 0x1cb   :  { %v1949_v27 = vadd.f32 %v4331_v45, %v1948_v31 }
 0x1cd   :  { %v1950_v32 = vadd.f32 %v4336_v62, %v1949_v27 }
 0x1cf   :  { %v1951_v12 = vadd.f32 %v1950_v32, %v4354_v60 }
 0x1d1   :  { %v1952_v51 = vadd.f32 %v1951_v12, %v4361_v46 }
 0x1d3   :  { %v1953_v18 = vadd.f32 %v4351_v22, %v1952_v51  ;;  %v8049_v22 = vld [vmem:[#allocation80_spill] sm:$0xff] }
 0x1d5   :  { %v1954_v63 = vadd.f32 %v4356_v50, %v1953_v18  ;;  %v8050_v50 = vld [vmem:[#allocation76_spill] sm:$0xff] }
 0x1d7   :  { %v1955_v16 = vadd.f32 %v1954_v63, %v4374_v48  ;;  %v8051_v48 = vld [vmem:[#allocation78_spill] sm:$0xff] }
 0x1d9   :  { %v1956_v35 = vadd.f32 %v1955_v16, %v4381_v34  ;;  %v8052_v34 = vld [vmem:[#allocation85_spill] sm:$0xff] }
 0x1db   :  { %v1957_v19 = vadd.f32 %v4371_v9, %v1956_v35  ;;  %v8053_v9 = vld [vmem:[#allocation88_spill] sm:$0xff] }
 0x1dd   :  { %v1958_v29 = vadd.f32 %v4376_v38, %v1957_v19  ;;  %v8054_v38 = vld [vmem:[#allocation84_spill] sm:$0xff] }
 0x1df   :  { %v1959_v31 = vadd.f32 %v1958_v29, %v4394_v36  ;;  %v8055_v36 = vld [vmem:[#allocation86_spill] sm:$0xff] }
 0x1e1   :  { %v1960_v27 = vadd.f32 %v1959_v31, %v4401_v23  ;;  %v8056_v23 = vld [vmem:[#allocation93_spill] sm:$0xff] }
 0x1e3   :  { %v1961_v32 = vadd.f32 %v4391_v2, %v1960_v27  ;;  %v8057_v2 = vld [vmem:[#allocation96_spill] sm:$0xff] }
 0x1e5   :  { %v1962_v12 = vadd.f32 %v4396_v26, %v1961_v32  ;;  %v8058_v26 = vld [vmem:[#allocation92_spill] sm:$0xff] }
 0x1e7   :  { %v1963_v51 = vadd.f32 %v1962_v12, %v4414_v24  ;;  %v8059_v24 = vld [vmem:[#allocation94_spill] sm:$0xff] }
 0x1e9   :  { %v1964_v18 = vadd.f32 %v1963_v51, %v8049_v22 }
 0x1eb   :  { %v1965_v63 = vadd.f32 %v8050_v50, %v1964_v18  ;;  %v8060_v50 = vld [vmem:[#allocation104_spill] sm:$0xff] }
 0x1ed   :  { %v1966_v16 = vadd.f32 %v8051_v48, %v1965_v63  ;;  %v8061_v48 = vld [vmem:[#allocation100_spill] sm:$0xff] }
 0x1ef   :  { %v1967_v35 = vadd.f32 %v1966_v16, %v8052_v34  ;;  %v8062_v34 = vld [vmem:[#allocation102_spill] sm:$0xff] }
 0x1f1   :  { %v1968_v19 = vadd.f32 %v1967_v35, %v8053_v9 }
 0x1f3   :  { %v1969_v29 = vadd.f32 %v8054_v38, %v1968_v19 }
 0x1f5   :  { %v1970_v31 = vadd.f32 %v8055_v36, %v1969_v29  ;;  %v8063_v36 = vld [vmem:[#allocation108_spill] sm:$0xff] }
 0x1f7   :  { %v1971_v27 = vadd.f32 %v1970_v31, %v8056_v23 }
 0x1f9   :  { %v1972_v32 = vadd.f32 %v1971_v27, %v8057_v2 }
 0x1fb   :  { %v1973_v12 = vadd.f32 %v8058_v26, %v1972_v32 }
 0x1fd   :  { %v1974_v51 = vadd.f32 %v8059_v24, %v1973_v12 }
 0x1ff   :  { %v1975_v18 = vadd.f32 %v1974_v51, %v4474_v58 }
 0x201   :  { %v1976_v63 = vadd.f32 %v1975_v18, %v8060_v50 }
 0x203   :  { %v1977_v16 = vadd.f32 %v8061_v48, %v1976_v63 }
 0x205   :  { %v1978_v35 = vadd.f32 %v8062_v34, %v1977_v16 }
 0x207   :  { %v1979_v19 = vadd.f32 %v1978_v35, %v4494_v33 }
 0x209   :  { %v1980_v29 = vadd.f32 %v1979_v19, %v4499_v17  ;;  %v8064_v19 = vld [vmem:[#allocation3_spill] sm:$0xff] }
 0x20a   :  { %v8072_v17 = vld [vmem:[#allocation15_spill] sm:$0xff] }
 0x20b   :  { %v1981_v31 = vadd.f32 %v8063_v36, %v1980_v29 }
 0x20d   :  { %v1982_v27 = vadd.f32 %v4496_v6, %v1981_v31  ;;  %v8065_v31 = vld [vmem:[#allocation5_spill] sm:$0xff] }
 0x20f   :  { %v1983_v32 = vadd.f32 %v1982_v27, %v4506_v39 }
 0x211   :  { %v1984_v12 = vadd.f32 %v1983_v32, %v4511_v11  ;;  %v8066_v32 = vld [vmem:[#allocation2_spill] sm:$0xff] }
 0x213   :  { %v1985_v51 = vadd.f32 %v4503_v0, %v1984_v12 }
 0x215   :  { %v1986_v18 = vadd.f32 %v4508_v37, %v1985_v51  ;;  %v8067_v51 = vld [vmem:[#allocation4_spill] sm:$0xff] }
 0x217   :  { %v1987_v50 = vrot.slane %v1986_v18, 4 }
 0x219   :  { %v1988_v63 = vadd.f32 %v1987_v50, %v1986_v18 }
 0x21b   :  { %v1989_v48 = vrot.slane %v1988_v63, 2 }
 0x21d   :  { %v1990_v16 = vadd.f32 %v1989_v48, %v1988_v63  ;;  %v8068_v48 = vld [vmem:[#allocation7_spill] sm:$0xff] }
 0x21f   :  { %v1991_v34 = vrot.slane %v1990_v16, 1 }
 0x221   :  { %v1992_v35 = vadd.f32 %v1991_v34, %v1990_v16  ;;  %v8069_v16 = vld [vmem:[#allocation9_spill] sm:$0xff] }
 0x223   :  { %v4581_v33 = vmul.f32 0.0009451796, %v1992_v35 }
 0x225   :  { %v1994_v29 = vsub.f32 %v8064_v19, %v4581_v33  ;;  %v1995_v27 = vsub.f32 %v8065_v31, %v4581_v33  ;;  %v1996_v11 = vsub.f32 %v8066_v32, %v4581_v33  ;;  %v1997_v50 = vsub.f32 %v8067_v51, %v4581_v33  ;;  %v8070_v31 = vld [vmem:[#allocation6_spill] sm:$0xff] }
 0x226   :  { %v1998_v18 = vsub.f32 %v8068_v48, %v4581_v33  ;;  %v1999_v35 = vsub.f32 %v8069_v16, %v4581_v33  ;;  %v2000_v39 = vsub.f32 %v8070_v31, %v4581_v33  ;;  %v2002_v48 = vsub.f32 %v8072_v17, %v4581_v33 }
 0x227   :  { %v2282_v12 = vmul.f32 %v1994_v29, %v1994_v29  ;;  %v2283_v0 = vmul.f32 %v1995_v27, %v1995_v27  ;;  %v2284_v34 = vmul.f32 %v1996_v11, %v1996_v11  ;;  %v2285_v19 = vmul.f32 %v1997_v50, %v1997_v50  ;;  %v8071_v29 = vld [vmem:[#allocation8_spill] sm:$0xff] }
 0x228   :  { %v2286_v6 = vmul.f32 %v1998_v18, %v1998_v18  ;;  %v2001_v27 = vsub.f32 %v8071_v29, %v4581_v33  ;;  %v2287_v36 = vmul.f32 %v1999_v35, %v1999_v35  ;;  %v2288_v11 = vmul.f32 %v2000_v39, %v2000_v39 }
 0x229   :  { %v2426_v63 = vadd.f32 %v2283_v0, %v2282_v12  ;;  %v8073_v12 = vld [vmem:[#allocation17_spill] sm:$0xff]  ;;  %v2290_v18 = vmul.f32 %v2002_v48, %v2002_v48 }
 0x22a   :  { %v2003_v16 = vsub.f32 %v8073_v12, %v4581_v33  ;;  %v2289_v50 = vmul.f32 %v2001_v27, %v2001_v27 }
 0x22b   :  { %v2427_v37 = vadd.f32 %v2426_v63, %v2284_v34  ;;  %v8074_v63 = vld [vmem:[#allocation13_spill] sm:$0xff] }
 0x22c   :  { %v2004_v31 = vsub.f32 %v8074_v63, %v4581_v33  ;;  %v2291_v35 = vmul.f32 %v2003_v16, %v2003_v16 }
 0x22d   :  { %v2428_v32 = vadd.f32 %v2427_v37, %v2285_v19  ;;  %v8075_v19 = vld [vmem:[#allocation16_spill] sm:$0xff] }
 0x22e   :  { %v2005_v29 = vsub.f32 %v8075_v19, %v4581_v33  ;;  %v2292_v39 = vmul.f32 %v2004_v31, %v2004_v31 }
 0x22f   :  { %v2429_v51 = vadd.f32 %v2428_v32, %v2286_v6  ;;  %v8076_v32 = vld [vmem:[#allocation19_spill] sm:$0xff] }
 0x230   :  { %v2006_v17 = vsub.f32 %v8076_v32, %v4581_v33  ;;  %v2293_v27 = vmul.f32 %v2005_v29, %v2005_v29 }
 0x231   :  { %v2430_v0 = vadd.f32 %v2429_v51, %v2287_v36  ;;  %v8077_v51 = vld [vmem:[#allocation21_spill] sm:$0xff] }
 0x232   :  { %v2007_v12 = vsub.f32 %v8077_v51, %v4581_v33  ;;  %v2294_v48 = vmul.f32 %v2006_v17, %v2006_v17 }
 0x233   :  { %v2431_v34 = vadd.f32 %v2430_v0, %v2288_v11  ;;  %v8078_v0 = vld [vmem:[#allocation18_spill] sm:$0xff] }
 0x234   :  { %v2008_v63 = vsub.f32 %v8078_v0, %v4581_v33  ;;  %v2295_v16 = vmul.f32 %v2007_v12, %v2007_v12 }
 0x235   :  { %v2432_v37 = vadd.f32 %v2431_v34, %v2289_v50  ;;  %v8079_v34 = vld [vmem:[#allocation20_spill] sm:$0xff] }
 0x236   :  { %v2009_v19 = vsub.f32 %v8079_v34, %v4581_v33  ;;  %v2296_v31 = vmul.f32 %v2008_v63, %v2008_v63 }
 0x237   :  { %v2433_v6 = vadd.f32 %v2432_v37, %v2290_v18  ;;  %v8080_v37 = vld [vmem:[#allocation23_spill] sm:$0xff] }
 0x238   :  { %v2010_v32 = vsub.f32 %v8080_v37, %v4581_v33  ;;  %v2297_v29 = vmul.f32 %v2009_v19, %v2009_v19 }
 0x239   :  { %v2434_v36 = vadd.f32 %v2433_v6, %v2291_v35  ;;  %v8081_v6 = vld [vmem:[#allocation25_spill] sm:$0xff] }
 0x23a   :  { %v2011_v51 = vsub.f32 %v8081_v6, %v4581_v33  ;;  %v2298_v17 = vmul.f32 %v2010_v32, %v2010_v32 }
 0x23b   :  { %v2435_v11 = vadd.f32 %v2434_v36, %v2292_v39  ;;  %v8082_v36 = vld [vmem:[#allocation22_spill] sm:$0xff] }
 0x23c   :  { %v2012_v0 = vsub.f32 %v8082_v36, %v4581_v33  ;;  %v2299_v12 = vmul.f32 %v2011_v51, %v2011_v51 }
 0x23d   :  { %v2436_v50 = vadd.f32 %v2435_v11, %v2293_v27  ;;  %v8083_v11 = vld [vmem:[#allocation24_spill] sm:$0xff] }
 0x23e   :  { %v2013_v34 = vsub.f32 %v8083_v11, %v4581_v33  ;;  %v2300_v63 = vmul.f32 %v2012_v0, %v2012_v0 }
 0x23f   :  { %v2437_v18 = vadd.f32 %v2436_v50, %v2294_v48  ;;  %v8084_v50 = vld [vmem:[#allocation27_spill] sm:$0xff] }
 0x240   :  { %v2014_v37 = vsub.f32 %v8084_v50, %v4581_v33  ;;  %v2301_v19 = vmul.f32 %v2013_v34, %v2013_v34 }
 0x241   :  { %v2438_v35 = vadd.f32 %v2437_v18, %v2295_v16  ;;  %v8085_v18 = vld [vmem:[#allocation29_spill] sm:$0xff] }
 0x242   :  { %v2015_v6 = vsub.f32 %v8085_v18, %v4581_v33  ;;  %v2302_v32 = vmul.f32 %v2014_v37, %v2014_v37 }
 0x243   :  { %v2439_v39 = vadd.f32 %v2438_v35, %v2296_v31  ;;  %v8086_v35 = vld [vmem:[#allocation26_spill] sm:$0xff] }
 0x244   :  { %v2016_v36 = vsub.f32 %v8086_v35, %v4581_v33  ;;  %v2303_v51 = vmul.f32 %v2015_v6, %v2015_v6 }
 0x245   :  { %v2440_v27 = vadd.f32 %v2439_v39, %v2297_v29  ;;  %v8087_v39 = vld [vmem:[#allocation28_spill] sm:$0xff] }
 0x246   :  { %v2017_v11 = vsub.f32 %v8087_v39, %v4581_v33  ;;  %v2304_v0 = vmul.f32 %v2016_v36, %v2016_v36 }
 0x247   :  { %v2441_v48 = vadd.f32 %v2440_v27, %v2298_v17  ;;  %v8088_v27 = vld [vmem:[#allocation31_spill] sm:$0xff] }
 0x248   :  { %v2018_v50 = vsub.f32 %v8088_v27, %v4581_v33  ;;  %v2305_v34 = vmul.f32 %v2017_v11, %v2017_v11 }
 0x249   :  { %v2442_v16 = vadd.f32 %v2441_v48, %v2299_v12  ;;  %v8089_v48 = vld [vmem:[#allocation33_spill] sm:$0xff] }
 0x24a   :  { %v2019_v18 = vsub.f32 %v8089_v48, %v4581_v33  ;;  %v2306_v37 = vmul.f32 %v2018_v50, %v2018_v50 }
 0x24b   :  { %v2443_v31 = vadd.f32 %v2442_v16, %v2300_v63  ;;  %v8090_v16 = vld [vmem:[#allocation30_spill] sm:$0xff] }
 0x24c   :  { %v2020_v35 = vsub.f32 %v8090_v16, %v4581_v33  ;;  %v2307_v6 = vmul.f32 %v2019_v18, %v2019_v18 }
 0x24d   :  { %v2444_v29 = vadd.f32 %v2443_v31, %v2301_v19  ;;  %v8091_v31 = vld [vmem:[#allocation32_spill] sm:$0xff] }
 0x24e   :  { %v2021_v39 = vsub.f32 %v8091_v31, %v4581_v33  ;;  %v2308_v36 = vmul.f32 %v2020_v35, %v2020_v35 }
 0x24f   :  { %v2445_v17 = vadd.f32 %v2444_v29, %v2302_v32  ;;  %v8092_v29 = vld [vmem:[#allocation35_spill] sm:$0xff] }
 0x250   :  { %v2022_v27 = vsub.f32 %v8092_v29, %v4581_v33  ;;  %v2309_v11 = vmul.f32 %v2021_v39, %v2021_v39 }
 0x251   :  { %v2446_v12 = vadd.f32 %v2445_v17, %v2303_v51  ;;  %v8093_v17 = vld [vmem:[#allocation37_spill] sm:$0xff] }
 0x252   :  { %v2023_v48 = vsub.f32 %v8093_v17, %v4581_v33  ;;  %v2310_v50 = vmul.f32 %v2022_v27, %v2022_v27 }
 0x253   :  { %v2447_v63 = vadd.f32 %v2446_v12, %v2304_v0  ;;  %v8094_v12 = vld [vmem:[#allocation34_spill] sm:$0xff] }
 0x254   :  { %v2024_v16 = vsub.f32 %v8094_v12, %v4581_v33  ;;  %v2311_v18 = vmul.f32 %v2023_v48, %v2023_v48 }
 0x255   :  { %v2448_v19 = vadd.f32 %v2447_v63, %v2305_v34  ;;  %v8095_v63 = vld [vmem:[#allocation36_spill] sm:$0xff] }
 0x256   :  { %v2025_v31 = vsub.f32 %v8095_v63, %v4581_v33  ;;  %v2312_v35 = vmul.f32 %v2024_v16, %v2024_v16 }
 0x257   :  { %v2449_v32 = vadd.f32 %v2448_v19, %v2306_v37  ;;  %v8096_v19 = vld [vmem:[#allocation39_spill] sm:$0xff] }
 0x258   :  { %v2026_v29 = vsub.f32 %v8096_v19, %v4581_v33  ;;  %v2313_v39 = vmul.f32 %v2025_v31, %v2025_v31 }
 0x259   :  { %v2450_v51 = vadd.f32 %v2449_v32, %v2307_v6  ;;  %v8097_v32 = vld [vmem:[#allocation41_spill] sm:$0xff] }
 0x25a   :  { %v2027_v17 = vsub.f32 %v8097_v32, %v4581_v33  ;;  %v2314_v27 = vmul.f32 %v2026_v29, %v2026_v29 }
 0x25b   :  { %v2451_v0 = vadd.f32 %v2450_v51, %v2308_v36  ;;  %v8098_v51 = vld [vmem:[#allocation38_spill] sm:$0xff] }
 0x25c   :  { %v2028_v12 = vsub.f32 %v8098_v51, %v4581_v33  ;;  %v2315_v48 = vmul.f32 %v2027_v17, %v2027_v17 }
 0x25d   :  { %v2452_v34 = vadd.f32 %v2451_v0, %v2309_v11  ;;  %v8099_v0 = vld [vmem:[#allocation40_spill] sm:$0xff] }
 0x25e   :  { %v2029_v63 = vsub.f32 %v8099_v0, %v4581_v33  ;;  %v2316_v16 = vmul.f32 %v2028_v12, %v2028_v12 }
 0x25f   :  { %v2453_v37 = vadd.f32 %v2452_v34, %v2310_v50  ;;  %v8100_v34 = vld [vmem:[#allocation43_spill] sm:$0xff] }
 0x260   :  { %v2030_v19 = vsub.f32 %v8100_v34, %v4581_v33  ;;  %v2317_v31 = vmul.f32 %v2029_v63, %v2029_v63 }
 0x261   :  { %v2454_v6 = vadd.f32 %v2453_v37, %v2311_v18  ;;  %v8101_v37 = vld [vmem:[#allocation45_spill] sm:$0xff] }
 0x262   :  { %v2031_v32 = vsub.f32 %v8101_v37, %v4581_v33  ;;  %v2318_v29 = vmul.f32 %v2030_v19, %v2030_v19 }
 0x263   :  { %v2455_v36 = vadd.f32 %v2454_v6, %v2312_v35  ;;  %v8102_v6 = vld [vmem:[#allocation42_spill] sm:$0xff] }
 0x264   :  { %v2032_v51 = vsub.f32 %v8102_v6, %v4581_v33  ;;  %v2319_v17 = vmul.f32 %v2031_v32, %v2031_v32 }
 0x265   :  { %v2456_v11 = vadd.f32 %v2455_v36, %v2313_v39  ;;  %v8103_v36 = vld [vmem:[#allocation44_spill] sm:$0xff] }
 0x266   :  { %v2033_v0 = vsub.f32 %v8103_v36, %v4581_v33  ;;  %v2320_v12 = vmul.f32 %v2032_v51, %v2032_v51 }
 0x267   :  { %v2457_v50 = vadd.f32 %v2456_v11, %v2314_v27  ;;  %v8104_v11 = vld [vmem:[#allocation49_spill] sm:$0xff] }
 0x268   :  { %v2034_v34 = vsub.f32 %v8104_v11, %v4581_v33  ;;  %v2321_v63 = vmul.f32 %v2033_v0, %v2033_v0 }
 0x269   :  { %v2458_v18 = vadd.f32 %v2457_v50, %v2315_v48  ;;  %v8105_v50 = vld [vmem:[#allocation51_spill] sm:$0xff] }
 0x26a   :  { %v2035_v37 = vsub.f32 %v8105_v50, %v4581_v33  ;;  %v2322_v19 = vmul.f32 %v2034_v34, %v2034_v34 }
 0x26b   :  { %v2459_v35 = vadd.f32 %v2458_v18, %v2316_v16  ;;  %v8106_v18 = vld [vmem:[#allocation48_spill] sm:$0xff] }
 0x26c   :  { %v2036_v6 = vsub.f32 %v8106_v18, %v4581_v33  ;;  %v2323_v32 = vmul.f32 %v2035_v37, %v2035_v37 }
 0x26d   :  { %v2460_v39 = vadd.f32 %v2459_v35, %v2317_v31  ;;  %v8107_v35 = vld [vmem:[#allocation50_spill] sm:$0xff] }
 0x26e   :  { %v2037_v36 = vsub.f32 %v8107_v35, %v4581_v33  ;;  %v2324_v51 = vmul.f32 %v2036_v6, %v2036_v6 }
 0x26f   :  { %v2461_v27 = vadd.f32 %v2460_v39, %v2318_v29  ;;  %v8108_v39 = vld [vmem:[#allocation57_spill] sm:$0xff] }
 0x270   :  { %v2038_v11 = vsub.f32 %v8108_v39, %v4581_v33  ;;  %v2325_v0 = vmul.f32 %v2037_v36, %v2037_v36 }
 0x271   :  { %v2462_v48 = vadd.f32 %v2461_v27, %v2319_v17  ;;  %v8109_v27 = vld [vmem:[#allocation59_spill] sm:$0xff] }
 0x272   :  { %v2039_v50 = vsub.f32 %v8109_v27, %v4581_v33  ;;  %v2326_v34 = vmul.f32 %v2038_v11, %v2038_v11 }
 0x273   :  { %v2463_v16 = vadd.f32 %v2462_v48, %v2320_v12  ;;  %v8110_v48 = vld [vmem:[#allocation55_spill] sm:$0xff] }
 0x274   :  { %v2040_v18 = vsub.f32 %v8110_v48, %v4581_v33  ;;  %v2327_v37 = vmul.f32 %v2039_v50, %v2039_v50 }
 0x275   :  { %v2464_v31 = vadd.f32 %v2463_v16, %v2321_v63  ;;  %v8111_v16 = vld [vmem:[#allocation58_spill] sm:$0xff] }
 0x276   :  { %v2041_v35 = vsub.f32 %v8111_v16, %v4581_v33  ;;  %v2328_v6 = vmul.f32 %v2040_v18, %v2040_v18 }
 0x277   :  { %v2465_v29 = vadd.f32 %v2464_v31, %v2322_v19  ;;  %v8112_v31 = vld [vmem:[#allocation65_spill] sm:$0xff] }
 0x278   :  { %v2042_v39 = vsub.f32 %v8112_v31, %v4581_v33  ;;  %v2329_v36 = vmul.f32 %v2041_v35, %v2041_v35 }
 0x279   :  { %v2466_v17 = vadd.f32 %v2465_v29, %v2323_v32  ;;  %v8113_v29 = vld [vmem:[#allocation67_spill] sm:$0xff] }
 0x27a   :  { %v2043_v27 = vsub.f32 %v8113_v29, %v4581_v33  ;;  %v2330_v11 = vmul.f32 %v2042_v39, %v2042_v39 }
 0x27b   :  { %v2467_v12 = vadd.f32 %v2466_v17, %v2324_v51  ;;  %v8114_v17 = vld [vmem:[#allocation63_spill] sm:$0xff] }
 0x27c   :  { %v2044_v48 = vsub.f32 %v8114_v17, %v4581_v33  ;;  %v2331_v50 = vmul.f32 %v2043_v27, %v2043_v27 }
 0x27d   :  { %v2468_v63 = vadd.f32 %v2467_v12, %v2325_v0  ;;  %v8115_v12 = vld [vmem:[#allocation66_spill] sm:$0xff] }
 0x27e   :  { %v2045_v16 = vsub.f32 %v8115_v12, %v4581_v33  ;;  %v2332_v18 = vmul.f32 %v2044_v48, %v2044_v48 }
 0x27f   :  { %v2469_v19 = vadd.f32 %v2468_v63, %v2326_v34  ;;  %v8116_v63 = vld [vmem:[#allocation73_spill] sm:$0xff] }
 0x280   :  { %v2046_v31 = vsub.f32 %v8116_v63, %v4581_v33  ;;  %v2333_v35 = vmul.f32 %v2045_v16, %v2045_v16 }
 0x281   :  { %v2470_v32 = vadd.f32 %v2469_v19, %v2327_v37  ;;  %v8117_v19 = vld [vmem:[#allocation75_spill] sm:$0xff] }
 0x282   :  { %v2047_v29 = vsub.f32 %v8117_v19, %v4581_v33  ;;  %v2334_v39 = vmul.f32 %v2046_v31, %v2046_v31 }
 0x283   :  { %v2471_v51 = vadd.f32 %v2470_v32, %v2328_v6  ;;  %v8118_v32 = vld [vmem:[#allocation71_spill] sm:$0xff] }
 0x284   :  { %v2048_v17 = vsub.f32 %v8118_v32, %v4581_v33  ;;  %v2335_v27 = vmul.f32 %v2047_v29, %v2047_v29 }
 0x285   :  { %v2472_v0 = vadd.f32 %v2471_v51, %v2329_v36  ;;  %v8119_v51 = vld [vmem:[#allocation74_spill] sm:$0xff] }
 0x286   :  { %v2049_v12 = vsub.f32 %v8119_v51, %v4581_v33  ;;  %v2336_v48 = vmul.f32 %v2048_v17, %v2048_v17 }
 0x287   :  { %v2473_v34 = vadd.f32 %v2472_v0, %v2330_v11  ;;  %v8120_v0 = vld [vmem:[#allocation81_spill] sm:$0xff] }
 0x288   :  { %v2050_v63 = vsub.f32 %v8120_v0, %v4581_v33  ;;  %v2337_v16 = vmul.f32 %v2049_v12, %v2049_v12 }
 0x289   :  { %v2474_v37 = vadd.f32 %v2473_v34, %v2331_v50  ;;  %v8121_v34 = vld [vmem:[#allocation83_spill] sm:$0xff] }
 0x28a   :  { %v2051_v19 = vsub.f32 %v8121_v34, %v4581_v33  ;;  %v2338_v31 = vmul.f32 %v2050_v63, %v2050_v63 }
 0x28b   :  { %v2475_v6 = vadd.f32 %v2474_v37, %v2332_v18  ;;  %v8122_v37 = vld [vmem:[#allocation79_spill] sm:$0xff] }
 0x28c   :  { %v2052_v32 = vsub.f32 %v8122_v37, %v4581_v33  ;;  %v2339_v29 = vmul.f32 %v2051_v19, %v2051_v19 }
 0x28d   :  { %v2476_v36 = vadd.f32 %v2475_v6, %v2333_v35  ;;  %v8123_v6 = vld [vmem:[#allocation82_spill] sm:$0xff] }
 0x28e   :  { %v2053_v51 = vsub.f32 %v8123_v6, %v4581_v33  ;;  %v2340_v17 = vmul.f32 %v2052_v32, %v2052_v32 }
 0x28f   :  { %v2477_v11 = vadd.f32 %v2476_v36, %v2334_v39  ;;  %v8124_v36 = vld [vmem:[#allocation89_spill] sm:$0xff] }
 0x290   :  { %v2054_v0 = vsub.f32 %v8124_v36, %v4581_v33  ;;  %v2341_v12 = vmul.f32 %v2053_v51, %v2053_v51 }
 0x291   :  { %v2478_v50 = vadd.f32 %v2477_v11, %v2335_v27  ;;  %v8125_v11 = vld [vmem:[#allocation91_spill] sm:$0xff] }
 0x292   :  { %v2055_v34 = vsub.f32 %v8125_v11, %v4581_v33  ;;  %v2342_v63 = vmul.f32 %v2054_v0, %v2054_v0 }
 0x293   :  { %v2479_v18 = vadd.f32 %v2478_v50, %v2336_v48  ;;  %v8126_v50 = vld [vmem:[#allocation87_spill] sm:$0xff] }
 0x294   :  { %v2056_v37 = vsub.f32 %v8126_v50, %v4581_v33  ;;  %v2343_v19 = vmul.f32 %v2055_v34, %v2055_v34 }
 0x295   :  { %v2480_v35 = vadd.f32 %v2479_v18, %v2337_v16  ;;  %v8127_v18 = vld [vmem:[#allocation90_spill] sm:$0xff] }
 0x296   :  { %v2057_v6 = vsub.f32 %v8127_v18, %v4581_v33  ;;  %v2344_v32 = vmul.f32 %v2056_v37, %v2056_v37 }
 0x297   :  { %v2481_v39 = vadd.f32 %v2480_v35, %v2338_v31  ;;  %v8128_v35 = vld [vmem:[#allocation97_spill] sm:$0xff] }
 0x298   :  { %v2058_v36 = vsub.f32 %v8128_v35, %v4581_v33  ;;  %v2345_v51 = vmul.f32 %v2057_v6, %v2057_v6 }
 0x299   :  { %v2482_v27 = vadd.f32 %v2481_v39, %v2339_v29  ;;  %v8129_v39 = vld [vmem:[#allocation99_spill] sm:$0xff] }
 0x29a   :  { %v2059_v11 = vsub.f32 %v8129_v39, %v4581_v33  ;;  %v2346_v0 = vmul.f32 %v2058_v36, %v2058_v36 }
 0x29b   :  { %v2483_v48 = vadd.f32 %v2482_v27, %v2340_v17  ;;  %v8130_v27 = vld [vmem:[#allocation95_spill] sm:$0xff] }
 0x29c   :  { %v2060_v50 = vsub.f32 %v8130_v27, %v4581_v33  ;;  %v2347_v34 = vmul.f32 %v2059_v11, %v2059_v11 }
 0x29d   :  { %v2484_v16 = vadd.f32 %v2483_v48, %v2341_v12  ;;  %v8131_v48 = vld [vmem:[#allocation98_spill] sm:$0xff] }
 0x29e   :  { %v2061_v18 = vsub.f32 %v8131_v48, %v4581_v33  ;;  %v2348_v37 = vmul.f32 %v2060_v50, %v2060_v50 }
 0x29f   :  { %v2485_v31 = vadd.f32 %v2484_v16, %v2342_v63  ;;  %v8132_v16 = vld [vmem:[#allocation105_spill] sm:$0xff] }
 0x2a0   :  { %v2062_v35 = vsub.f32 %v8132_v16, %v4581_v33  ;;  %v2349_v6 = vmul.f32 %v2061_v18, %v2061_v18 }
 0x2a1   :  { %v2486_v29 = vadd.f32 %v2485_v31, %v2343_v19  ;;  %v8133_v31 = vld [vmem:[#allocation107_spill] sm:$0xff] }
 0x2a2   :  { %v2063_v39 = vsub.f32 %v8133_v31, %v4581_v33  ;;  %v2350_v36 = vmul.f32 %v2062_v35, %v2062_v35 }
 0x2a3   :  { %v2487_v17 = vadd.f32 %v2486_v29, %v2344_v32  ;;  %v8134_v29 = vld [vmem:[#allocation103_spill] sm:$0xff] }
 0x2a4   :  { %v2064_v27 = vsub.f32 %v8134_v29, %v4581_v33  ;;  %v2351_v11 = vmul.f32 %v2063_v39, %v2063_v39 }
 0x2a5   :  { %v2488_v12 = vadd.f32 %v2487_v17, %v2345_v51  ;;  %v8135_v17 = vld [vmem:[#allocation106_spill] sm:$0xff] }
 0x2a6   :  { %v2065_v48 = vsub.f32 %v8135_v17, %v4581_v33  ;;  %v2352_v50 = vmul.f32 %v2064_v27, %v2064_v27 }
 0x2a7   :  { %v2489_v63 = vadd.f32 %v2488_v12, %v2346_v0  ;;  %v8136_v12 = vld [vmem:[#allocation11_spill] sm:$0xff] }
 0x2a8   :  { %v2066_v16 = vsub.f32 %v8136_v12, %v4581_v33  ;;  %v2353_v18 = vmul.f32 %v2065_v48, %v2065_v48 }
 0x2a9   :  { %v2490_v19 = vadd.f32 %v2489_v63, %v2347_v34  ;;  %v8137_v63 = vld [vmem:[#allocation14_spill] sm:$0xff] }
 0x2aa   :  { %v2067_v31 = vsub.f32 %v8137_v63, %v4581_v33  ;;  %v2354_v35 = vmul.f32 %v2066_v16, %v2066_v16 }
 0x2ab   :  { %v2491_v32 = vadd.f32 %v2490_v19, %v2348_v37  ;;  %v8138_v19 = vld [vmem:[#allocation10_spill] sm:$0xff] }
 0x2ac   :  { %v2068_v29 = vsub.f32 %v8138_v19, %v4581_v33  ;;  %v2355_v39 = vmul.f32 %v2067_v31, %v2067_v31 }
 0x2ad   :  { %v2492_v51 = vadd.f32 %v2491_v32, %v2349_v6  ;;  %v8139_v32 = vld [vmem:[#allocation12_spill] sm:$0xff] }
 0x2ae   :  { %v2069_v17 = vsub.f32 %v8139_v32, %v4581_v33  ;;  %v2356_v27 = vmul.f32 %v2068_v29, %v2068_v29 }
 0x2af   :  { %v2493_v0 = vadd.f32 %v2492_v51, %v2350_v36  ;;  %v2070_v51 = vsub.f32 %v4194_v43, %v4581_v33 }
 0x2b0   :  { %v2357_v48 = vmul.f32 %v2069_v17, %v2069_v17 }
 0x2b1   :  { %v2494_v34 = vadd.f32 %v2493_v0, %v2351_v11  ;;  %v2071_v0 = vsub.f32 %v4201_v47, %v4581_v33  ;;  %v2358_v16 = vmul.f32 %v2070_v51, %v2070_v51 }
 0x2b3   :  { %v2495_v37 = vadd.f32 %v2494_v34, %v2352_v50  ;;  %v2072_v34 = vsub.f32 %v4191_v41, %v4581_v33  ;;  %v2359_v31 = vmul.f32 %v2071_v0, %v2071_v0 }
 0x2b5   :  { %v2496_v6 = vadd.f32 %v2495_v37, %v2353_v18  ;;  %v2073_v37 = vsub.f32 %v4196_v44, %v4581_v33  ;;  %v2360_v29 = vmul.f32 %v2072_v34, %v2072_v34 }
 0x2b7   :  { %v2497_v36 = vadd.f32 %v2496_v6, %v2354_v35  ;;  %v2074_v6 = vsub.f32 %v4214_v55, %v4581_v33  ;;  %v2361_v17 = vmul.f32 %v2073_v37, %v2073_v37 }
 0x2b9   :  { %v2498_v11 = vadd.f32 %v2497_v36, %v2355_v39  ;;  %v2075_v36 = vsub.f32 %v4221_v59, %v4581_v33  ;;  %v2362_v51 = vmul.f32 %v2074_v6, %v2074_v6 }
 0x2bb   :  { %v2499_v50 = vadd.f32 %v2498_v11, %v2356_v27  ;;  %v2076_v11 = vsub.f32 %v4211_v53, %v4581_v33  ;;  %v2363_v0 = vmul.f32 %v2075_v36, %v2075_v36 }
 0x2bd   :  { %v2500_v18 = vadd.f32 %v2499_v50, %v2357_v48  ;;  %v2077_v50 = vsub.f32 %v4216_v56, %v4581_v33  ;;  %v2364_v34 = vmul.f32 %v2076_v11, %v2076_v11 }
 0x2bf   :  { %v2501_v35 = vadd.f32 %v2500_v18, %v2358_v16  ;;  %v2078_v18 = vsub.f32 %v4234_v3, %v4581_v33  ;;  %v2365_v37 = vmul.f32 %v2077_v50, %v2077_v50 }
 0x2c1   :  { %v2502_v39 = vadd.f32 %v2501_v35, %v2359_v31  ;;  %v2079_v35 = vsub.f32 %v4241_v7, %v4581_v33  ;;  %v2366_v6 = vmul.f32 %v2078_v18, %v2078_v18 }
 0x2c3   :  { %v2503_v27 = vadd.f32 %v2502_v39, %v2360_v29  ;;  %v2080_v39 = vsub.f32 %v4231_v1, %v4581_v33  ;;  %v2367_v36 = vmul.f32 %v2079_v35, %v2079_v35 }
 0x2c5   :  { %v2504_v48 = vadd.f32 %v2503_v27, %v2361_v17  ;;  %v2081_v27 = vsub.f32 %v4236_v4, %v4581_v33  ;;  %v2368_v11 = vmul.f32 %v2080_v39, %v2080_v39 }
 0x2c7   :  { %v2505_v16 = vadd.f32 %v2504_v48, %v2362_v51  ;;  %v2082_v48 = vsub.f32 %v4254_v15, %v4581_v33  ;;  %v2369_v50 = vmul.f32 %v2081_v27, %v2081_v27 }
 0x2c9   :  { %v2506_v31 = vadd.f32 %v2505_v16, %v2363_v0  ;;  %v2083_v16 = vsub.f32 %v4261_v25, %v4581_v33  ;;  %v2370_v18 = vmul.f32 %v2082_v48, %v2082_v48 }
 0x2cb   :  { %v2507_v29 = vadd.f32 %v2506_v31, %v2364_v34  ;;  %v2084_v31 = vsub.f32 %v4251_v13, %v4581_v33  ;;  %v2371_v35 = vmul.f32 %v2083_v16, %v2083_v16 }
 0x2cd   :  { %v2508_v17 = vadd.f32 %v2507_v29, %v2365_v37  ;;  %v2085_v29 = vsub.f32 %v4256_v20, %v4581_v33  ;;  %v2372_v39 = vmul.f32 %v2084_v31, %v2084_v31 }
 0x2cf   :  { %v2509_v51 = vadd.f32 %v2508_v17, %v2366_v6  ;;  %v2086_v17 = vsub.f32 %v4274_v49, %v4581_v33  ;;  %v2373_v27 = vmul.f32 %v2085_v29, %v2085_v29 }
 0x2d1   :  { %v2510_v0 = vadd.f32 %v2509_v51, %v2367_v36  ;;  %v2087_v51 = vsub.f32 %v4281_v61, %v4581_v33  ;;  %v2374_v48 = vmul.f32 %v2086_v17, %v2086_v17 }
 0x2d3   :  { %v2511_v34 = vadd.f32 %v2510_v0, %v2368_v11  ;;  %v2088_v0 = vsub.f32 %v4271_v42, %v4581_v33  ;;  %v2375_v16 = vmul.f32 %v2087_v51, %v2087_v51 }
 0x2d5   :  { %v2512_v37 = vadd.f32 %v2511_v34, %v2369_v50  ;;  %v2089_v34 = vsub.f32 %v4276_v52, %v4581_v33  ;;  %v2376_v31 = vmul.f32 %v2088_v0, %v2088_v0 }
 0x2d7   :  { %v2513_v6 = vadd.f32 %v2512_v37, %v2370_v18  ;;  %v2090_v37 = vsub.f32 %v4294_v30, %v4581_v33  ;;  %v2377_v29 = vmul.f32 %v2089_v34, %v2089_v34 }
 0x2d9   :  { %v2514_v36 = vadd.f32 %v2513_v6, %v2371_v35  ;;  %v2091_v6 = vsub.f32 %v4301_v21, %v4581_v33  ;;  %v2378_v17 = vmul.f32 %v2090_v37, %v2090_v37 }
 0x2db   :  { %v2515_v11 = vadd.f32 %v2514_v36, %v2372_v39  ;;  %v2092_v36 = vsub.f32 %v4291_v14, %v4581_v33  ;;  %v2379_v51 = vmul.f32 %v2091_v6, %v2091_v6 }
 0x2dd   :  { %v2516_v50 = vadd.f32 %v2515_v11, %v2373_v27  ;;  %v2093_v11 = vsub.f32 %v4296_v40, %v4581_v33  ;;  %v2380_v0 = vmul.f32 %v2092_v36, %v2092_v36 }
 0x2df   :  { %v2517_v18 = vadd.f32 %v2516_v50, %v2374_v48  ;;  %v2094_v50 = vsub.f32 %v4314_v28, %v4581_v33  ;;  %v2381_v34 = vmul.f32 %v2093_v11, %v2093_v11 }
 0x2e1   :  { %v2518_v35 = vadd.f32 %v2517_v18, %v2375_v16  ;;  %v2095_v18 = vsub.f32 %v4321_v5, %v4581_v33  ;;  %v2382_v37 = vmul.f32 %v2094_v50, %v2094_v50 }
 0x2e3   :  { %v2519_v39 = vadd.f32 %v2518_v35, %v2376_v31  ;;  %v2096_v35 = vsub.f32 %v4311_v54, %v4581_v33  ;;  %v2383_v6 = vmul.f32 %v2095_v18, %v2095_v18 }
 0x2e5   :  { %v2520_v27 = vadd.f32 %v2519_v39, %v2377_v29  ;;  %v2097_v39 = vsub.f32 %v4316_v10, %v4581_v33  ;;  %v2384_v36 = vmul.f32 %v2096_v35, %v2096_v35 }
 0x2e7   :  { %v2521_v48 = vadd.f32 %v2520_v27, %v2378_v17  ;;  %v2098_v27 = vsub.f32 %v4334_v8, %v4581_v33  ;;  %v2385_v11 = vmul.f32 %v2097_v39, %v2097_v39 }
 0x2e9   :  { %v2522_v16 = vadd.f32 %v2521_v48, %v2379_v51  ;;  %v2099_v48 = vsub.f32 %v4341_v57, %v4581_v33  ;;  %v2386_v50 = vmul.f32 %v2098_v27, %v2098_v27 }
 0x2eb   :  { %v2523_v31 = vadd.f32 %v2522_v16, %v2380_v0  ;;  %v2100_v16 = vsub.f32 %v4331_v45, %v4581_v33  ;;  %v2387_v18 = vmul.f32 %v2099_v48, %v2099_v48 }
 0x2ed   :  { %v2524_v29 = vadd.f32 %v2523_v31, %v2381_v34  ;;  %v2101_v31 = vsub.f32 %v4336_v62, %v4581_v33  ;;  %v2388_v35 = vmul.f32 %v2100_v16, %v2100_v16 }
 0x2ef   :  { %v2525_v17 = vadd.f32 %v2524_v29, %v2382_v37  ;;  %v2102_v29 = vsub.f32 %v4354_v60, %v4581_v33  ;;  %v2389_v39 = vmul.f32 %v2101_v31, %v2101_v31 }
 0x2f1   :  { %v2526_v51 = vadd.f32 %v2525_v17, %v2383_v6  ;;  %v2103_v17 = vsub.f32 %v4361_v46, %v4581_v33  ;;  %v2390_v27 = vmul.f32 %v2102_v29, %v2102_v29 }
 0x2f3   :  { %v2527_v0 = vadd.f32 %v2526_v51, %v2384_v36  ;;  %v8140_v51 = vld [vmem:[#allocation52_spill] sm:$0xff]  ;;  %v2391_v48 = vmul.f32 %v2103_v17, %v2103_v17 }
 0x2f4   :  { %v2104_v45 = vsub.f32 %v8140_v51, %v4581_v33 }
 0x2f5   :  { %v2528_v34 = vadd.f32 %v2527_v0, %v2385_v11  ;;  %v8141_v0 = vld [vmem:[#allocation54_spill] sm:$0xff] }
 0x2f6   :  { %v2105_v62 = vsub.f32 %v8141_v0, %v4581_v33  ;;  %v2392_v16 = vmul.f32 %v2104_v45, %v2104_v45 }
 0x2f7   :  { %v2529_v37 = vadd.f32 %v2528_v34, %v2386_v50  ;;  %v8142_v34 = vld [vmem:[#allocation61_spill] sm:$0xff] }
 0x2f8   :  { %v2106_v60 = vsub.f32 %v8142_v34, %v4581_v33  ;;  %v2393_v31 = vmul.f32 %v2105_v62, %v2105_v62 }
 0x2f9   :  { %v2530_v6 = vadd.f32 %v2529_v37, %v2387_v18  ;;  %v8143_v37 = vld [vmem:[#allocation64_spill] sm:$0xff] }
 0x2fa   :  { %v2107_v46 = vsub.f32 %v8143_v37, %v4581_v33  ;;  %v2394_v29 = vmul.f32 %v2106_v60, %v2106_v60 }
 0x2fb   :  { %v2531_v36 = vadd.f32 %v2530_v6, %v2388_v35  ;;  %v8144_v6 = vld [vmem:[#allocation60_spill] sm:$0xff] }
 0x2fc   :  { %v2108_v51 = vsub.f32 %v8144_v6, %v4581_v33  ;;  %v2395_v17 = vmul.f32 %v2107_v46, %v2107_v46 }
 0x2fd   :  { %v2532_v11 = vadd.f32 %v2531_v36, %v2389_v39  ;;  %v8145_v36 = vld [vmem:[#allocation62_spill] sm:$0xff] }
 0x2fe   :  { %v2109_v0 = vsub.f32 %v8145_v36, %v4581_v33  ;;  %v2396_v45 = vmul.f32 %v2108_v51, %v2108_v51 }
 0x2ff   :  { %v2533_v50 = vadd.f32 %v2532_v11, %v2390_v27  ;;  %v8146_v11 = vld [vmem:[#allocation69_spill] sm:$0xff] }
 0x300   :  { %v2110_v34 = vsub.f32 %v8146_v11, %v4581_v33  ;;  %v2397_v62 = vmul.f32 %v2109_v0, %v2109_v0 }
 0x301   :  { %v2534_v18 = vadd.f32 %v2533_v50, %v2391_v48  ;;  %v8147_v50 = vld [vmem:[#allocation72_spill] sm:$0xff] }
 0x302   :  { %v2111_v37 = vsub.f32 %v8147_v50, %v4581_v33  ;;  %v2398_v60 = vmul.f32 %v2110_v34, %v2110_v34 }
 0x303   :  { %v2535_v35 = vadd.f32 %v2534_v18, %v2392_v16  ;;  %v8148_v18 = vld [vmem:[#allocation68_spill] sm:$0xff] }
 0x304   :  { %v2112_v6 = vsub.f32 %v8148_v18, %v4581_v33  ;;  %v2399_v46 = vmul.f32 %v2111_v37, %v2111_v37 }
 0x305   :  { %v2536_v39 = vadd.f32 %v2535_v35, %v2393_v31  ;;  %v8149_v35 = vld [vmem:[#allocation70_spill] sm:$0xff] }
 0x306   :  { %v2113_v36 = vsub.f32 %v8149_v35, %v4581_v33  ;;  %v2400_v51 = vmul.f32 %v2112_v6, %v2112_v6  ;;  %v8152_v35 = vld [vmem:[#allocation78_spill] sm:$0xff] }
 0x307   :  { %v2537_v27 = vadd.f32 %v2536_v39, %v2394_v29  ;;  %v8150_v39 = vld [vmem:[#allocation77_spill] sm:$0xff]  ;;  %v2117_v37 = vsub.f32 %v8152_v35, %v4581_v33 }
 0x308   :  { %v2114_v11 = vsub.f32 %v8150_v39, %v4581_v33  ;;  %v2401_v0 = vmul.f32 %v2113_v36, %v2113_v36  ;;  %v8153_v39 = vld [vmem:[#allocation85_spill] sm:$0xff]  ;;  %v2119_v36 = vsub.f32 %v8053_v9, %v4581_v33 }
 0x309   :  { %v2538_v48 = vadd.f32 %v2537_v27, %v2395_v17  ;;  %v2115_v27 = vsub.f32 %v8049_v22, %v4581_v33  ;;  %v2118_v6 = vsub.f32 %v8153_v39, %v4581_v33 }
 0x30a   :  { %v2402_v34 = vmul.f32 %v2114_v11, %v2114_v11  ;;  %v2120_v11 = vsub.f32 %v8054_v38, %v4581_v33  ;;  %v2407_v39 = vmul.f32 %v2119_v36, %v2119_v36 }
 0x30b   :  { %v2539_v16 = vadd.f32 %v2538_v48, %v2396_v45  ;;  %v8151_v48 = vld [vmem:[#allocation76_spill] sm:$0xff] }
 0x30c   :  { %v2116_v18 = vsub.f32 %v8151_v48, %v4581_v33 }
 0x30d   :  { %v2540_v31 = vadd.f32 %v2539_v16, %v2397_v62  ;;  %v1267_v16 = vlaneseq }
 0x30f   :  { %v2541_v29 = vadd.f32 %v2540_v31, %v2398_v60  ;;  %v2403_v60 = vmul.f32 %v2115_v27, %v2115_v27  ;;  %v4833_v50 = vshrl.u32 %v1267_v16, 7  ;;  %v2122_v16 = vsub.f32 %v8056_v23, %v4581_v33 }
 0x311   :  { %v2542_v17 = vadd.f32 %v2541_v29, %v2399_v46  ;;  %v2404_v46 = vmul.f32 %v2116_v18, %v2116_v18  ;;  %v1400_v27 = vadd.s32 1056, %v4833_v50 }
 0x313   :  { %v2543_v45 = vadd.f32 %v2542_v17, %v2400_v51  ;;  %v2405_v51 = vmul.f32 %v2117_v37, %v2117_v37  ;;  %vm1544_vm0 = vcmp.lt.s32.totalorder %v1400_v27, 1058  ;;  %v2123_v37 = vsub.f32 %v8057_v2, %v4581_v33 }
 0x315   :  { %v2544_v62 = vadd.f32 %v2543_v45, %v2401_v0  ;;  %v2406_v0 = vmul.f32 %v2118_v6, %v2118_v6  ;;  %v2124_v6 = vsub.f32 %v8058_v26, %v4581_v33 }
 0x317   :  { %v2545_v31 = vadd.f32 %v2544_v62, %v2402_v34  ;;  %v8154_v34 = vld [vmem:[#allocation86_spill] sm:$0xff]  ;;  %v2412_v26 = vmul.f32 %v2124_v6, %v2124_v6 }
 0x318   :  { %v2121_v62 = vsub.f32 %v8154_v34, %v4581_v33  ;;  %v8158_v34 = vld [vmem:[#allocation109_spill] sm:$0xff] }
 0x319   :  { %v2546_v29 = vadd.f32 %v2545_v31, %v2403_v60  ;;  %v2408_v60 = vmul.f32 %v2120_v11, %v2120_v11  ;;  %v2125_v11 = vsub.f32 %v8059_v24, %v4581_v33  ;;  %v2130_v24 = vsub.f32 %v8158_v34, %v4581_v33 }
 0x31b   :  { %v2547_v17 = vadd.f32 %v2546_v29, %v2404_v46  ;;  %v2409_v46 = vmul.f32 %v2121_v62, %v2121_v62  ;;  %v8156_v62 = vld [vmem:[#allocation100_spill] sm:$0xff] }
 0x31d   :  { %v2548_v45 = vadd.f32 %v2547_v17, %v2405_v51  ;;  %v2126_v51 = vsub.f32 %v4474_v58, %v4581_v33  ;;  %v2410_v17 = vmul.f32 %v2122_v16, %v2122_v16  ;;  %v8157_v58 = vld [vmem:[#allocation102_spill] sm:$0xff] }
 0x31e   :  { %v2129_v16 = vsub.f32 %v8157_v58, %v4581_v33 }
 0x31f   :  { %v2549_v18 = vadd.f32 %v2548_v45, %v2406_v0  ;;  %v3883_v0 = vmov 0.0  }
 0x320   :  { %v3543_v45 = vsel %vm1544_vm0, 1.0, %v3883_v0 }
 0x321   :  { %v2550_v31 = vadd.f32 %v2549_v18, %v2407_v39  ;;  %v8155_v39 = vld [vmem:[#allocation104_spill] sm:$0xff]  ;;  %v2411_v18 = vmul.f32 %v2123_v37, %v2123_v37  ;;  %v8159_v37 = vld [vmem:[#allocation111_spill] sm:$0xff] }
 0x322   :  { %v2127_v27 = vsub.f32 %v8155_v39, %v4581_v33 }
 0x323   :  { %v2551_v29 = vadd.f32 %v2550_v31, %v2408_v60  ;;  %v2128_v60 = vsub.f32 %v8156_v62, %v4581_v33  ;;  %v2270_v31 = vmul.f32 %v3543_v45, %v2126_v51  ;;  %v2274_v45 = vmul.f32 0.0, %v2130_v24 }
 0x325   :  { %v2552_v36 = vadd.f32 %v2551_v29, %v2409_v46  ;;  %v2271_v46 = vmul.f32 0.0, %v2127_v27  ;;  %v2413_v29 = vmul.f32 %v2125_v11, %v2125_v11  ;;  %v2272_v38 = vmul.f32 0.0, %v2128_v60 }
 0x326   :  { %v2414_v9 = vmul.f32 %v2270_v31, %v2270_v31  ;;  %v8162_v31 = vld [vmem:[#allocation113_spill] sm:$0xff] }
 0x327   :  { %v2553_v2 = vadd.f32 %v2552_v36, %v2410_v17  ;;  %v2131_v17 = vsub.f32 %v8159_v37, %v4581_v33  ;;  %v2273_v36 = vmul.f32 0.0, %v2129_v16  ;;  %v2415_v62 = vmul.f32 %v2271_v46, %v2271_v46 }
 0x328   :  { %v2418_v37 = vmul.f32 %v2274_v45, %v2274_v45 }
 0x329   :  { %v2554_v23 = vadd.f32 %v2553_v2, %v2411_v18  ;;  %v8160_v2 = vld [vmem:[#allocation108_spill] sm:$0xff]  ;;  %v2416_v18 = vmul.f32 %v2272_v38, %v2272_v38  ;;  %v2275_v11 = vmul.f32 0.0, %v2131_v17  ;;  %v2417_v34 = vmul.f32 %v2273_v36, %v2273_v36  ;;  %v8165_v36 = vld [vmem:[#allocation114_spill] sm:$0xff] }
 0x32a   :  { %v2132_v6 = vsub.f32 %v8160_v2, %v4581_v33  ;;  %v8164_v38 = vld [vmem:[#allocation112_spill] sm:$0xff] }
 0x32b   :  { %v2555_v0 = vadd.f32 %v2554_v23, %v2412_v26  ;;  %v8161_v23 = vld [vmem:[#allocation110_spill] sm:$0xff]  ;;  %v2419_v2 = vmul.f32 %v2275_v11, %v2275_v11 }
 0x32c   :  { %v2133_v26 = vsub.f32 %v8161_v23, %v4581_v33 }
 0x32d   :  { %v2556_v39 = vadd.f32 %v2555_v0, %v2413_v29  ;;  %v2134_v29 = vsub.f32 %v8162_v31, %v4581_v33  ;;  %v2276_v0 = vmul.f32 0.0, %v2132_v6 }
 0x32e   :  { %v2277_v46 = vmul.f32 0.0, %v2133_v26 }
 0x32f   :  { %v2557_v51 = vadd.f32 %v2556_v39, %v2414_v9  ;;  %v8163_v9 = vld [vmem:[#allocation115_spill] sm:$0xff]  ;;  %v2420_v23 = vmul.f32 %v2276_v0, %v2276_v0 }
 0x330   :  { %v2135_v39 = vsub.f32 %v8163_v9, %v4581_v33  ;;  %v2421_v31 = vmul.f32 %v2277_v46, %v2277_v46 }
 0x331   :  { %v2558_v27 = vadd.f32 %v2557_v51, %v2415_v62  ;;  %v2136_v62 = vsub.f32 %v8164_v38, %v4581_v33  ;;  %v2278_v51 = vmul.f32 0.0, %v2134_v29 }
 0x333   :  { %v2559_v60 = vadd.f32 %v2558_v27, %v2416_v18  ;;  %v2137_v18 = vsub.f32 %v8165_v36, %v4581_v33  ;;  %v2279_v27 = vmul.f32 0.0, %v2135_v39  ;;  %v2280_v45 = vmul.f32 0.0, %v2136_v62 }
 0x335   :  { %v2560_v16 = vadd.f32 %v2559_v60, %v2417_v34  ;;  %v2422_v34 = vmul.f32 %v2278_v51, %v2278_v51  ;;  %v2281_v58 = vmul.f32 0.0, %v2137_v18  ;;  %v2423_v9 = vmul.f32 %v2279_v27, %v2279_v27  ;;  %v8166_v51 = vld [vmem:[#allocation3_spill] sm:$0xff]  ;;  %v8168_v27 = vld [vmem:[#allocation2_spill] sm:$0xff] }
 0x336   :  { %v2424_v11 = vmul.f32 %v2280_v45, %v2280_v45 }
 0x337   :  { %v2561_v24 = vadd.f32 %v2560_v16, %v2418_v37  ;;  %v2425_v16 = vmul.f32 %v2281_v58, %v2281_v58  ;;  %v4881_v58 = vld [vmem:[%s7602_s3] sm:$0x1] }
 0x339   :  { %v2562_v17 = vadd.f32 %v2561_v24, %v2419_v2 }
 0x33b   :  { %v2563_v6 = vadd.f32 %v2562_v17, %v2420_v23  ;;  %v2576_v23 = vld [vmem:[%s7601_s2] sm:$0x1] }
 0x33d   :  { %v2564_v60 = vadd.f32 %v2563_v6, %v2421_v31  ;;  %v7818_v31 = vsub.s32 0, %v4833_v50 }
 0x33f   :  { %v2565_v26 = vadd.f32 %v2564_v60, %v2422_v34  ;;  %v8170_v34 = vld [vmem:[#allocation7_spill] sm:$0xff] }
 0x341   :  { %v2566_v37 = vadd.f32 %v2565_v26, %v2423_v9  ;;  %v8171_v26 = vld [vmem:[#allocation9_spill] sm:$0xff] }
 0x343   :  { %v2567_v35 = vadd.f32 %v2566_v37, %v2424_v11  ;;  %v8172_v37 = vld [vmem:[#allocation6_spill] sm:$0xff] }
 0x345   :  { %v2568_v38 = vadd.f32 %v2567_v35, %v2425_v16 }
 0x347   :  { %v2569_v29 = vrot.slane %v2568_v38, 4 }
 0x349   :  { %v2570_v0 = vadd.f32 %v2569_v29, %v2568_v38  ;;  %v8173_v29 = vld [vmem:[#allocation8_spill] sm:$0xff]  ;;  %v8188_v38 = vld [vmem:[#allocation22_spill] sm:$0xff] }
 0x34b   :  { %v2571_v2 = vrot.slane %v2570_v0, 2 }
 0x34d   :  { %v2572_v24 = vadd.f32 %v2571_v2, %v2570_v0  ;;  %v8174_v2 = vld [vmem:[#allocation15_spill] sm:$0xff] }
 0x34f   :  { %v2573_v48 = vrot.slane %v2572_v24, 1 }
 0x351   :  { %v2574_v36 = vadd.f32 %v2573_v48, %v2572_v24 }
 0x353   :  { %v2575_v39 = vmul.f32 0.0009451796, %v2574_v36  ;;  %v8167_v36 = vld [vmem:[#allocation5_spill] sm:$0xff] }
 0x355   :  { %v2577_v46 = vadd.f32 1e-05, %v2575_v39  ;;  %v8175_v39 = vld [vmem:[#allocation17_spill] sm:$0xff] }
 0x357   :  { %3881 = vrsqrt.f32 %v2577_v46 }
 0x361   :  { %v3882_v62 = vpop.eup %3881 }
 0x362   :  { %v2579_v9 = vmul.f32 %v3882_v62, %v2576_v23  ;;  %v8176_v23 = vld [vmem:[#allocation13_spill] sm:$0xff] }
 0x364   :  { %v4884_v35 = vmul.f32 %v2579_v9, %v4581_v33  ;;  %v4888_v48 = vrot.slane %v2579_v9, %v7818_v31  ;;  %v8169_v33 = vld [vmem:[#allocation4_spill] sm:$0xff] }
 0x365   :  { %v8177_v9 = vld [vmem:[#allocation16_spill] sm:$0xff] }
 0x366   :  { %v4894_v17 = vmul.f32 %v4888_v48, %v8166_v51  ;;  %v4898_v18 = vmul.f32 %v4888_v48, %v8167_v36  ;;  %v4902_v6 = vmul.f32 %v8168_v27, %v4888_v48  ;;  %v4906_v45 = vmul.f32 %v8169_v33, %v4888_v48  ;;  %v8178_v36 = vld [vmem:[#allocation19_spill] sm:$0xff]  ;;  %v8179_v33 = vld [vmem:[#allocation21_spill] sm:$0xff]  ;;  %v8190_v31 = vld [vmem:[#allocation24_spill] sm:$0xff] }
 0x367   :  { %v4910_v60 = vmul.f32 %v4888_v48, %v8170_v34  ;;  %v4914_v11 = vmul.f32 %v4888_v48, %v8171_v26  ;;  %v4918_v16 = vmul.f32 %v8172_v37, %v4888_v48  ;;  %v4922_v0 = vmul.f32 %v8173_v29, %v4888_v48  ;;  %v8180_v26 = vld [vmem:[#allocation18_spill] sm:$0xff]  ;;  %v8182_v29 = vld [vmem:[#allocation20_spill] sm:$0xff] }
 0x368   :  { %v4926_v24 = vmul.f32 %v4888_v48, %v8174_v2  ;;  %v4930_v46 = vmul.f32 %v4888_v48, %v8175_v39  ;;  %v4934_v62 = vmul.f32 %v8176_v23, %v4888_v48  ;;  %v4938_v51 = vmul.f32 %v8177_v9, %v4888_v48  ;;  %v8184_v39 = vld [vmem:[#allocation23_spill] sm:$0xff]  ;;  %v8186_v9 = vld [vmem:[#allocation25_spill] sm:$0xff] }
 0x369   :  { %v4942_v27 = vmul.f32 %v4888_v48, %v8178_v36  ;;  %v4946_v34 = vmul.f32 %v4888_v48, %v8179_v33  ;;  %v4950_v37 = vmul.f32 %v8180_v26, %v4888_v48  ;;  %v4954_v2 = vmul.f32 %v8182_v29, %v4888_v48 }
 0x36a   :  { %v4958_v23 = vmul.f32 %v4888_v48, %v8184_v39  ;;  %v4962_v36 = vmul.f32 %v4888_v48, %v8186_v9  ;;  %v4966_v33 = vmul.f32 %v8188_v38, %v4888_v48  ;;  %v4970_v26 = vmul.f32 %v8190_v31, %v4888_v48 }
 0x36b   :  { %8181 = vst [vmem:[#allocation80_spill] sm:$0xff] %v4950_v37  ;;  %8183 = vst [vmem:[#allocation11_spill] sm:$0xff] %v4954_v2  ;;  %v8192_v37 = vld [vmem:[#allocation27_spill] sm:$0xff]  ;;  %v8194_v2 = vld [vmem:[#allocation29_spill] sm:$0xff] }
 0x36c   :  { %8185 = vst [vmem:[#allocation14_spill] sm:$0xff] %v4958_v23  ;;  %8187 = vst [vmem:[#allocation10_spill] sm:$0xff] %v4962_v36  ;;  %v4974_v29 = vmul.f32 %v4888_v48, %v8192_v37  ;;  %v4978_v39 = vmul.f32 %v4888_v48, %v8194_v2  ;;  %v8196_v23 = vld [vmem:[#allocation26_spill] sm:$0xff]  ;;  %v8198_v36 = vld [vmem:[#allocation28_spill] sm:$0xff] }
 0x36d   :  { %8189 = vst [vmem:[#allocation12_spill] sm:$0xff] %v4966_v33  ;;  %8191 = vst [vmem:[#allocation3_spill] sm:$0xff] %v4970_v26  ;;  %v4982_v9 = vmul.f32 %v8196_v23, %v4888_v48  ;;  %v4986_v38 = vmul.f32 %v8198_v36, %v4888_v48  ;;  %v8200_v33 = vld [vmem:[#allocation31_spill] sm:$0xff]  ;;  %v8202_v26 = vld [vmem:[#allocation33_spill] sm:$0xff] }
 0x36e   :  { %8193 = vst [vmem:[#allocation5_spill] sm:$0xff] %v4974_v29  ;;  %8195 = vst [vmem:[#allocation2_spill] sm:$0xff] %v4978_v39  ;;  %v4990_v31 = vmul.f32 %v4888_v48, %v8200_v33  ;;  %v4994_v37 = vmul.f32 %v4888_v48, %v8202_v26  ;;  %v8204_v29 = vld [vmem:[#allocation30_spill] sm:$0xff]  ;;  %v8206_v39 = vld [vmem:[#allocation32_spill] sm:$0xff] }
 0x36f   :  { %8197 = vst [vmem:[#allocation4_spill] sm:$0xff] %v4982_v9  ;;  %8199 = vst [vmem:[#allocation7_spill] sm:$0xff] %v4986_v38  ;;  %v4998_v2 = vmul.f32 %v8204_v29, %v4888_v48  ;;  %v5002_v23 = vmul.f32 %v8206_v39, %v4888_v48  ;;  %v8208_v9 = vld [vmem:[#allocation35_spill] sm:$0xff]  ;;  %v8210_v38 = vld [vmem:[#allocation37_spill] sm:$0xff] }
 0x370   :  { %8201 = vst [vmem:[#allocation9_spill] sm:$0xff] %v4990_v31  ;;  %8203 = vst [vmem:[#allocation6_spill] sm:$0xff] %v4994_v37  ;;  %v5006_v36 = vmul.f32 %v4888_v48, %v8208_v9  ;;  %v5010_v33 = vmul.f32 %v4888_v48, %v8210_v38  ;;  %v8212_v31 = vld [vmem:[#allocation34_spill] sm:$0xff]  ;;  %v8214_v37 = vld [vmem:[#allocation36_spill] sm:$0xff] }
 0x371   :  { %8205 = vst [vmem:[#allocation8_spill] sm:$0xff] %v4998_v2  ;;  %8207 = vst [vmem:[#allocation15_spill] sm:$0xff] %v5002_v23  ;;  %v5014_v26 = vmul.f32 %v8212_v31, %v4888_v48  ;;  %v5018_v29 = vmul.f32 %v8214_v37, %v4888_v48  ;;  %v8216_v2 = vld [vmem:[#allocation39_spill] sm:$0xff]  ;;  %v8218_v23 = vld [vmem:[#allocation41_spill] sm:$0xff] }
 0x372   :  { %8209 = vst [vmem:[#allocation17_spill] sm:$0xff] %v5006_v36  ;;  %8211 = vst [vmem:[#allocation13_spill] sm:$0xff] %v5010_v33  ;;  %v5022_v39 = vmul.f32 %v4888_v48, %v8216_v2  ;;  %v5026_v9 = vmul.f32 %v4888_v48, %v8218_v23  ;;  %v8220_v36 = vld [vmem:[#allocation38_spill] sm:$0xff]  ;;  %v8222_v33 = vld [vmem:[#allocation40_spill] sm:$0xff] }
 0x373   :  { %8213 = vst [vmem:[#allocation16_spill] sm:$0xff] %v5014_v26  ;;  %8215 = vst [vmem:[#allocation19_spill] sm:$0xff] %v5018_v29  ;;  %v5030_v38 = vmul.f32 %v8220_v36, %v4888_v48  ;;  %v5034_v31 = vmul.f32 %v8222_v33, %v4888_v48  ;;  %v8224_v26 = vld [vmem:[#allocation43_spill] sm:$0xff]  ;;  %v8226_v29 = vld [vmem:[#allocation45_spill] sm:$0xff] }
 0x374   :  { %8217 = vst [vmem:[#allocation21_spill] sm:$0xff] %v5022_v39  ;;  %8219 = vst [vmem:[#allocation18_spill] sm:$0xff] %v5026_v9  ;;  %v5038_v37 = vmul.f32 %v4888_v48, %v8224_v26  ;;  %v5042_v2 = vmul.f32 %v4888_v48, %v8226_v29  ;;  %v8228_v39 = vld [vmem:[#allocation42_spill] sm:$0xff]  ;;  %v8230_v9 = vld [vmem:[#allocation44_spill] sm:$0xff] }
 0x375   :  { %8221 = vst [vmem:[#allocation20_spill] sm:$0xff] %v5030_v38  ;;  %8223 = vst [vmem:[#allocation23_spill] sm:$0xff] %v5034_v31  ;;  %v5046_v23 = vmul.f32 %v8228_v39, %v4888_v48  ;;  %v5050_v36 = vmul.f32 %v8230_v9, %v4888_v48  ;;  %v8232_v38 = vld [vmem:[#allocation49_spill] sm:$0xff]  ;;  %v8234_v31 = vld [vmem:[#allocation51_spill] sm:$0xff] }
 0x376   :  { %8225 = vst [vmem:[#allocation25_spill] sm:$0xff] %v5038_v37  ;;  %8227 = vst [vmem:[#allocation22_spill] sm:$0xff] %v5042_v2  ;;  %v5054_v33 = vmul.f32 %v4888_v48, %v8232_v38  ;;  %v5058_v26 = vmul.f32 %v4888_v48, %v8234_v31  ;;  %v8236_v37 = vld [vmem:[#allocation48_spill] sm:$0xff]  ;;  %v8238_v2 = vld [vmem:[#allocation50_spill] sm:$0xff] }
 0x377   :  { %8229 = vst [vmem:[#allocation24_spill] sm:$0xff] %v5046_v23  ;;  %8231 = vst [vmem:[#allocation27_spill] sm:$0xff] %v5050_v36  ;;  %v5062_v29 = vmul.f32 %v8236_v37, %v4888_v48  ;;  %v5066_v39 = vmul.f32 %v8238_v2, %v4888_v48  ;;  %v8240_v23 = vld [vmem:[#allocation57_spill] sm:$0xff]  ;;  %v8242_v36 = vld [vmem:[#allocation59_spill] sm:$0xff] }
 0x378   :  { %8233 = vst [vmem:[#allocation29_spill] sm:$0xff] %v5054_v33  ;;  %8235 = vst [vmem:[#allocation26_spill] sm:$0xff] %v5058_v26  ;;  %v5070_v9 = vmul.f32 %v4888_v48, %v8240_v23  ;;  %v5074_v38 = vmul.f32 %v4888_v48, %v8242_v36  ;;  %v8244_v33 = vld [vmem:[#allocation55_spill] sm:$0xff]  ;;  %v8246_v26 = vld [vmem:[#allocation58_spill] sm:$0xff] }
 0x379   :  { %8237 = vst [vmem:[#allocation28_spill] sm:$0xff] %v5062_v29  ;;  %8239 = vst [vmem:[#allocation31_spill] sm:$0xff] %v5066_v39  ;;  %v5078_v31 = vmul.f32 %v8244_v33, %v4888_v48  ;;  %v5082_v37 = vmul.f32 %v8246_v26, %v4888_v48  ;;  %v8248_v29 = vld [vmem:[#allocation65_spill] sm:$0xff]  ;;  %v8250_v39 = vld [vmem:[#allocation67_spill] sm:$0xff] }
 0x37a   :  { %8241 = vst [vmem:[#allocation33_spill] sm:$0xff] %v5070_v9  ;;  %8243 = vst [vmem:[#allocation30_spill] sm:$0xff] %v5074_v38  ;;  %v5086_v2 = vmul.f32 %v4888_v48, %v8248_v29  ;;  %v5090_v23 = vmul.f32 %v4888_v48, %v8250_v39  ;;  %v8252_v9 = vld [vmem:[#allocation63_spill] sm:$0xff]  ;;  %v8254_v38 = vld [vmem:[#allocation66_spill] sm:$0xff] }
 0x37b   :  { %8245 = vst [vmem:[#allocation32_spill] sm:$0xff] %v5078_v31  ;;  %8247 = vst [vmem:[#allocation35_spill] sm:$0xff] %v5082_v37  ;;  %v5094_v36 = vmul.f32 %v8252_v9, %v4888_v48  ;;  %v5098_v33 = vmul.f32 %v8254_v38, %v4888_v48  ;;  %v8256_v31 = vld [vmem:[#allocation73_spill] sm:$0xff]  ;;  %v8258_v37 = vld [vmem:[#allocation75_spill] sm:$0xff] }
 0x37c   :  { %8249 = vst [vmem:[#allocation37_spill] sm:$0xff] %v5086_v2  ;;  %8251 = vst [vmem:[#allocation34_spill] sm:$0xff] %v5090_v23  ;;  %v5102_v26 = vmul.f32 %v4888_v48, %v8256_v31  ;;  %v5106_v29 = vmul.f32 %v4888_v48, %v8258_v37  ;;  %v8260_v2 = vld [vmem:[#allocation71_spill] sm:$0xff]  ;;  %v8262_v23 = vld [vmem:[#allocation74_spill] sm:$0xff] }
 0x37d   :  { %8253 = vst [vmem:[#allocation36_spill] sm:$0xff] %v5094_v36  ;;  %8255 = vst [vmem:[#allocation39_spill] sm:$0xff] %v5098_v33  ;;  %v5110_v39 = vmul.f32 %v8260_v2, %v4888_v48  ;;  %v5114_v9 = vmul.f32 %v8262_v23, %v4888_v48  ;;  %v8264_v36 = vld [vmem:[#allocation81_spill] sm:$0xff]  ;;  %v8266_v33 = vld [vmem:[#allocation83_spill] sm:$0xff] }
 0x37e   :  { %8257 = vst [vmem:[#allocation41_spill] sm:$0xff] %v5102_v26  ;;  %8259 = vst [vmem:[#allocation38_spill] sm:$0xff] %v5106_v29  ;;  %v5118_v38 = vmul.f32 %v4888_v48, %v8264_v36  ;;  %v5122_v31 = vmul.f32 %v4888_v48, %v8266_v33  ;;  %v8268_v26 = vld [vmem:[#allocation79_spill] sm:$0xff]  ;;  %v8270_v29 = vld [vmem:[#allocation82_spill] sm:$0xff] }
 0x37f   :  { %8261 = vst [vmem:[#allocation40_spill] sm:$0xff] %v5110_v39  ;;  %8263 = vst [vmem:[#allocation43_spill] sm:$0xff] %v5114_v9  ;;  %v5126_v37 = vmul.f32 %v8268_v26, %v4888_v48  ;;  %v5130_v2 = vmul.f32 %v8270_v29, %v4888_v48  ;;  %v8272_v39 = vld [vmem:[#allocation89_spill] sm:$0xff]  ;;  %v8274_v9 = vld [vmem:[#allocation91_spill] sm:$0xff] }
 0x380   :  { %8265 = vst [vmem:[#allocation45_spill] sm:$0xff] %v5118_v38  ;;  %8267 = vst [vmem:[#allocation42_spill] sm:$0xff] %v5122_v31  ;;  %v5134_v23 = vmul.f32 %v4888_v48, %v8272_v39  ;;  %v5138_v36 = vmul.f32 %v4888_v48, %v8274_v9  ;;  %v8276_v38 = vld [vmem:[#allocation87_spill] sm:$0xff]  ;;  %v8278_v31 = vld [vmem:[#allocation90_spill] sm:$0xff] }
 0x381   :  { %8269 = vst [vmem:[#allocation44_spill] sm:$0xff] %v5126_v37  ;;  %8271 = vst [vmem:[#allocation49_spill] sm:$0xff] %v5130_v2  ;;  %v5142_v33 = vmul.f32 %v8276_v38, %v4888_v48  ;;  %v5146_v26 = vmul.f32 %v8278_v31, %v4888_v48  ;;  %v8280_v37 = vld [vmem:[#allocation97_spill] sm:$0xff]  ;;  %v8282_v2 = vld [vmem:[#allocation99_spill] sm:$0xff] }
 0x382   :  { %8273 = vst [vmem:[#allocation51_spill] sm:$0xff] %v5134_v23  ;;  %8275 = vst [vmem:[#allocation48_spill] sm:$0xff] %v5138_v36  ;;  %v5150_v29 = vmul.f32 %v4888_v48, %v8280_v37  ;;  %v5154_v39 = vmul.f32 %v4888_v48, %v8282_v2  ;;  %v8284_v23 = vld [vmem:[#allocation95_spill] sm:$0xff]  ;;  %v8285_v36 = vld [vmem:[#allocation98_spill] sm:$0xff] }
 0x383   :  { %8277 = vst [vmem:[#allocation50_spill] sm:$0xff] %v5142_v33  ;;  %8279 = vst [vmem:[#allocation57_spill] sm:$0xff] %v5146_v26  ;;  %v5158_v9 = vmul.f32 %v8284_v23, %v4888_v48  ;;  %v5162_v38 = vmul.f32 %v8285_v36, %v4888_v48  ;;  %v8286_v33 = vld [vmem:[#allocation105_spill] sm:$0xff]  ;;  %v8287_v26 = vld [vmem:[#allocation107_spill] sm:$0xff]  ;;  %v5182_v36 = vmul.f32 %v4888_v48, %v8136_v12 }
 0x384   :  { %8281 = vst [vmem:[#allocation59_spill] sm:$0xff] %v5150_v29  ;;  %8283 = vst [vmem:[#allocation55_spill] sm:$0xff] %v5154_v39  ;;  %v5166_v31 = vmul.f32 %v4888_v48, %v8286_v33  ;;  %v5170_v37 = vmul.f32 %v4888_v48, %v8287_v26  ;;  %v8288_v29 = vld [vmem:[#allocation103_spill] sm:$0xff]  ;;  %v8289_v39 = vld [vmem:[#allocation106_spill] sm:$0xff]  ;;  %v5186_v33 = vmul.f32 %v4888_v48, %v8137_v63 }
 0x385   :  { %v5174_v2 = vmul.f32 %v8288_v29, %v4888_v48  ;;  %v5178_v23 = vmul.f32 %v8289_v39, %v4888_v48  ;;  %v5190_v26 = vmul.f32 %v8138_v19, %v4888_v48  ;;  %v5194_v29 = vmul.f32 %v8139_v32, %v4888_v48 }
 0x386   :  { %v5198_v39 = vmul.f32 %v4888_v48, %v4194_v43  ;;  %v5202_v12 = vmul.f32 %v4888_v48, %v4201_v47  ;;  %v5206_v63 = vmul.f32 %v4191_v41, %v4888_v48  ;;  %v5210_v19 = vmul.f32 %v4196_v44, %v4888_v48 }
 0x387   :  { %v5214_v32 = vmul.f32 %v4888_v48, %v4214_v55  ;;  %v5218_v43 = vmul.f32 %v4888_v48, %v4221_v59  ;;  %v5222_v47 = vmul.f32 %v4211_v53, %v4888_v48  ;;  %v5226_v41 = vmul.f32 %v4216_v56, %v4888_v48 }
 0x388   :  { %v5230_v44 = vmul.f32 %v4888_v48, %v4234_v3  ;;  %v5234_v55 = vmul.f32 %v4888_v48, %v4241_v7  ;;  %v5238_v59 = vmul.f32 %v4231_v1, %v4888_v48  ;;  %v5242_v53 = vmul.f32 %v4236_v4, %v4888_v48 }
 0x389   :  { %v5246_v56 = vmul.f32 %v4888_v48, %v4254_v15  ;;  %v5250_v3 = vmul.f32 %v4888_v48, %v4261_v25  ;;  %v5254_v7 = vmul.f32 %v4251_v13, %v4888_v48  ;;  %v5258_v1 = vmul.f32 %v4256_v20, %v4888_v48 }
 0x38a   :  { %v5262_v4 = vmul.f32 %v4888_v48, %v4274_v49  ;;  %v5266_v15 = vmul.f32 %v4888_v48, %v4281_v61  ;;  %v5270_v25 = vmul.f32 %v4271_v42, %v4888_v48  ;;  %v5274_v13 = vmul.f32 %v4276_v52, %v4888_v48 }
 0x38b   :  { %v5278_v20 = vmul.f32 %v4888_v48, %v4294_v30  ;;  %v5282_v49 = vmul.f32 %v4888_v48, %v4301_v21  ;;  %v5286_v61 = vmul.f32 %v4291_v14, %v4888_v48  ;;  %v5290_v42 = vmul.f32 %v4296_v40, %v4888_v48 }
 0x38c   :  { %v5294_v52 = vmul.f32 %v4888_v48, %v4314_v28  ;;  %v5298_v30 = vmul.f32 %v4888_v48, %v4321_v5  ;;  %v5302_v21 = vmul.f32 %v4311_v54, %v4888_v48  ;;  %v5306_v14 = vmul.f32 %v4316_v10, %v4888_v48 }
 0x38d   :  { %v5310_v40 = vmul.f32 %v4888_v48, %v4334_v8  ;;  %v5314_v28 = vmul.f32 %v4888_v48, %v4341_v57 }
 0x38e   :  { %8290 = vst [vmem:[#allocation58_spill] sm:$0xff] %v5294_v52  ;;  %8291 = vst [vmem:[#allocation65_spill] sm:$0xff] %v5298_v30  ;;  %v8296_v52 = vld [vmem:[#allocation46_spill] sm:$0xff]  ;;  %v8298_v30 = vld [vmem:[#allocation47_spill] sm:$0xff] }
 0x38f   :  { %8292 = vst [vmem:[#allocation67_spill] sm:$0xff] %v5302_v21  ;;  %8293 = vst [vmem:[#allocation63_spill] sm:$0xff] %v5306_v14  ;;  %v5318_v5 = vmul.f32 %v8296_v52, %v4888_v48  ;;  %v5322_v54 = vmul.f32 %v8298_v30, %v4888_v48  ;;  %v8300_v21 = vld [vmem:[#allocation53_spill] sm:$0xff]  ;;  %v8302_v14 = vld [vmem:[#allocation56_spill] sm:$0xff] }
 0x390   :  { %8294 = vst [vmem:[#allocation66_spill] sm:$0xff] %v5310_v40  ;;  %8295 = vst [vmem:[#allocation73_spill] sm:$0xff] %v5314_v28  ;;  %v5326_v10 = vmul.f32 %v4888_v48, %v8300_v21  ;;  %v5330_v8 = vmul.f32 %v4888_v48, %v8302_v14  ;;  %v8304_v40 = vld [vmem:[#allocation52_spill] sm:$0xff]  ;;  %v8306_v28 = vld [vmem:[#allocation54_spill] sm:$0xff] }
 0x391   :  { %8297 = vst [vmem:[#allocation75_spill] sm:$0xff] %v5318_v5  ;;  %8299 = vst [vmem:[#allocation71_spill] sm:$0xff] %v5322_v54  ;;  %v5334_v57 = vmul.f32 %v8304_v40, %v4888_v48  ;;  %v5338_v52 = vmul.f32 %v8306_v28, %v4888_v48  ;;  %v8308_v5 = vld [vmem:[#allocation61_spill] sm:$0xff]  ;;  %v8310_v54 = vld [vmem:[#allocation64_spill] sm:$0xff] }
 0x392   :  { %8301 = vst [vmem:[#allocation74_spill] sm:$0xff] %v5326_v10  ;;  %8303 = vst [vmem:[#allocation81_spill] sm:$0xff] %v5330_v8  ;;  %v5342_v30 = vmul.f32 %v4888_v48, %v8308_v5  ;;  %v5346_v21 = vmul.f32 %v4888_v48, %v8310_v54  ;;  %v8312_v10 = vld [vmem:[#allocation60_spill] sm:$0xff]  ;;  %v8314_v8 = vld [vmem:[#allocation62_spill] sm:$0xff] }
 0x393   :  { %8305 = vst [vmem:[#allocation83_spill] sm:$0xff] %v5334_v57  ;;  %8307 = vst [vmem:[#allocation79_spill] sm:$0xff] %v5338_v52  ;;  %v5350_v14 = vmul.f32 %v8312_v10, %v4888_v48  ;;  %v5354_v40 = vmul.f32 %v8314_v8, %v4888_v48  ;;  %v8315_v57 = vld [vmem:[#allocation69_spill] sm:$0xff]  ;;  %v8317_v52 = vld [vmem:[#allocation72_spill] sm:$0xff] }
 0x394   :  { %8309 = vst [vmem:[#allocation82_spill] sm:$0xff] %v5342_v30  ;;  %8311 = vst [vmem:[#allocation89_spill] sm:$0xff] %v5346_v21  ;;  %v5358_v28 = vmul.f32 %v4888_v48, %v8315_v57  ;;  %v5362_v5 = vmul.f32 %v4888_v48, %v8317_v52  ;;  %v8319_v30 = vld [vmem:[#allocation68_spill] sm:$0xff]  ;;  %v8321_v21 = vld [vmem:[#allocation70_spill] sm:$0xff]  ;;  %v5378_v57 = vmul.f32 %v4888_v48, %v8049_v22 }
 0x395   :  { %8313 = vst [vmem:[#allocation91_spill] sm:$0xff] %v5350_v14  ;;  %v5366_v54 = vmul.f32 %v8319_v30, %v4888_v48  ;;  %v5370_v10 = vmul.f32 %v8321_v21, %v4888_v48  ;;  %v8323_v14 = vld [vmem:[#allocation77_spill] sm:$0xff] }
 0x396   :  { %8316 = vst [vmem:[#allocation87_spill] sm:$0xff] %v5358_v28  ;;  %8318 = vst [vmem:[#allocation90_spill] sm:$0xff] %v5362_v5  ;;  %v5374_v8 = vmul.f32 %v4888_v48, %v8323_v14  ;;  %v8326_v28 = vld [vmem:[#allocation76_spill] sm:$0xff]  ;;  %v8328_v5 = vld [vmem:[#allocation78_spill] sm:$0xff] }
 0x397   :  { %8320 = vst [vmem:[#allocation97_spill] sm:$0xff] %v5366_v54  ;;  %8322 = vst [vmem:[#allocation99_spill] sm:$0xff] %v5370_v10  ;;  %v5382_v52 = vmul.f32 %v8326_v28, %v4888_v48  ;;  %v5386_v30 = vmul.f32 %v8328_v5, %v4888_v48  ;;  %v8330_v54 = vld [vmem:[#allocation85_spill] sm:$0xff]  ;;  %v8332_v10 = vld [vmem:[#allocation88_spill] sm:$0xff] }
 0x398   :  { %8324 = vst [vmem:[#allocation95_spill] sm:$0xff] %v5374_v8  ;;  %8325 = vst [vmem:[#allocation98_spill] sm:$0xff] %v5378_v57  ;;  %v5390_v21 = vmul.f32 %v4888_v48, %v8330_v54  ;;  %v5394_v14 = vmul.f32 %v4888_v48, %v8332_v10  ;;  %v8334_v8 = vld [vmem:[#allocation84_spill] sm:$0xff]  ;;  %v8336_v57 = vld [vmem:[#allocation86_spill] sm:$0xff] }
 0x399   :  { %8327 = vst [vmem:[#allocation105_spill] sm:$0xff] %v5382_v52  ;;  %8329 = vst [vmem:[#allocation107_spill] sm:$0xff] %v5386_v30  ;;  %v5398_v22 = vmul.f32 %v8334_v8, %v4888_v48  ;;  %v5402_v28 = vmul.f32 %v8336_v57, %v4888_v48  ;;  %v8338_v52 = vld [vmem:[#allocation93_spill] sm:$0xff]  ;;  %v8340_v30 = vld [vmem:[#allocation96_spill] sm:$0xff] }
 0x39a   :  { %8331 = vst [vmem:[#allocation103_spill] sm:$0xff] %v5390_v21  ;;  %8333 = vst [vmem:[#allocation106_spill] sm:$0xff] %v5394_v14  ;;  %v5406_v5 = vmul.f32 %v4888_v48, %v8338_v52  ;;  %v5410_v54 = vmul.f32 %v4888_v48, %v8340_v30  ;;  %v8342_v21 = vld [vmem:[#allocation92_spill] sm:$0xff]  ;;  %v8344_v14 = vld [vmem:[#allocation94_spill] sm:$0xff] }
 0x39b   :  { %8335 = vst [vmem:[#allocation46_spill] sm:$0xff] %v5398_v22  ;;  %8337 = vst [vmem:[#allocation47_spill] sm:$0xff] %v5402_v28  ;;  %v5414_v10 = vmul.f32 %v8342_v21, %v4888_v48  ;;  %v5418_v8 = vmul.f32 %v8344_v14, %v4888_v48  ;;  %v8346_v22 = vld [vmem:[#allocation101_spill] sm:$0xff]  ;;  %v8348_v28 = vld [vmem:[#allocation104_spill] sm:$0xff] }
 0x39c   :  { %8339 = vst [vmem:[#allocation53_spill] sm:$0xff] %v5406_v5  ;;  %8341 = vst [vmem:[#allocation56_spill] sm:$0xff] %v5410_v54  ;;  %v5422_v57 = vmul.f32 %v4888_v48, %v8346_v22  ;;  %v5426_v52 = vmul.f32 %v4888_v48, %v8348_v28  ;;  %v8350_v5 = vld [vmem:[#allocation100_spill] sm:$0xff]  ;;  %v8352_v54 = vld [vmem:[#allocation102_spill] sm:$0xff] }
 0x39d   :  { %8343 = vst [vmem:[#allocation52_spill] sm:$0xff] %v5414_v10  ;;  %8345 = vst [vmem:[#allocation54_spill] sm:$0xff] %v5418_v8  ;;  %v5430_v30 = vmul.f32 %v8350_v5, %v4888_v48  ;;  %v5434_v21 = vmul.f32 %v8352_v54, %v4888_v48  ;;  %v8354_v10 = vld [vmem:[#allocation109_spill] sm:$0xff]  ;;  %v8356_v8 = vld [vmem:[#allocation111_spill] sm:$0xff] }
 0x39e   :  { %8347 = vst [vmem:[#allocation61_spill] sm:$0xff] %v5422_v57  ;;  %8349 = vst [vmem:[#allocation64_spill] sm:$0xff] %v5426_v52  ;;  %v5438_v14 = vmul.f32 %v4888_v48, %v8354_v10  ;;  %v5442_v22 = vmul.f32 %v4888_v48, %v8356_v8  ;;  %v8358_v57 = vld [vmem:[#allocation108_spill] sm:$0xff]  ;;  %v8360_v52 = vld [vmem:[#allocation110_spill] sm:$0xff] }
 0x39f   :  { %8351 = vst [vmem:[#allocation60_spill] sm:$0xff] %v5430_v30  ;;  %8353 = vst [vmem:[#allocation62_spill] sm:$0xff] %v5434_v21  ;;  %v5446_v28 = vmul.f32 %v8358_v57, %v4888_v48  ;;  %v5450_v5 = vmul.f32 %v8360_v52, %v4888_v48  ;;  %v8362_v30 = vld [vmem:[#allocation113_spill] sm:$0xff]  ;;  %v8363_v21 = vld [vmem:[#allocation115_spill] sm:$0xff]  ;;  %v8367_v52 = vsub.f32 %v4881_v58, %v4884_v35 }
 0x3a0   :  { %8355 = vst [vmem:[#allocation69_spill] sm:$0xff] %v5438_v14  ;;  %8357 = vst [vmem:[#allocation72_spill] sm:$0xff] %v5442_v22  ;;  %v5454_v54 = vmul.f32 %v4888_v48, %v8362_v30  ;;  %v5458_v10 = vmul.f32 %v4888_v48, %v8363_v21  ;;  %v8364_v14 = vld [vmem:[#allocation112_spill] sm:$0xff]  ;;  %v8365_v22 = vld [vmem:[#allocation114_spill] sm:$0xff] }
 0x3a1   :  { %8359 = vst [vmem:[#allocation68_spill] sm:$0xff] %v5446_v28  ;;  %8361 = vst [vmem:[#allocation70_spill] sm:$0xff] %v5450_v5  ;;  %v5462_v8 = vmul.f32 %v8364_v14, %v4888_v48  ;;  %v5466_v57 = vmul.f32 %v8365_v22, %v4888_v48  ;;  %v8366_v28 = vsub.s32 0, %v4833_v50  ;;  %v8373_v22 = vld [vmem:[#allocation14_spill] sm:$0xff] }
 0x3a3   :  { %v5473_v5 = vrot.slane %v8367_v52, %v8366_v28  ;;  %v8375_v28 = vld [vmem:[#allocation10_spill] sm:$0xff]  ;;  %v8377_v52 = vld [vmem:[#allocation12_spill] sm:$0xff] }
 0x3a5   :  { %v5477_v30 = vadd.f32 %v5473_v5, %v4894_v17  ;;  %v5481_v21 = vadd.f32 %v5473_v5, %v4898_v18  ;;  %v5485_v14 = vadd.f32 %v5473_v5, %v4902_v6  ;;  %v5489_v50 = vadd.f32 %v5473_v5, %v4906_v45 }
 0x3a6   :  { %v5493_v58 = vadd.f32 %v5473_v5, %v4910_v60  ;;  %v5497_v35 = vadd.f32 %v5473_v5, %v4914_v11  ;;  %v5501_v48 = vadd.f32 %v5473_v5, %v4918_v16  ;;  %v5505_v17 = vadd.f32 %v5473_v5, %v4922_v0  ;;  %v8369_v0 = vld [vmem:[#allocation80_spill] sm:$0xff] }
 0x3a7   :  { %v5509_v18 = vadd.f32 %v5473_v5, %v4926_v24  ;;  %v5513_v6 = vadd.f32 %v5473_v5, %v4930_v46  ;;  %v5517_v45 = vadd.f32 %v5473_v5, %v4934_v62  ;;  %v5521_v60 = vadd.f32 %v5473_v5, %v4938_v51  ;;  %v8371_v46 = vld [vmem:[#allocation11_spill] sm:$0xff] }
 0x3a8   :  { %v5525_v11 = vadd.f32 %v5473_v5, %v4942_v27  ;;  %v5529_v16 = vadd.f32 %v5473_v5, %v4946_v34  ;;  %v5533_v24 = vadd.f32 %v5473_v5, %v8369_v0  ;;  %v5537_v62 = vadd.f32 %v5473_v5, %v8371_v46 }
 0x3a9   :  { %v5541_v51 = vadd.f32 %v5473_v5, %v8373_v22  ;;  %v5545_v27 = vadd.f32 %v5473_v5, %v8375_v28  ;;  %v5549_v34 = vadd.f32 %v5473_v5, %v8377_v52  ;;  %vm2883_vm1 = vcmp.ge.f32.partialorder %v5477_v30, 0.0 }
 0x3aa   :  { %8368 = vst [vmem:[#allocation77_spill] sm:$0xff] %v5529_v16  ;;  %8370 = vst [vmem:[#allocation76_spill] sm:$0xff] %v5533_v24  ;;  %v8379_v16 = vld [vmem:[#allocation3_spill] sm:$0xff]  ;;  %v8381_v24 = vld [vmem:[#allocation5_spill] sm:$0xff]  ;;  %vm2884_vm2 = vcmp.ge.f32.partialorder %v5481_v21, 0.0  ;;  %vm2885_vm3 = vcmp.ge.f32.partialorder %v5485_v14, 0.0 }
 0x3ab   :  { %8372 = vst [vmem:[#allocation78_spill] sm:$0xff] %v5537_v62  ;;  %8374 = vst [vmem:[#allocation85_spill] sm:$0xff] %v5541_v51  ;;  %v5553_v0 = vadd.f32 %v5473_v5, %v8379_v16  ;;  %v5557_v46 = vadd.f32 %v5473_v5, %v8381_v24  ;;  %v8383_v62 = vld [vmem:[#allocation2_spill] sm:$0xff]  ;;  %v8385_v51 = vld [vmem:[#allocation4_spill] sm:$0xff]  ;;  %vm2886_vm4 = vcmp.ge.f32.partialorder %v5489_v50, 0.0  ;;  %vm2887_vm5 = vcmp.ge.f32.partialorder %v5493_v58, 0.0 }
 0x3ac   :  { %8376 = vst [vmem:[#allocation88_spill] sm:$0xff] %v5545_v27  ;;  %8378 = vst [vmem:[#allocation84_spill] sm:$0xff] %v5549_v34  ;;  %v5561_v22 = vadd.f32 %v5473_v5, %v8383_v62  ;;  %v5565_v28 = vadd.f32 %v5473_v5, %v8385_v51  ;;  %v8387_v27 = vld [vmem:[#allocation7_spill] sm:$0xff]  ;;  %v8389_v34 = vld [vmem:[#allocation9_spill] sm:$0xff]  ;;  %vm2888_vm6 = vcmp.ge.f32.partialorder %v5497_v35, 0.0  ;;  %vm2889_vm7 = vcmp.ge.f32.partialorder %v5501_v48, 0.0 }
 0x3ad   :  { %8380 = vst [vmem:[#allocation86_spill] sm:$0xff] %v5553_v0  ;;  %8382 = vst [vmem:[#allocation93_spill] sm:$0xff] %v5557_v46  ;;  %v5569_v52 = vadd.f32 %v5473_v5, %v8387_v27  ;;  %v5573_v16 = vadd.f32 %v5473_v5, %v8389_v34  ;;  %v8391_v0 = vld [vmem:[#allocation6_spill] sm:$0xff]  ;;  %v8393_v46 = vld [vmem:[#allocation8_spill] sm:$0xff]  ;;  %vm2890_vm8 = vcmp.ge.f32.partialorder %v5505_v17, 0.0  ;;  %vm2891_vm9 = vcmp.ge.f32.partialorder %v5509_v18, 0.0 }
 0x3ae   :  { %8384 = vst [vmem:[#allocation96_spill] sm:$0xff] %v5561_v22  ;;  %8386 = vst [vmem:[#allocation92_spill] sm:$0xff] %v5565_v28  ;;  %v5577_v24 = vadd.f32 %v5473_v5, %v8391_v0  ;;  %v5581_v62 = vadd.f32 %v5473_v5, %v8393_v46  ;;  %v8395_v22 = vld [vmem:[#allocation15_spill] sm:$0xff]  ;;  %v8397_v28 = vld [vmem:[#allocation17_spill] sm:$0xff]  ;;  %vm2892_vm10 = vcmp.ge.f32.partialorder %v5513_v6, 0.0  ;;  %vm2893_vm11 = vcmp.ge.f32.partialorder %v5517_v45, 0.0 }
 0x3af   :  { %8388 = vst [vmem:[#allocation94_spill] sm:$0xff] %v5569_v52  ;;  %8390 = vst [vmem:[#allocation101_spill] sm:$0xff] %v5573_v16  ;;  %v5585_v51 = vadd.f32 %v5473_v5, %v8395_v22  ;;  %v5589_v27 = vadd.f32 %v5473_v5, %v8397_v28  ;;  %v8399_v52 = vld [vmem:[#allocation13_spill] sm:$0xff]  ;;  %v8401_v16 = vld [vmem:[#allocation16_spill] sm:$0xff]  ;;  %vm2894_vm12 = vcmp.ge.f32.partialorder %v5521_v60, 0.0  ;;  %vm2895_vm13 = vcmp.ge.f32.partialorder %v5525_v11, 0.0 }
 0x3b0   :  { %8392 = vst [vmem:[#allocation104_spill] sm:$0xff] %v5577_v24  ;;  %8394 = vst [vmem:[#allocation100_spill] sm:$0xff] %v5581_v62  ;;  %v5593_v34 = vadd.f32 %v5473_v5, %v8399_v52  ;;  %v5597_v0 = vadd.f32 %v5473_v5, %v8401_v16  ;;  %v8403_v24 = vld [vmem:[#allocation19_spill] sm:$0xff]  ;;  %v8405_v62 = vld [vmem:[#allocation21_spill] sm:$0xff] }
 0x3b1   :  { %8396 = vst [vmem:[#allocation102_spill] sm:$0xff] %v5585_v51  ;;  %8398 = vst [vmem:[#allocation109_spill] sm:$0xff] %v5589_v27  ;;  %v5601_v46 = vadd.f32 %v5473_v5, %v8403_v24  ;;  %v5605_v22 = vadd.f32 %v5473_v5, %v8405_v62  ;;  %v8407_v51 = vld [vmem:[#allocation18_spill] sm:$0xff]  ;;  %v8409_v27 = vld [vmem:[#allocation20_spill] sm:$0xff] }
 0x3b2   :  { %8400 = vst [vmem:[#allocation111_spill] sm:$0xff] %v5593_v34  ;;  %8402 = vst [vmem:[#allocation108_spill] sm:$0xff] %v5597_v0  ;;  %v5609_v28 = vadd.f32 %v5473_v5, %v8407_v51  ;;  %v5613_v52 = vadd.f32 %v5473_v5, %v8409_v27  ;;  %v8411_v34 = vld [vmem:[#allocation23_spill] sm:$0xff]  ;;  %v8413_v0 = vld [vmem:[#allocation25_spill] sm:$0xff] }
 0x3b3   :  { %8404 = vst [vmem:[#allocation110_spill] sm:$0xff] %v5601_v46  ;;  %8406 = vst [vmem:[#allocation113_spill] sm:$0xff] %v5605_v22  ;;  %v5617_v16 = vadd.f32 %v5473_v5, %v8411_v34  ;;  %v5621_v24 = vadd.f32 %v5473_v5, %v8413_v0  ;;  %v8415_v46 = vld [vmem:[#allocation22_spill] sm:$0xff]  ;;  %v8417_v22 = vld [vmem:[#allocation24_spill] sm:$0xff] }
 0x3b4   :  { %8408 = vst [vmem:[#allocation115_spill] sm:$0xff] %v5609_v28  ;;  %8410 = vst [vmem:[#allocation112_spill] sm:$0xff] %v5613_v52  ;;  %v5625_v62 = vadd.f32 %v5473_v5, %v8415_v46  ;;  %v5629_v51 = vadd.f32 %v5473_v5, %v8417_v22  ;;  %v8419_v28 = vld [vmem:[#allocation27_spill] sm:$0xff]  ;;  %v8421_v52 = vld [vmem:[#allocation29_spill] sm:$0xff] }
 0x3b5   :  { %8412 = vst [vmem:[#allocation114_spill] sm:$0xff] %v5617_v16  ;;  %8414 = vst [vmem:[#allocation80_spill] sm:$0xff] %v5621_v24  ;;  %v5633_v27 = vadd.f32 %v5473_v5, %v8419_v28  ;;  %v5637_v34 = vadd.f32 %v5473_v5, %v8421_v52  ;;  %v8423_v16 = vld [vmem:[#allocation26_spill] sm:$0xff]  ;;  %v8425_v24 = vld [vmem:[#allocation28_spill] sm:$0xff] }
 0x3b6   :  { %8416 = vst [vmem:[#allocation11_spill] sm:$0xff] %v5625_v62  ;;  %8418 = vst [vmem:[#allocation14_spill] sm:$0xff] %v5629_v51  ;;  %v5641_v0 = vadd.f32 %v5473_v5, %v8423_v16  ;;  %v5645_v46 = vadd.f32 %v5473_v5, %v8425_v24  ;;  %v8427_v62 = vld [vmem:[#allocation31_spill] sm:$0xff]  ;;  %v8429_v51 = vld [vmem:[#allocation33_spill] sm:$0xff] }
 0x3b7   :  { %8420 = vst [vmem:[#allocation10_spill] sm:$0xff] %v5633_v27  ;;  %8422 = vst [vmem:[#allocation12_spill] sm:$0xff] %v5637_v34  ;;  %v5649_v22 = vadd.f32 %v5473_v5, %v8427_v62  ;;  %v5653_v28 = vadd.f32 %v5473_v5, %v8429_v51  ;;  %v8431_v27 = vld [vmem:[#allocation30_spill] sm:$0xff]  ;;  %v8433_v34 = vld [vmem:[#allocation32_spill] sm:$0xff] }
 0x3b8   :  { %8424 = vst [vmem:[#allocation3_spill] sm:$0xff] %v5641_v0  ;;  %8426 = vst [vmem:[#allocation5_spill] sm:$0xff] %v5645_v46  ;;  %v5657_v52 = vadd.f32 %v5473_v5, %v8431_v27  ;;  %v5661_v16 = vadd.f32 %v5473_v5, %v8433_v34  ;;  %v8435_v0 = vld [vmem:[#allocation35_spill] sm:$0xff]  ;;  %v8437_v46 = vld [vmem:[#allocation37_spill] sm:$0xff] }
 0x3b9   :  { %8428 = vst [vmem:[#allocation2_spill] sm:$0xff] %v5649_v22  ;;  %8430 = vst [vmem:[#allocation4_spill] sm:$0xff] %v5653_v28  ;;  %v5665_v24 = vadd.f32 %v5473_v5, %v8435_v0  ;;  %v5669_v62 = vadd.f32 %v5473_v5, %v8437_v46  ;;  %v8439_v22 = vld [vmem:[#allocation34_spill] sm:$0xff]  ;;  %v8441_v28 = vld [vmem:[#allocation36_spill] sm:$0xff] }
 0x3ba   :  { %8432 = vst [vmem:[#allocation7_spill] sm:$0xff] %v5657_v52  ;;  %8434 = vst [vmem:[#allocation9_spill] sm:$0xff] %v5661_v16  ;;  %v5673_v51 = vadd.f32 %v5473_v5, %v8439_v22  ;;  %v5677_v27 = vadd.f32 %v5473_v5, %v8441_v28  ;;  %v8443_v52 = vld [vmem:[#allocation39_spill] sm:$0xff]  ;;  %v8445_v16 = vld [vmem:[#allocation41_spill] sm:$0xff] }
 0x3bb   :  { %8436 = vst [vmem:[#allocation6_spill] sm:$0xff] %v5665_v24  ;;  %8438 = vst [vmem:[#allocation8_spill] sm:$0xff] %v5669_v62  ;;  %v5681_v34 = vadd.f32 %v5473_v5, %v8443_v52  ;;  %v5685_v0 = vadd.f32 %v5473_v5, %v8445_v16  ;;  %v8447_v24 = vld [vmem:[#allocation38_spill] sm:$0xff]  ;;  %v8449_v62 = vld [vmem:[#allocation40_spill] sm:$0xff] }
 0x3bc   :  { %8440 = vst [vmem:[#allocation15_spill] sm:$0xff] %v5673_v51  ;;  %8442 = vst [vmem:[#allocation17_spill] sm:$0xff] %v5677_v27  ;;  %v5689_v46 = vadd.f32 %v5473_v5, %v8447_v24  ;;  %v5693_v22 = vadd.f32 %v5473_v5, %v8449_v62  ;;  %v8451_v51 = vld [vmem:[#allocation43_spill] sm:$0xff]  ;;  %v8453_v27 = vld [vmem:[#allocation45_spill] sm:$0xff] }
 0x3bd   :  { %8444 = vst [vmem:[#allocation13_spill] sm:$0xff] %v5681_v34  ;;  %8446 = vst [vmem:[#allocation16_spill] sm:$0xff] %v5685_v0  ;;  %v5697_v28 = vadd.f32 %v5473_v5, %v8451_v51  ;;  %v5701_v52 = vadd.f32 %v5473_v5, %v8453_v27  ;;  %v8455_v34 = vld [vmem:[#allocation42_spill] sm:$0xff]  ;;  %v8457_v0 = vld [vmem:[#allocation44_spill] sm:$0xff] }
 0x3be   :  { %8448 = vst [vmem:[#allocation19_spill] sm:$0xff] %v5689_v46  ;;  %8450 = vst [vmem:[#allocation21_spill] sm:$0xff] %v5693_v22  ;;  %v5705_v16 = vadd.f32 %v5473_v5, %v8455_v34  ;;  %v5709_v24 = vadd.f32 %v5473_v5, %v8457_v0  ;;  %v8459_v46 = vld [vmem:[#allocation49_spill] sm:$0xff]  ;;  %v8461_v22 = vld [vmem:[#allocation51_spill] sm:$0xff] }
 0x3bf   :  { %8452 = vst [vmem:[#allocation18_spill] sm:$0xff] %v5697_v28  ;;  %8454 = vst [vmem:[#allocation20_spill] sm:$0xff] %v5701_v52  ;;  %v5713_v62 = vadd.f32 %v5473_v5, %v8459_v46  ;;  %v5717_v51 = vadd.f32 %v5473_v5, %v8461_v22  ;;  %v8462_v28 = vld [vmem:[#allocation48_spill] sm:$0xff]  ;;  %v8463_v52 = vld [vmem:[#allocation50_spill] sm:$0xff] }
 0x3c0   :  { %8456 = vst [vmem:[#allocation23_spill] sm:$0xff] %v5705_v16  ;;  %8458 = vst [vmem:[#allocation25_spill] sm:$0xff] %v5709_v24  ;;  %v5721_v27 = vadd.f32 %v5473_v5, %v8462_v28  ;;  %v5725_v34 = vadd.f32 %v5473_v5, %v8463_v52  ;;  %v8464_v16 = vld [vmem:[#allocation57_spill] sm:$0xff]  ;;  %v8465_v24 = vld [vmem:[#allocation59_spill] sm:$0xff]  ;;  %v5741_v28 = vadd.f32 %v5473_v5, %v5158_v9 }
 0x3c1   :  { %8460 = vst [vmem:[#allocation22_spill] sm:$0xff] %v5713_v62  ;;  %v5729_v0 = vadd.f32 %v5473_v5, %v8464_v16  ;;  %v5733_v46 = vadd.f32 %v5473_v5, %v8465_v24  ;;  %v8466_v62 = vld [vmem:[#allocation55_spill] sm:$0xff]  ;;  %v5745_v52 = vadd.f32 %v5473_v5, %v5162_v38  ;;  %v5749_v16 = vadd.f32 %v5473_v5, %v5166_v31 }
 0x3c2   :  { %v5737_v22 = vadd.f32 %v5473_v5, %v8466_v62  ;;  %v5753_v24 = vadd.f32 %v5473_v5, %v5170_v37  ;;  %v5757_v62 = vadd.f32 %v5473_v5, %v5174_v2  ;;  %v5761_v9 = vadd.f32 %v5473_v5, %v5178_v23 }
 0x3c3   :  { %v5765_v38 = vadd.f32 %v5473_v5, %v5182_v36  ;;  %v5769_v31 = vadd.f32 %v5473_v5, %v5186_v33  ;;  %v5773_v37 = vadd.f32 %v5473_v5, %v5190_v26  ;;  %v5777_v2 = vadd.f32 %v5473_v5, %v5194_v29 }
 0x3c4   :  { %v5781_v23 = vadd.f32 %v5473_v5, %v5198_v39  ;;  %v5785_v36 = vadd.f32 %v5473_v5, %v5202_v12  ;;  %v5789_v33 = vadd.f32 %v5473_v5, %v5206_v63  ;;  %v5793_v26 = vadd.f32 %v5473_v5, %v5210_v19 }
 0x3c5   :  { %8467 = vst [vmem:[#allocation24_spill] sm:$0xff] %v5777_v2  ;;  %v5797_v29 = vadd.f32 %v5473_v5, %v5214_v32  ;;  %v5801_v39 = vadd.f32 %v5473_v5, %v5218_v43  ;;  %v5805_v12 = vadd.f32 %v5473_v5, %v5222_v47  ;;  %v5809_v63 = vadd.f32 %v5473_v5, %v5226_v41 }
 0x3c6   :  { %8468 = vst [vmem:[#allocation27_spill] sm:$0xff] %v5781_v23  ;;  %8469 = vst [vmem:[#allocation29_spill] sm:$0xff] %v5785_v36  ;;  %v5813_v19 = vadd.f32 %v5473_v5, %v5230_v44  ;;  %v5817_v32 = vadd.f32 %v5473_v5, %v5234_v55  ;;  %v5821_v43 = vadd.f32 %v5473_v5, %v5238_v59 }
 0x3c7   :  { %8470 = vst [vmem:[#allocation26_spill] sm:$0xff] %v5789_v33  ;;  %8471 = vst [vmem:[#allocation28_spill] sm:$0xff] %v5793_v26  ;;  %v5825_v47 = vadd.f32 %v5473_v5, %v5242_v53  ;;  %v5829_v41 = vadd.f32 %v5473_v5, %v5246_v56  ;;  %v5833_v44 = vadd.f32 %v5473_v5, %v5250_v3  ;;  %v8591_v26 = vld [vmem:[#allocation100_spill] sm:$0xff] }
 0x3c8   :  { %8472 = vst [vmem:[#allocation31_spill] sm:$0xff] %v5797_v29  ;;  %8473 = vst [vmem:[#allocation33_spill] sm:$0xff] %v5801_v39  ;;  %v5837_v55 = vadd.f32 %v5473_v5, %v5254_v7  ;;  %v5841_v59 = vadd.f32 %v5473_v5, %v5258_v1  ;;  %v5845_v53 = vadd.f32 %v5473_v5, %v5262_v4  ;;  %v6157_v33 = vmul.f32 0.3, %v8591_v26 }
 0x3c9   :  { %8474 = vst [vmem:[#allocation30_spill] sm:$0xff] %v5805_v12  ;;  %8475 = vst [vmem:[#allocation32_spill] sm:$0xff] %v5809_v63  ;;  %v5849_v56 = vadd.f32 %v5473_v5, %v5266_v15  ;;  %v5853_v3 = vadd.f32 %v5473_v5, %v5270_v25  ;;  %v5857_v7 = vadd.f32 %v5473_v5, %v5274_v13  ;;  %v8585_v63 = vld [vmem:[#allocation94_spill] sm:$0xff] }
 0x3ca   :  { %8476 = vst [vmem:[#allocation35_spill] sm:$0xff] %v5813_v19  ;;  %8477 = vst [vmem:[#allocation37_spill] sm:$0xff] %v5817_v32  ;;  %v5861_v1 = vadd.f32 %v5473_v5, %v5278_v20  ;;  %v5865_v4 = vadd.f32 %v5473_v5, %v5282_v49  ;;  %v5869_v15 = vadd.f32 %v5473_v5, %v5286_v61  ;;  %v6141_v12 = vmul.f32 0.3, %v8585_v63 }
 0x3cb   :  { %8478 = vst [vmem:[#allocation34_spill] sm:$0xff] %v5821_v43  ;;  %8479 = vst [vmem:[#allocation36_spill] sm:$0xff] %v5825_v47  ;;  %v5873_v25 = vadd.f32 %v5473_v5, %v5290_v42  ;;  %v8582_v47 = vld [vmem:[#allocation93_spill] sm:$0xff] }
 0x3cc   :  { %8480 = vst [vmem:[#allocation39_spill] sm:$0xff] %v5829_v41  ;;  %8481 = vst [vmem:[#allocation41_spill] sm:$0xff] %v5833_v44  ;;  %v6125_v43 = vmul.f32 0.3, %v8582_v47 }
 0x3cd   :  { %8482 = vst [vmem:[#allocation38_spill] sm:$0xff] %v5837_v55  ;;  %8483 = vst [vmem:[#allocation40_spill] sm:$0xff] %v5841_v59  ;;  %v8579_v59 = vld [vmem:[#allocation88_spill] sm:$0xff] }
 0x3ce   :  { %8484 = vst [vmem:[#allocation43_spill] sm:$0xff] %v5845_v53  ;;  %8485 = vst [vmem:[#allocation45_spill] sm:$0xff] %v5849_v56  ;;  %v6109_v55 = vmul.f32 0.3, %v8579_v59 }
 0x3cf   :  { %8486 = vst [vmem:[#allocation42_spill] sm:$0xff] %v5853_v3  ;;  %8487 = vst [vmem:[#allocation44_spill] sm:$0xff] %v5857_v7  ;;  %v8492_v3 = vld [vmem:[#allocation58_spill] sm:$0xff]  ;;  %v8494_v7 = vld [vmem:[#allocation65_spill] sm:$0xff] }
 0x3d0   :  { %8488 = vst [vmem:[#allocation49_spill] sm:$0xff] %v5861_v1  ;;  %8489 = vst [vmem:[#allocation51_spill] sm:$0xff] %v5865_v4  ;;  %v5877_v13 = vadd.f32 %v5473_v5, %v8492_v3  ;;  %v5881_v20 = vadd.f32 %v5473_v5, %v8494_v7  ;;  %v8496_v1 = vld [vmem:[#allocation67_spill] sm:$0xff] }
 0x3d1   :  { %8490 = vst [vmem:[#allocation48_spill] sm:$0xff] %v5869_v15  ;;  %8491 = vst [vmem:[#allocation50_spill] sm:$0xff] %v5873_v25  ;;  %v5885_v49 = vadd.f32 %v5473_v5, %v8496_v1  ;;  %v8498_v4 = vld [vmem:[#allocation63_spill] sm:$0xff]  ;;  %v8500_v15 = vld [vmem:[#allocation66_spill] sm:$0xff] }
 0x3d2   :  { %8493 = vst [vmem:[#allocation57_spill] sm:$0xff] %v5877_v13  ;;  %8495 = vst [vmem:[#allocation59_spill] sm:$0xff] %v5881_v20  ;;  %v5889_v61 = vadd.f32 %v5473_v5, %v8498_v4  ;;  %v5893_v42 = vadd.f32 %v5473_v5, %v8500_v15  ;;  %v8502_v25 = vld [vmem:[#allocation73_spill] sm:$0xff]  ;;  %v8504_v13 = vld [vmem:[#allocation75_spill] sm:$0xff] }
 0x3d3   :  { %8497 = vst [vmem:[#allocation55_spill] sm:$0xff] %v5885_v49  ;;  %v5897_v3 = vadd.f32 %v5473_v5, %v8502_v25  ;;  %v5901_v7 = vadd.f32 %v5473_v5, %v8504_v13  ;;  %v8506_v20 = vld [vmem:[#allocation71_spill] sm:$0xff]  ;;  %v8508_v49 = vld [vmem:[#allocation74_spill] sm:$0xff] }
 0x3d4   :  { %8499 = vst [vmem:[#allocation58_spill] sm:$0xff] %v5889_v61  ;;  %8501 = vst [vmem:[#allocation65_spill] sm:$0xff] %v5893_v42  ;;  %v5905_v1 = vadd.f32 %v5473_v5, %v8506_v20  ;;  %v5909_v4 = vadd.f32 %v5473_v5, %v8508_v49  ;;  %v8510_v61 = vld [vmem:[#allocation81_spill] sm:$0xff]  ;;  %v8512_v42 = vld [vmem:[#allocation83_spill] sm:$0xff] }
 0x3d5   :  { %8503 = vst [vmem:[#allocation67_spill] sm:$0xff] %v5897_v3  ;;  %8505 = vst [vmem:[#allocation63_spill] sm:$0xff] %v5901_v7  ;;  %v5913_v15 = vadd.f32 %v5473_v5, %v8510_v61  ;;  %v5917_v25 = vadd.f32 %v5473_v5, %v8512_v42  ;;  %v8514_v3 = vld [vmem:[#allocation79_spill] sm:$0xff]  ;;  %v8516_v7 = vld [vmem:[#allocation82_spill] sm:$0xff]  ;;  %v5937_v42 = vadd.f32 %v5473_v5, %v5354_v40 }
 0x3d6   :  { %8507 = vst [vmem:[#allocation66_spill] sm:$0xff] %v5905_v1  ;;  %8509 = vst [vmem:[#allocation73_spill] sm:$0xff] %v5909_v4  ;;  %v5921_v13 = vadd.f32 %v5473_v5, %v8514_v3  ;;  %v5925_v20 = vadd.f32 %v5473_v5, %v8516_v7  ;;  %v8518_v1 = vld [vmem:[#allocation89_spill] sm:$0xff]  ;;  %v8520_v4 = vld [vmem:[#allocation91_spill] sm:$0xff] }
 0x3d7   :  { %8511 = vst [vmem:[#allocation75_spill] sm:$0xff] %v5913_v15  ;;  %8513 = vst [vmem:[#allocation71_spill] sm:$0xff] %v5917_v25  ;;  %v5929_v49 = vadd.f32 %v5473_v5, %v8518_v1  ;;  %v5933_v61 = vadd.f32 %v5473_v5, %v8520_v4  ;;  %v8523_v25 = vld [vmem:[#allocation87_spill] sm:$0xff] }
 0x3d8   :  { %8515 = vst [vmem:[#allocation74_spill] sm:$0xff] %v5921_v13  ;;  %8517 = vst [vmem:[#allocation81_spill] sm:$0xff] %v5925_v20  ;;  %v5941_v3 = vadd.f32 %v5473_v5, %v8523_v25  ;;  %v8525_v13 = vld [vmem:[#allocation90_spill] sm:$0xff]  ;;  %v8527_v20 = vld [vmem:[#allocation97_spill] sm:$0xff] }
 0x3d9   :  { %8519 = vst [vmem:[#allocation83_spill] sm:$0xff] %v5929_v49  ;;  %8521 = vst [vmem:[#allocation79_spill] sm:$0xff] %v5933_v61  ;;  %v5945_v7 = vadd.f32 %v5473_v5, %v8525_v13  ;;  %v5949_v1 = vadd.f32 %v5473_v5, %v8527_v20  ;;  %v8529_v49 = vld [vmem:[#allocation99_spill] sm:$0xff] }
 0x3da   :  { %8522 = vst [vmem:[#allocation82_spill] sm:$0xff] %v5937_v42  ;;  %8524 = vst [vmem:[#allocation89_spill] sm:$0xff] %v5941_v3  ;;  %v5953_v4 = vadd.f32 %v5473_v5, %v8529_v49  ;;  %v8531_v61 = vld [vmem:[#allocation95_spill] sm:$0xff]  ;;  %v8533_v42 = vld [vmem:[#allocation98_spill] sm:$0xff] }
 0x3db   :  { %8526 = vst [vmem:[#allocation91_spill] sm:$0xff] %v5945_v7  ;;  %8528 = vst [vmem:[#allocation87_spill] sm:$0xff] %v5949_v1  ;;  %v5957_v40 = vadd.f32 %v5473_v5, %v8531_v61  ;;  %v5961_v25 = vadd.f32 %v5473_v5, %v8533_v42  ;;  %v8535_v3 = vld [vmem:[#allocation105_spill] sm:$0xff]  ;;  %v8537_v7 = vld [vmem:[#allocation107_spill] sm:$0xff] }
 0x3dc   :  { %8530 = vst [vmem:[#allocation90_spill] sm:$0xff] %v5953_v4  ;;  %v5965_v13 = vadd.f32 %v5473_v5, %v8535_v3  ;;  %v5969_v20 = vadd.f32 %v5473_v5, %v8537_v7  ;;  %v8539_v1 = vld [vmem:[#allocation103_spill] sm:$0xff]  ;;  %v8541_v4 = vld [vmem:[#allocation106_spill] sm:$0xff] }
 0x3dd   :  { %8532 = vst [vmem:[#allocation97_spill] sm:$0xff] %v5957_v40  ;;  %8534 = vst [vmem:[#allocation99_spill] sm:$0xff] %v5961_v25  ;;  %v5973_v49 = vadd.f32 %v5473_v5, %v8539_v1  ;;  %v5977_v61 = vadd.f32 %v5473_v5, %v8541_v4  ;;  %v8543_v40 = vld [vmem:[#allocation46_spill] sm:$0xff]  ;;  %v8545_v25 = vld [vmem:[#allocation47_spill] sm:$0xff] }
 0x3de   :  { %8536 = vst [vmem:[#allocation95_spill] sm:$0xff] %v5965_v13  ;;  %8538 = vst [vmem:[#allocation98_spill] sm:$0xff] %v5969_v20  ;;  %v5981_v42 = vadd.f32 %v5473_v5, %v8543_v40  ;;  %v5985_v3 = vadd.f32 %v5473_v5, %v8545_v25  ;;  %v8547_v13 = vld [vmem:[#allocation53_spill] sm:$0xff]  ;;  %v8549_v20 = vld [vmem:[#allocation56_spill] sm:$0xff] }
 0x3df   :  { %8540 = vst [vmem:[#allocation105_spill] sm:$0xff] %v5973_v49  ;;  %8542 = vst [vmem:[#allocation107_spill] sm:$0xff] %v5977_v61  ;;  %v5989_v7 = vadd.f32 %v5473_v5, %v8547_v13  ;;  %v5993_v1 = vadd.f32 %v5473_v5, %v8549_v20  ;;  %v8551_v49 = vld [vmem:[#allocation52_spill] sm:$0xff]  ;;  %v8553_v61 = vld [vmem:[#allocation54_spill] sm:$0xff] }
 0x3e0   :  { %8544 = vst [vmem:[#allocation103_spill] sm:$0xff] %v5981_v42  ;;  %8546 = vst [vmem:[#allocation106_spill] sm:$0xff] %v5985_v3  ;;  %v5997_v4 = vadd.f32 %v5473_v5, %v8551_v49  ;;  %v6001_v40 = vadd.f32 %v5473_v5, %v8553_v61  ;;  %v8555_v42 = vld [vmem:[#allocation61_spill] sm:$0xff]  ;;  %v8557_v3 = vld [vmem:[#allocation64_spill] sm:$0xff] }
 0x3e1   :  { %8548 = vst [vmem:[#allocation46_spill] sm:$0xff] %v5989_v7  ;;  %8550 = vst [vmem:[#allocation47_spill] sm:$0xff] %v5993_v1  ;;  %v6005_v25 = vadd.f32 %v5473_v5, %v8555_v42  ;;  %v6009_v13 = vadd.f32 %v5473_v5, %v8557_v3  ;;  %v8559_v7 = vld [vmem:[#allocation60_spill] sm:$0xff]  ;;  %v8561_v1 = vld [vmem:[#allocation62_spill] sm:$0xff] }
 0x3e2   :  { %8552 = vst [vmem:[#allocation53_spill] sm:$0xff] %v5997_v4  ;;  %8554 = vst [vmem:[#allocation56_spill] sm:$0xff] %v6001_v40  ;;  %v6013_v20 = vadd.f32 %v5473_v5, %v8559_v7  ;;  %v6017_v49 = vadd.f32 %v5473_v5, %v8561_v1  ;;  %v8563_v4 = vld [vmem:[#allocation69_spill] sm:$0xff]  ;;  %v8565_v40 = vld [vmem:[#allocation72_spill] sm:$0xff]  ;;  %v6037_v1 = vadd.f32 %v5473_v5, %v5454_v54  ;;  %v3028_v54 = vmul.f32 0.3, %v5481_v21 }
 0x3e3   :  { %8556 = vst [vmem:[#allocation52_spill] sm:$0xff] %v6005_v25  ;;  %8558 = vst [vmem:[#allocation54_spill] sm:$0xff] %v6009_v13  ;;  %v6021_v61 = vadd.f32 %v5473_v5, %v8563_v4  ;;  %v6025_v42 = vadd.f32 %v5473_v5, %v8565_v40  ;;  %v8567_v25 = vld [vmem:[#allocation68_spill] sm:$0xff]  ;;  %v8569_v13 = vld [vmem:[#allocation70_spill] sm:$0xff]  ;;  %v6041_v4 = vadd.f32 %v5473_v5, %v5458_v10  ;;  %v3029_v10 = vmul.f32 0.3, %v5485_v14 }
 0x3e4   :  { %8560 = vst [vmem:[#allocation61_spill] sm:$0xff] %v6013_v20  ;;  %8562 = vst [vmem:[#allocation64_spill] sm:$0xff] %v6017_v49  ;;  %v6029_v3 = vadd.f32 %v5473_v5, %v8567_v25  ;;  %v6033_v7 = vadd.f32 %v5473_v5, %v8569_v13  ;;  %v6045_v40 = vadd.f32 %v5473_v5, %v5462_v8  ;;  %v3030_v8 = vmul.f32 0.3, %v5489_v50  ;;  %v8575_v49 = vld [vmem:[#allocation77_spill] sm:$0xff]  ;;  %v8576_v20 = vld [vmem:[#allocation76_spill] sm:$0xff] }
 0x3e5   :  { %8564 = vst [vmem:[#allocation60_spill] sm:$0xff] %v6021_v61  ;;  %8566 = vst [vmem:[#allocation62_spill] sm:$0xff] %v6025_v42  ;;  %v6049_v25 = vadd.f32 %v5473_v5, %v5466_v57  ;;  %v3027_v5 = vmul.f32 0.3, %v5477_v30  ;;  %v3031_v57 = vmul.f32 0.3, %v5493_v58  ;;  %v3172_v61 = vsel %vm2884_vm2, %v5481_v21, %v3028_v54 }
 0x3e6   :  { %8568 = vst [vmem:[#allocation69_spill] sm:$0xff] %v6029_v3  ;;  %8570 = vst [vmem:[#allocation72_spill] sm:$0xff] %v6033_v7  ;;  %v3032_v13 = vmul.f32 0.3, %v5497_v35  ;;  %v3036_v7 = vmul.f32 0.3, %v5513_v6  ;;  %v3173_v56 = vsel %vm2885_vm3, %v5485_v14, %v3029_v10  ;;  %v3174_v44 = vsel %vm2886_vm4, %v5489_v50, %v3030_v8 }
 0x3e7   :  { %8571 = vst [vmem:[#allocation68_spill] sm:$0xff] %v6037_v1  ;;  %8572 = vst [vmem:[#allocation70_spill] sm:$0xff] %v6041_v4  ;;  %v3035_v4 = vmul.f32 0.3, %v5509_v18  ;;  %v3171_v1 = vsel %vm2883_vm1, %v5477_v30, %v3027_v5  ;;  %v3037_v3 = vmul.f32 0.3, %v5517_v45  ;;  %v3175_v32 = vsel %vm2887_vm5, %v5493_v58, %v3031_v57 }
 0x3e8   :  { %8573 = vst [vmem:[#allocation116_spill] sm:$0xff] %v6045_v40  ;;  %8574 = vst [vmem:[#allocation117_spill] sm:$0xff] %v6049_v25  ;;  %v3033_v25 = vmul.f32 0.3, %v5501_v48  ;;  %v3034_v40 = vmul.f32 0.3, %v5505_v17  ;;  %v3176_v39 = vsel %vm2888_vm6, %v5497_v35, %v3032_v13 }
 0x3e9   :  { %v3038_v42 = vmul.f32 0.3, %v5521_v60  ;;  %3315 = vst [vmem:[%s7603_s4] sm:$0xff] %v3171_v1  ;;  %vm2896_vm14 = vcmp.ge.f32.partialorder %v8575_v49, 0.0  ;;  %v6087_v30 = vmul.f32 0.3, %v5525_v11  ;;  %3316 = vst [vmem:[%s7603_s4 + $0x8] sm:$0xff] %v3172_v61 }
 0x3ea   :  { %v6090_v5 = vmul.f32 0.3, %v8575_v49  ;;  %v6093_v15 = vmul.f32 0.3, %v8576_v20  ;;  %vm2897_vm15 = vcmp.ge.f32.partialorder %v8576_v20, 0.0  ;;  %v8577_v21 = vld [vmem:[#allocation78_spill] sm:$0xff] }
 0x3eb   :  { %v6103_v1 = vmul.f32 0.3, %v8577_v21  ;;  %v8578_v54 = vld [vmem:[#allocation85_spill] sm:$0xff]  ;;  %3317 = vst [vmem:[%s7603_s4 + $0x10] sm:$0xff] %v3173_v56  ;;  %vm2898_vm0 = vcmp.ge.f32.partialorder %v8577_v21, 0.0  ;;  %v8580_v14 = vld [vmem:[#allocation84_spill] sm:$0xff] }
 0x3ec   :  { %v6106_v53 = vmul.f32 0.3, %v8578_v54  ;;  %v6119_v61 = vmul.f32 0.3, %v8580_v14  ;;  %v8581_v10 = vld [vmem:[#allocation86_spill] sm:$0xff]  ;;  %3318 = vst [vmem:[%s7603_s4 + $0x18] sm:$0xff] %v3174_v44 }
 0x3ed   :  { %v6122_v41 = vmul.f32 0.3, %v8581_v10  ;;  %vm2899_vm1 = vcmp.ge.f32.partialorder %v8578_v54, 0.0  ;;  %v8583_v50 = vld [vmem:[#allocation96_spill] sm:$0xff]  ;;  %8586 = vst [vmem:[#allocation77_spill] sm:$0xff] %v6141_v12  ;;  %3319 = vst [vmem:[%s7603_s4 + $0x20] sm:$0xff] %v3175_v32  ;;  %v3177_v12 = vsel %vm2889_vm7, %v5501_v48, %v3033_v25 }
 0x3ee   :  { %v6135_v56 = vmul.f32 0.3, %v8583_v50  ;;  %v8584_v8 = vld [vmem:[#allocation92_spill] sm:$0xff]  ;;  %vm2900_vm2 = vcmp.ge.f32.partialorder %v8579_v59, 0.0  ;;  %v8587_v58 = vld [vmem:[#allocation101_spill] sm:$0xff]  ;;  %8592 = vst [vmem:[#allocation85_spill] sm:$0xff] %v6157_v33  ;;  %v3178_v33 = vsel %vm2890_vm8, %v5505_v17, %v3034_v40 }
 0x3ef   :  { %v6138_v19 = vmul.f32 0.3, %v8584_v8  ;;  %v6151_v44 = vmul.f32 0.3, %v8587_v58  ;;  %v8589_v57 = vld [vmem:[#allocation104_spill] sm:$0xff]  ;;  %3320 = vst [vmem:[%s7603_s4 + $0x28] sm:$0xff] %v3176_v39 }
 0x3f0   :  { %v6154_v29 = vmul.f32 0.3, %v8589_v57  ;;  %vm2901_vm3 = vcmp.ge.f32.partialorder %v8580_v14, 0.0  ;;  %v8593_v35 = vld [vmem:[#allocation102_spill] sm:$0xff]  ;;  %v8595_v13 = vld [vmem:[#allocation109_spill] sm:$0xff]  ;;  %3321 = vst [vmem:[%s7603_s4 + $0x30] sm:$0xff] %v3177_v12 }
 0x3f1   :  { %8588 = vst [vmem:[#allocation76_spill] sm:$0xff] %v6151_v44  ;;  %v6167_v32 = vmul.f32 0.3, %v8593_v35  ;;  %v6170_v44 = vmul.f32 0.3, %v8595_v13  ;;  %vm2902_vm4 = vcmp.ge.f32.partialorder %v8581_v10, 0.0 }
 0x3f2   :  { %8590 = vst [vmem:[#allocation78_spill] sm:$0xff] %v6154_v29  ;;  %v8597_v29 = vld [vmem:[#allocation111_spill] sm:$0xff]  ;;  %v8599_v48 = vld [vmem:[#allocation108_spill] sm:$0xff]  ;;  %v8601_v25 = vld [vmem:[#allocation110_spill] sm:$0xff]  ;;  %vm2903_vm5 = vcmp.ge.f32.partialorder %v8582_v47, 0.0  ;;  %vm2904_vm6 = vcmp.ge.f32.partialorder %v8583_v50, 0.0 }
 0x3f3   :  { %8594 = vst [vmem:[#allocation88_spill] sm:$0xff] %v6167_v32  ;;  %8596 = vst [vmem:[#allocation84_spill] sm:$0xff] %v6170_v44  ;;  %v6173_v36 = vmul.f32 0.3, %v8597_v29  ;;  %v6183_v39 = vmul.f32 0.3, %v8599_v48 }
 0x3f4   :  { %v6186_v32 = vmul.f32 0.3, %v8601_v25  ;;  %v8603_v44 = vld [vmem:[#allocation113_spill] sm:$0xff]  ;;  %3322 = vst [vmem:[%s7603_s4 + $0x38] sm:$0xff] %v3178_v33  ;;  %v8605_v17 = vld [vmem:[#allocation115_spill] sm:$0xff]  ;;  %v8607_v40 = vld [vmem:[#allocation112_spill] sm:$0xff] }
 0x3f5   :  { %8598 = vst [vmem:[#allocation86_spill] sm:$0xff] %v6173_v36  ;;  %8600 = vst [vmem:[#allocation93_spill] sm:$0xff] %v6183_v39  ;;  %v6189_v23 = vmul.f32 0.3, %v8603_v44  ;;  %v3179_v36 = vsel %vm2891_vm9, %v5509_v18, %v3035_v4  ;;  %v6199_v12 = vmul.f32 0.3, %v8605_v17 }
 0x3f6   :  { %8602 = vst [vmem:[#allocation96_spill] sm:$0xff] %v6186_v32  ;;  %v6202_v39 = vmul.f32 0.3, %v8607_v40  ;;  %v8609_v32 = vld [vmem:[#allocation114_spill] sm:$0xff]  ;;  %3323 = vst [vmem:[%s7603_s4 + $0x40] sm:$0xff] %v3179_v36  ;;  %v8611_v18 = vld [vmem:[#allocation80_spill] sm:$0xff] }
 0x3f7   :  { %8604 = vst [vmem:[#allocation92_spill] sm:$0xff] %v6189_v23  ;;  %8606 = vst [vmem:[#allocation94_spill] sm:$0xff] %v6199_v12  ;;  %v6205_v2 = vmul.f32 0.3, %v8609_v32  ;;  %v3180_v23 = vsel %vm2892_vm10, %v5513_v6, %v3036_v7  ;;  %v6215_v33 = vmul.f32 0.3, %v8611_v18 }
 0x3f8   :  { %8608 = vst [vmem:[#allocation101_spill] sm:$0xff] %v6202_v39  ;;  %v8613_v4 = vld [vmem:[#allocation11_spill] sm:$0xff]  ;;  %v8615_v39 = vld [vmem:[#allocation14_spill] sm:$0xff]  ;;  %3324 = vst [vmem:[%s7603_s4 + $0x48] sm:$0xff] %v3180_v23  ;;  %vm2905_vm7 = vcmp.ge.f32.partialorder %v8584_v8, 0.0  ;;  %vm2906_vm8 = vcmp.ge.f32.partialorder %v8585_v63, 0.0 }
 0x3f9   :  { %8610 = vst [vmem:[#allocation104_spill] sm:$0xff] %v6205_v2  ;;  %8612 = vst [vmem:[#allocation100_spill] sm:$0xff] %v6215_v33  ;;  %v6218_v12 = vmul.f32 0.3, %v8613_v4  ;;  %v6221_v40 = vmul.f32 0.3, %v8615_v39  ;;  %v3181_v2 = vsel %vm2893_vm11, %v5517_v45, %v3037_v3 }
 0x3fa   :  { %v8617_v6 = vld [vmem:[#allocation10_spill] sm:$0xff]  ;;  %v8619_v7 = vld [vmem:[#allocation12_spill] sm:$0xff]  ;;  %3325 = vst [vmem:[%s7603_s4 + $0x50] sm:$0xff] %v3181_v2  ;;  %v8623_v45 = vld [vmem:[#allocation5_spill] sm:$0xff]  ;;  %vm2907_vm9 = vcmp.ge.f32.partialorder %v8587_v58, 0.0  ;;  %vm2908_vm10 = vcmp.ge.f32.partialorder %v8589_v57, 0.0 }
 0x3fb   :  { %8614 = vst [vmem:[#allocation102_spill] sm:$0xff] %v6218_v12  ;;  %8616 = vst [vmem:[#allocation109_spill] sm:$0xff] %v6221_v40  ;;  %v6231_v36 = vmul.f32 0.3, %v8617_v6  ;;  %v6234_v33 = vmul.f32 0.3, %v8619_v7  ;;  %v3182_v40 = vsel %vm2894_vm12, %v5521_v60, %v3038_v42  ;;  %v3183_v60 = vsel %vm2895_vm13, %v5525_v11, %v6087_v30 }
 0x3fc   :  { %v8621_v12 = vld [vmem:[#allocation3_spill] sm:$0xff]  ;;  %v6247_v23 = vmul.f32 0.3, %v8623_v45  ;;  %v8625_v3 = vld [vmem:[#allocation2_spill] sm:$0xff]  ;;  %3326 = vst [vmem:[%s7603_s4 + $0x58] sm:$0xff] %v3182_v40  ;;  %v3184_v11 = vsel %vm2896_vm14, %v8575_v49, %v6090_v5  ;;  %3327 = vst [vmem:[%s7603_s4 + $0x60] sm:$0xff] %v3183_v60  ;;  %v3185_v49 = vsel %vm2897_vm15, %v8576_v20, %v6093_v15  ;;  %v3186_v15 = vsel %vm2898_vm0, %v8577_v21, %v6103_v1 }
 0x3fd   :  { %8618 = vst [vmem:[#allocation111_spill] sm:$0xff] %v6231_v36  ;;  %8620 = vst [vmem:[#allocation108_spill] sm:$0xff] %v6234_v33  ;;  %v6237_v4 = vmul.f32 0.3, %v8621_v12  ;;  %v6250_v36 = vmul.f32 0.3, %v8625_v3  ;;  %v3187_v21 = vsel %vm2899_vm1, %v8578_v54, %v6106_v53  ;;  %v3188_v53 = vsel %vm2900_vm2, %v8579_v59, %v6109_v55 }
 0x3fe   :  { %8624 = vst [vmem:[#allocation113_spill] sm:$0xff] %v6247_v23  ;;  %v8627_v33 = vld [vmem:[#allocation4_spill] sm:$0xff]  ;;  %v8629_v2 = vld [vmem:[#allocation7_spill] sm:$0xff]  ;;  %v8631_v23 = vld [vmem:[#allocation9_spill] sm:$0xff]  ;;  %vm2909_vm11 = vcmp.ge.f32.partialorder %v8591_v26, 0.0  ;;  %vm2910_vm12 = vcmp.ge.f32.partialorder %v8593_v35, 0.0  ;;  %v3189_v55 = vsel %vm2901_vm3, %v8580_v14, %v6119_v61  ;;  %v3190_v14 = vsel %vm2902_vm4, %v8581_v10, %v6122_v41 }
 0x3ff   :  { %8622 = vst [vmem:[#allocation110_spill] sm:$0xff] %v6237_v4  ;;  %8626 = vst [vmem:[#allocation115_spill] sm:$0xff] %v6250_v36  ;;  %v6253_v7 = vmul.f32 0.3, %v8627_v33  ;;  %v6264_v42 = vmul.f32 0.3, %v8629_v2  ;;  %v3191_v41 = vsel %vm2903_vm5, %v8582_v47, %v6125_v43  ;;  %v3192_v43 = vsel %vm2904_vm6, %v8583_v50, %v6135_v56 }
 0x400   :  { %v6267_v4 = vmul.f32 0.3, %v8631_v23  ;;  %v8633_v36 = vld [vmem:[#allocation6_spill] sm:$0xff]  ;;  %v8635_v30 = vld [vmem:[#allocation8_spill] sm:$0xff]  ;;  %3328 = vst [vmem:[%s7603_s4 + $0x68] sm:$0xff] %v3184_v11  ;;  %v8641_v5 = vld [vmem:[#allocation13_spill] sm:$0xff]  ;;  %v3193_v50 = vsel %vm2905_vm7, %v8584_v8, %v6138_v19 }
 0x401   :  { %8628 = vst [vmem:[#allocation114_spill] sm:$0xff] %v6253_v7  ;;  %8630 = vst [vmem:[#allocation80_spill] sm:$0xff] %v6264_v42  ;;  %v6270_v33 = vmul.f32 0.3, %v8633_v36  ;;  %v6281_v40 = vmul.f32 0.3, %v8635_v30 }
 0x402   :  { %8632 = vst [vmem:[#allocation14_spill] sm:$0xff] %v6267_v4  ;;  %v8637_v42 = vld [vmem:[#allocation15_spill] sm:$0xff]  ;;  %v8639_v4 = vld [vmem:[#allocation17_spill] sm:$0xff]  ;;  %v6298_v60 = vmul.f32 0.3, %v8641_v5  ;;  %3329 = vst [vmem:[%s7603_s4 + $0x70] sm:$0xff] %v3185_v49 }
 0x403   :  { %8634 = vst [vmem:[#allocation10_spill] sm:$0xff] %v6270_v33  ;;  %8636 = vst [vmem:[#allocation3_spill] sm:$0xff] %v6281_v40  ;;  %v6284_v7 = vmul.f32 0.3, %v8637_v42  ;;  %v6287_v36 = vmul.f32 0.3, %v8639_v4 }
 0x404   :  { %8642 = vst [vmem:[#allocation7_spill] sm:$0xff] %v6298_v60  ;;  %v8643_v40 = vld [vmem:[#allocation16_spill] sm:$0xff]  ;;  %v8647_v20 = vld [vmem:[#allocation21_spill] sm:$0xff]  ;;  %v8649_v60 = vld [vmem:[#allocation18_spill] sm:$0xff]  ;;  %vm2911_vm13 = vcmp.ge.f32.partialorder %v8595_v13, 0.0  ;;  %vm2912_vm14 = vcmp.ge.f32.partialorder %v8597_v29, 0.0 }
 0x405   :  { %8638 = vst [vmem:[#allocation5_spill] sm:$0xff] %v6284_v7  ;;  %8640 = vst [vmem:[#allocation2_spill] sm:$0xff] %v6287_v36  ;;  %v6301_v33 = vmul.f32 0.3, %v8643_v40  ;;  %v8645_v7 = vld [vmem:[#allocation19_spill] sm:$0xff]  ;;  %vm2913_vm15 = vcmp.ge.f32.partialorder %v8599_v48, 0.0 }
 0x406   :  { %v6304_v4 = vmul.f32 0.3, %v8645_v7  ;;  %v6315_v11 = vmul.f32 0.3, %v8647_v20  ;;  %v6318_v36 = vmul.f32 0.3, %v8649_v60 }
 0x407   :  { %8644 = vst [vmem:[#allocation9_spill] sm:$0xff] %v6301_v33  ;;  %v8651_v33 = vld [vmem:[#allocation20_spill] sm:$0xff]  ;;  %3330 = vst [vmem:[%s7603_s4 + $0x78] sm:$0xff] %v3186_v15  ;;  %v8653_v1 = vld [vmem:[#allocation23_spill] sm:$0xff]  ;;  %v6349_v54 = vmul.f32 0.3, %v5717_v51 }
 0x408   :  { %8646 = vst [vmem:[#allocation8_spill] sm:$0xff] %v6304_v4  ;;  %8648 = vst [vmem:[#allocation15_spill] sm:$0xff] %v6315_v11  ;;  %v6321_v7 = vmul.f32 0.3, %v8651_v33  ;;  %v6332_v49 = vmul.f32 0.3, %v8653_v1 }
 0x409   :  { %8650 = vst [vmem:[#allocation13_spill] sm:$0xff] %v6318_v36  ;;  %v8655_v11 = vld [vmem:[#allocation25_spill] sm:$0xff]  ;;  %v8657_v36 = vld [vmem:[#allocation22_spill] sm:$0xff]  ;;  %3331 = vst [vmem:[%s7603_s4 + $0x80] sm:$0xff] %v3187_v21  ;;  %v6352_v15 = vmul.f32 0.3, %v5721_v27 }
 0x40a   :  { %8652 = vst [vmem:[#allocation16_spill] sm:$0xff] %v6321_v7  ;;  %8654 = vst [vmem:[#allocation21_spill] sm:$0xff] %v6332_v49  ;;  %v6335_v4 = vmul.f32 0.3, %v8655_v11  ;;  %v6338_v33 = vmul.f32 0.3, %v8657_v36 }
 0x40b   :  { %8659 = vst [vmem:[#allocation25_spill] sm:$0xff] %v6349_v54  ;;  %8660 = vst [vmem:[#allocation22_spill] sm:$0xff] %v6352_v15  ;;  %v6366_v59 = vmul.f32 0.3, %v5729_v0  ;;  %v6369_v21 = vmul.f32 0.3, %v5733_v46 }
 0x40c   :  { %8656 = vst [vmem:[#allocation18_spill] sm:$0xff] %v6335_v4  ;;  %8658 = vst [vmem:[#allocation23_spill] sm:$0xff] %v6338_v33  ;;  %v6355_v4 = vmul.f32 0.3, %v5725_v34  ;;  %v6372_v15 = vmul.f32 0.3, %v5737_v22 }
 0x40d   :  { %3332 = vst [vmem:[%s7603_s4 + $0x88] sm:$0xff] %v3188_v53  ;;  %8662 = vst [vmem:[#allocation119_spill] sm:$0xff] %v6366_v59  ;;  %vm2914_vm0 = vcmp.ge.f32.partialorder %v8601_v25, 0.0  ;;  %v6383_v61 = vmul.f32 0.3, %v5741_v28  ;;  %vm2915_vm1 = vcmp.ge.f32.partialorder %v8603_v44, 0.0 }
 0x40e   :  { %8661 = vst [vmem:[#allocation118_spill] sm:$0xff] %v6355_v4  ;;  %8663 = vst [vmem:[#allocation120_spill] sm:$0xff] %v6369_v21  ;;  %v6386_v53 = vmul.f32 0.3, %v5745_v52  ;;  %v6389_v21 = vmul.f32 0.3, %v5749_v16 }
 0x40f   :  { %8664 = vst [vmem:[#allocation121_spill] sm:$0xff] %v6372_v15  ;;  %3333 = vst [vmem:[%s7603_s4 + $0x90] sm:$0xff] %v3189_v55  ;;  %v6400_v10 = vmul.f32 0.3, %v5753_v24  ;;  %v6403_v55 = vmul.f32 0.3, %v5757_v62 }
 0x410   :  { %8665 = vst [vmem:[#allocation122_spill] sm:$0xff] %v6383_v61  ;;  %8666 = vst [vmem:[#allocation123_spill] sm:$0xff] %v6386_v53  ;;  %v6406_v53 = vmul.f32 0.3, %v5761_v9  ;;  %vm2916_vm2 = vcmp.ge.f32.partialorder %v8605_v17, 0.0  ;;  %v8674_v56 = vld [vmem:[#allocation112_spill] sm:$0xff] }
 0x411   :  { %8667 = vst [vmem:[#allocation124_spill] sm:$0xff] %v6389_v21  ;;  %3334 = vst [vmem:[%s7603_s4 + $0x98] sm:$0xff] %v3190_v14  ;;  %v6417_v47 = vmul.f32 0.3, %v5765_v38  ;;  %v6420_v14 = vmul.f32 0.3, %v5769_v31 }
 0x412   :  { %8668 = vst [vmem:[#allocation125_spill] sm:$0xff] %v6400_v10  ;;  %8669 = vst [vmem:[#allocation126_spill] sm:$0xff] %v6403_v55  ;;  %v6423_v55 = vmul.f32 0.3, %v5773_v37  ;;  %vm2917_vm3 = vcmp.ge.f32.partialorder %v8674_v56, 0.0  ;;  %vm2918_vm4 = vcmp.ge.f32.partialorder %v8609_v32, 0.0 }
 0x413   :  { %8670 = vst [vmem:[#allocation127_spill] sm:$0xff] %v6406_v53  ;;  %3335 = vst [vmem:[%s7603_s4 + $0xa0] sm:$0xff] %v3191_v41  ;;  %v8675_v41 = vld [vmem:[#allocation24_spill] sm:$0xff]  ;;  %v8682_v8 = vld [vmem:[#allocation26_spill] sm:$0xff]  ;;  %vm2919_vm5 = vcmp.ge.f32.partialorder %v8611_v18, 0.0  ;;  %vm2921_vm7 = vcmp.ge.f32.partialorder %v8615_v39, 0.0 }
 0x414   :  { %8671 = vst [vmem:[#allocation128_spill] sm:$0xff] %v6417_v47  ;;  %8672 = vst [vmem:[#allocation129_spill] sm:$0xff] %v6420_v14  ;;  %v6434_v53 = vmul.f32 0.3, %v8675_v41  ;;  %v8677_v47 = vld [vmem:[#allocation27_spill] sm:$0xff]  ;;  %v8679_v14 = vld [vmem:[#allocation29_spill] sm:$0xff] }
 0x415   :  { %8673 = vst [vmem:[#allocation130_spill] sm:$0xff] %v6423_v55  ;;  %3336 = vst [vmem:[%s7603_s4 + $0xa8] sm:$0xff] %v3192_v43  ;;  %v6437_v10 = vmul.f32 0.3, %v8677_v47  ;;  %v6440_v21 = vmul.f32 0.3, %v8679_v14 }
 0x416   :  { %8676 = vst [vmem:[#allocation112_spill] sm:$0xff] %v6434_v53  ;;  %v8681_v55 = vld [vmem:[#allocation77_spill] sm:$0xff]  ;;  %3337 = vst [vmem:[%s7603_s4 + $0xb0] sm:$0xff] %v3193_v50  ;;  %v6451_v43 = vmul.f32 0.3, %v8682_v8  ;;  %v8684_v53 = vld [vmem:[#allocation28_spill] sm:$0xff] }
 0x417   :  { %8678 = vst [vmem:[#allocation24_spill] sm:$0xff] %v6437_v10  ;;  %8680 = vst [vmem:[#allocation27_spill] sm:$0xff] %v6440_v21  ;;  %v3194_v19 = vsel %vm2906_vm8, %v8585_v63, %v8681_v55  ;;  %v6454_v61 = vmul.f32 0.3, %v8684_v53  ;;  %v8686_v10 = vld [vmem:[#allocation31_spill] sm:$0xff]  ;;  %v8688_v21 = vld [vmem:[#allocation76_spill] sm:$0xff] }
 0x418   :  { %8683 = vst [vmem:[#allocation29_spill] sm:$0xff] %v6451_v43  ;;  %v6457_v15 = vmul.f32 0.3, %v8686_v10  ;;  %v3195_v63 = vsel %vm2907_vm9, %v8587_v58, %v8688_v21  ;;  %3338 = vst [vmem:[%s7603_s4 + $0xb8] sm:$0xff] %v3194_v19  ;;  %v8689_v55 = vld [vmem:[#allocation33_spill] sm:$0xff]  ;;  %v8691_v43 = vld [vmem:[#allocation30_spill] sm:$0xff] }
 0x419   :  { %8685 = vst [vmem:[#allocation77_spill] sm:$0xff] %v6454_v61  ;;  %v6468_v50 = vmul.f32 0.3, %v8689_v55  ;;  %v6471_v59 = vmul.f32 0.3, %v8691_v43  ;;  %v8693_v61 = vld [vmem:[#allocation32_spill] sm:$0xff] }
 0x41a   :  { %8687 = vst [vmem:[#allocation26_spill] sm:$0xff] %v6457_v15  ;;  %v6474_v4 = vmul.f32 0.3, %v8693_v61  ;;  %v8695_v15 = vld [vmem:[#allocation78_spill] sm:$0xff]  ;;  %3339 = vst [vmem:[%s7603_s4 + $0xc0] sm:$0xff] %v3195_v63  ;;  %v8696_v21 = vld [vmem:[#allocation11_spill] sm:$0xff] }
 0x41b   :  { %8690 = vst [vmem:[#allocation28_spill] sm:$0xff] %v6468_v50  ;;  %8692 = vst [vmem:[#allocation31_spill] sm:$0xff] %v6471_v59  ;;  %v3196_v58 = vsel %vm2908_vm10, %v8589_v57, %v8695_v15  ;;  %vm2920_vm6 = vcmp.ge.f32.partialorder %v8696_v21, 0.0  ;;  %v8697_v19 = vld [vmem:[#allocation35_spill] sm:$0xff]  ;;  %v8699_v50 = vld [vmem:[#allocation37_spill] sm:$0xff]  ;;  %vm2922_vm8 = vcmp.ge.f32.partialorder %v8617_v6, 0.0 }
 0x41c   :  { %8694 = vst [vmem:[#allocation76_spill] sm:$0xff] %v6474_v4  ;;  %v6485_v54 = vmul.f32 0.3, %v8697_v19  ;;  %v6488_v33 = vmul.f32 0.3, %v8699_v50  ;;  %v8701_v59 = vld [vmem:[#allocation34_spill] sm:$0xff] }
 0x41d   :  { %v6491_v49 = vmul.f32 0.3, %v8701_v59  ;;  %v8703_v4 = vld [vmem:[#allocation85_spill] sm:$0xff]  ;;  %3340 = vst [vmem:[%s7603_s4 + $0xc8] sm:$0xff] %v3196_v58  ;;  %v8704_v15 = vld [vmem:[#allocation36_spill] sm:$0xff]  ;;  %vm2924_vm10 = vcmp.ge.f32.partialorder %v8621_v12, 0.0 }
 0x41e   :  { %8698 = vst [vmem:[#allocation33_spill] sm:$0xff] %v6485_v54  ;;  %8700 = vst [vmem:[#allocation30_spill] sm:$0xff] %v6488_v33  ;;  %v3197_v57 = vsel %vm2909_vm11, %v8591_v26, %v8703_v4  ;;  %v6502_v63 = vmul.f32 0.3, %v8704_v15  ;;  %v8706_v54 = vld [vmem:[#allocation39_spill] sm:$0xff]  ;;  %v8708_v33 = vld [vmem:[#allocation41_spill] sm:$0xff] }
 0x41f   :  { %8702 = vst [vmem:[#allocation32_spill] sm:$0xff] %v6491_v49  ;;  %v6505_v7 = vmul.f32 0.3, %v8706_v54  ;;  %v6508_v59 = vmul.f32 0.3, %v8708_v33  ;;  %v8710_v49 = vld [vmem:[#allocation88_spill] sm:$0xff] }
 0x420   :  { %8705 = vst [vmem:[#allocation78_spill] sm:$0xff] %v6502_v63  ;;  %v3198_v26 = vsel %vm2910_vm12, %v8593_v35, %v8710_v49  ;;  %3341 = vst [vmem:[%s7603_s4 + $0xd0] sm:$0xff] %v3197_v57  ;;  %v8711_v4 = vld [vmem:[#allocation38_spill] sm:$0xff]  ;;  %v8713_v63 = vld [vmem:[#allocation40_spill] sm:$0xff]  ;;  %vm2925_vm11 = vcmp.ge.f32.partialorder %v8623_v45, 0.0  ;;  %vm2926_vm12 = vcmp.ge.f32.partialorder %v8625_v3, 0.0 }
 0x421   :  { %8707 = vst [vmem:[#allocation11_spill] sm:$0xff] %v6505_v7  ;;  %8709 = vst [vmem:[#allocation35_spill] sm:$0xff] %v6508_v59  ;;  %v6519_v58 = vmul.f32 0.3, %v8711_v4  ;;  %v6522_v54 = vmul.f32 0.3, %v8713_v63 }
 0x422   :  { %v8715_v7 = vld [vmem:[#allocation43_spill] sm:$0xff]  ;;  %v8717_v59 = vld [vmem:[#allocation84_spill] sm:$0xff]  ;;  %3342 = vst [vmem:[%s7603_s4 + $0xd8] sm:$0xff] %v3198_v26  ;;  %v8719_v57 = vld [vmem:[#allocation45_spill] sm:$0xff] }
 0x423   :  { %8712 = vst [vmem:[#allocation37_spill] sm:$0xff] %v6519_v58  ;;  %8714 = vst [vmem:[#allocation85_spill] sm:$0xff] %v6522_v54  ;;  %v6525_v33 = vmul.f32 0.3, %v8715_v7  ;;  %v3199_v35 = vsel %vm2911_vm13, %v8595_v13, %v8717_v59  ;;  %v8718_v49 = vld [vmem:[#allocation12_spill] sm:$0xff]  ;;  %v8721_v58 = vld [vmem:[#allocation42_spill] sm:$0xff] }
 0x424   :  { %vm2923_vm9 = vcmp.ge.f32.partialorder %v8718_v49, 0.0  ;;  %v6536_v4 = vmul.f32 0.3, %v8719_v57  ;;  %v6539_v63 = vmul.f32 0.3, %v8721_v58  ;;  %v8723_v54 = vld [vmem:[#allocation44_spill] sm:$0xff] }
 0x425   :  { %8716 = vst [vmem:[#allocation36_spill] sm:$0xff] %v6525_v33  ;;  %v6542_v7 = vmul.f32 0.3, %v8723_v54  ;;  %v8725_v33 = vld [vmem:[#allocation86_spill] sm:$0xff]  ;;  %3343 = vst [vmem:[%s7603_s4 + $0xe0] sm:$0xff] %v3199_v35  ;;  %v8726_v59 = vld [vmem:[#allocation49_spill] sm:$0xff] }
 0x426   :  { %8720 = vst [vmem:[#allocation88_spill] sm:$0xff] %v6536_v4  ;;  %8722 = vst [vmem:[#allocation84_spill] sm:$0xff] %v6539_v63  ;;  %v3200_v13 = vsel %vm2912_vm14, %v8597_v29, %v8725_v33  ;;  %v6553_v26 = vmul.f32 0.3, %v8726_v59  ;;  %v8728_v4 = vld [vmem:[#allocation51_spill] sm:$0xff]  ;;  %v8730_v63 = vld [vmem:[#allocation48_spill] sm:$0xff] }
 0x427   :  { %8724 = vst [vmem:[#allocation12_spill] sm:$0xff] %v6542_v7  ;;  %v6556_v58 = vmul.f32 0.3, %v8728_v4  ;;  %v6559_v54 = vmul.f32 0.3, %v8730_v63  ;;  %v8732_v7 = vld [vmem:[#allocation93_spill] sm:$0xff] }
 0x428   :  { %8727 = vst [vmem:[#allocation45_spill] sm:$0xff] %v6553_v26  ;;  %v3201_v29 = vsel %vm2913_vm15, %v8599_v48, %v8732_v7  ;;  %3344 = vst [vmem:[%s7603_s4 + $0xe8] sm:$0xff] %v3200_v13  ;;  %v8733_v33 = vld [vmem:[#allocation50_spill] sm:$0xff]  ;;  %v8735_v26 = vld [vmem:[#allocation57_spill] sm:$0xff]  ;;  %vm2928_vm14 = vcmp.ge.f32.partialorder %v8629_v2, 0.0  ;;  %vm2929_vm15 = vcmp.ge.f32.partialorder %v8631_v23, 0.0 }
 0x429   :  { %8729 = vst [vmem:[#allocation86_spill] sm:$0xff] %v6556_v58  ;;  %8731 = vst [vmem:[#allocation49_spill] sm:$0xff] %v6559_v54  ;;  %v6570_v35 = vmul.f32 0.3, %v8733_v33  ;;  %v6573_v4 = vmul.f32 0.3, %v8735_v26 }
 0x42a   :  { %v8737_v58 = vld [vmem:[#allocation59_spill] sm:$0xff]  ;;  %v8739_v54 = vld [vmem:[#allocation96_spill] sm:$0xff]  ;;  %3345 = vst [vmem:[%s7603_s4 + $0xf0] sm:$0xff] %v3201_v29 }
 0x42b   :  { %8734 = vst [vmem:[#allocation93_spill] sm:$0xff] %v6570_v35  ;;  %8736 = vst [vmem:[#allocation50_spill] sm:$0xff] %v6573_v4  ;;  %v6576_v63 = vmul.f32 0.3, %v8737_v58  ;;  %v3202_v48 = vsel %vm2914_vm0, %v8601_v25, %v8739_v54  ;;  %v8740_v7 = vld [vmem:[#allocation55_spill] sm:$0xff]  ;;  %v8742_v35 = vld [vmem:[#allocation58_spill] sm:$0xff] }
 0x42c   :  { %v6587_v13 = vmul.f32 0.3, %v8740_v7  ;;  %v6590_v26 = vmul.f32 0.3, %v8742_v35  ;;  %v8744_v4 = vld [vmem:[#allocation65_spill] sm:$0xff]  ;;  %3346 = vst [vmem:[%s7603_s4 + $0xf8] sm:$0xff] %v3202_v48 }
 0x42d   :  { %8738 = vst [vmem:[#allocation131_spill] sm:$0xff] %v6576_v63  ;;  %v6593_v58 = vmul.f32 0.3, %v8744_v4  ;;  %v8746_v63 = vld [vmem:[#allocation92_spill] sm:$0xff]  ;;  %v8748_v29 = vld [vmem:[#allocation67_spill] sm:$0xff] }
 0x42e   :  { %8741 = vst [vmem:[#allocation96_spill] sm:$0xff] %v6587_v13  ;;  %8743 = vst [vmem:[#allocation132_spill] sm:$0xff] %v6590_v26  ;;  %v3203_v25 = vsel %vm2915_vm1, %v8603_v44, %v8746_v63  ;;  %v8747_v54 = vld [vmem:[#allocation4_spill] sm:$0xff]  ;;  %v6604_v7 = vmul.f32 0.3, %v8748_v29  ;;  %v8750_v13 = vld [vmem:[#allocation63_spill] sm:$0xff] }
 0x42f   :  { %8745 = vst [vmem:[#allocation133_spill] sm:$0xff] %v6593_v58  ;;  %vm2927_vm13 = vcmp.ge.f32.partialorder %v8747_v54, 0.0  ;;  %v6607_v35 = vmul.f32 0.3, %v8750_v13  ;;  %v8752_v26 = vld [vmem:[#allocation66_spill] sm:$0xff]  ;;  %3347 = vst [vmem:[%s7603_s4 + $0x100] sm:$0xff] %v3203_v25 }
 0x430   :  { %8749 = vst [vmem:[#allocation92_spill] sm:$0xff] %v6604_v7  ;;  %v6610_v4 = vmul.f32 0.3, %v8752_v26  ;;  %v8754_v58 = vld [vmem:[#allocation94_spill] sm:$0xff]  ;;  %v8755_v63 = vld [vmem:[#allocation73_spill] sm:$0xff]  ;;  %v8757_v7 = vld [vmem:[#allocation75_spill] sm:$0xff] }
 0x431   :  { %8751 = vst [vmem:[#allocation4_spill] sm:$0xff] %v6607_v35  ;;  %v3204_v44 = vsel %vm2916_vm2, %v8605_v17, %v8754_v58  ;;  %v6621_v48 = vmul.f32 0.3, %v8755_v63  ;;  %v6624_v13 = vmul.f32 0.3, %v8757_v7  ;;  %v8759_v35 = vld [vmem:[#allocation71_spill] sm:$0xff] }
 0x432   :  { %8753 = vst [vmem:[#allocation67_spill] sm:$0xff] %v6610_v4  ;;  %v6627_v26 = vmul.f32 0.3, %v8759_v35  ;;  %v8761_v4 = vld [vmem:[#allocation101_spill] sm:$0xff]  ;;  %3348 = vst [vmem:[%s7603_s4 + $0x108] sm:$0xff] %v3204_v44  ;;  %v8762_v58 = vld [vmem:[#allocation6_spill] sm:$0xff] }
 0x433   :  { %8756 = vst [vmem:[#allocation94_spill] sm:$0xff] %v6621_v48  ;;  %8758 = vst [vmem:[#allocation73_spill] sm:$0xff] %v6624_v13  ;;  %v3205_v17 = vsel %vm2917_vm3, %v8674_v56, %v8761_v4  ;;  %v8763_v25 = vld [vmem:[#allocation74_spill] sm:$0xff]  ;;  %v8767_v35 = vld [vmem:[#allocation83_spill] sm:$0xff]  ;;  %vm8855_vm1 = vcmp.ge.f32.partialorder %v8637_v42, 0.0  ;;  %vm8871_vm2 = vcmp.ge.f32.partialorder %v8649_v60, 0.0 }
 0x434   :  { %8760 = vst [vmem:[#allocation134_spill] sm:$0xff] %v6627_v26  ;;  %v6641_v13 = vmul.f32 0.3, %v8763_v25  ;;  %v8765_v26 = vld [vmem:[#allocation81_spill] sm:$0xff]  ;;  %v6647_v56 = vmul.f32 0.3, %v8767_v35 }
 0x435   :  { %v6644_v48 = vmul.f32 0.3, %v8765_v26  ;;  %v8769_v4 = vld [vmem:[#allocation104_spill] sm:$0xff]  ;;  %3349 = vst [vmem:[%s7603_s4 + $0x110] sm:$0xff] %v3205_v17  ;;  %v8770_v7 = vld [vmem:[#allocation17_spill] sm:$0xff] }
 0x436   :  { %8764 = vst [vmem:[#allocation101_spill] sm:$0xff] %v6641_v13  ;;  %8768 = vst [vmem:[#allocation135_spill] sm:$0xff] %v6647_v56  ;;  %v3206_v44 = vsel %vm2918_vm4, %v8609_v32, %v8769_v4  ;;  %vm2933_vm3 = vcmp.ge.f32.partialorder %v8770_v7, 0.0  ;;  %v8771_v13 = vld [vmem:[#allocation19_spill] sm:$0xff]  ;;  %v8774_v56 = vld [vmem:[#allocation82_spill] sm:$0xff]  ;;  %vm2937_vm4 = vcmp.ge.f32.partialorder %v8647_v20, 0.0 }
 0x437   :  { %8766 = vst [vmem:[#allocation6_spill] sm:$0xff] %v6644_v48  ;;  %v8772_v48 = vld [vmem:[#allocation79_spill] sm:$0xff]  ;;  %v6664_v26 = vmul.f32 0.3, %v8774_v56  ;;  %v8776_v25 = vld [vmem:[#allocation89_spill] sm:$0xff]  ;;  %v8778_v4 = vld [vmem:[#allocation100_spill] sm:$0xff] }
 0x438   :  { %v6661_v35 = vmul.f32 0.3, %v8772_v48  ;;  %v6667_v32 = vmul.f32 0.3, %v8776_v25  ;;  %v3207_v17 = vsel %vm2919_vm5, %v8611_v18, %v8778_v4  ;;  %3350 = vst [vmem:[%s7603_s4 + $0x118] sm:$0xff] %v3206_v44  ;;  %v8784_v48 = vld [vmem:[#allocation90_spill] sm:$0xff] }
 0x439   :  { %8775 = vst [vmem:[#allocation17_spill] sm:$0xff] %v6664_v26  ;;  %v8780_v26 = vld [vmem:[#allocation91_spill] sm:$0xff]  ;;  %v6687_v18 = vmul.f32 0.3, %v8784_v48  ;;  %v8786_v4 = vld [vmem:[#allocation102_spill] sm:$0xff]  ;;  %3351 = vst [vmem:[%s7603_s4 + $0x120] sm:$0xff] %v3207_v17 }
 0x43a   :  { %8773 = vst [vmem:[#allocation104_spill] sm:$0xff] %v6661_v35  ;;  %8777 = vst [vmem:[#allocation19_spill] sm:$0xff] %v6667_v32  ;;  %v8779_v35 = vld [vmem:[#allocation20_spill] sm:$0xff]  ;;  %v6681_v25 = vmul.f32 0.3, %v8780_v26  ;;  %v8782_v32 = vld [vmem:[#allocation87_spill] sm:$0xff]  ;;  %v3208_v44 = vsel %vm2920_vm6, %v8696_v21, %v8786_v4 }
 0x43b   :  { %v6684_v56 = vmul.f32 0.3, %v8782_v32  ;;  %8785 = vst [vmem:[#allocation91_spill] sm:$0xff] %v6687_v18  ;;  %vm2941_vm5 = vcmp.ge.f32.partialorder %v8655_v11, 0.0  ;;  %v8789_v18 = vld [vmem:[#allocation99_spill] sm:$0xff]  ;;  %v8793_v4 = vld [vmem:[#allocation109_spill] sm:$0xff] }
 0x43c   :  { %8781 = vst [vmem:[#allocation100_spill] sm:$0xff] %v6681_v25  ;;  %v6704_v48 = vmul.f32 0.3, %v8789_v18  ;;  %v8791_v32 = vld [vmem:[#allocation95_spill] sm:$0xff]  ;;  %v3209_v17 = vsel %vm2921_vm7, %v8615_v39, %v8793_v4  ;;  %3352 = vst [vmem:[%s7603_s4 + $0x128] sm:$0xff] %v3208_v44  ;;  %vm2945_vm6 = vcmp.ge.f32.partialorder %v5725_v34, 0.0 }
 0x43d   :  { %8783 = vst [vmem:[#allocation20_spill] sm:$0xff] %v6684_v56  ;;  %v8787_v56 = vld [vmem:[#allocation97_spill] sm:$0xff]  ;;  %v6707_v21 = vmul.f32 0.3, %v8791_v32  ;;  %v8798_v18 = vld [vmem:[#allocation107_spill] sm:$0xff]  ;;  %3353 = vst [vmem:[%s7603_s4 + $0x130] sm:$0xff] %v3209_v17 }
 0x43e   :  { %v6701_v25 = vmul.f32 0.3, %v8787_v56  ;;  %8790 = vst [vmem:[#allocation97_spill] sm:$0xff] %v6704_v48  ;;  %v8794_v48 = vld [vmem:[#allocation98_spill] sm:$0xff]  ;;  %v6727_v39 = vmul.f32 0.3, %v8798_v18 }
 0x43f   :  { %8792 = vst [vmem:[#allocation136_spill] sm:$0xff] %v6707_v21  ;;  %v8796_v21 = vld [vmem:[#allocation105_spill] sm:$0xff]  ;;  %v8800_v4 = vld [vmem:[#allocation111_spill] sm:$0xff]  ;;  %vm2949_vm7 = vcmp.ge.f32.partialorder %v5741_v28, 0.0 }
 0x440   :  { %8788 = vst [vmem:[#allocation102_spill] sm:$0xff] %v6701_v25  ;;  %v6721_v25 = vmul.f32 0.3, %v8794_v48  ;;  %v6724_v32 = vmul.f32 0.3, %v8796_v21  ;;  %8799 = vst [vmem:[#allocation137_spill] sm:$0xff] %v6727_v39  ;;  %v3210_v44 = vsel %vm2922_vm8, %v8617_v6, %v8800_v4 }
 0x441   :  { %v8803_v39 = vld [vmem:[#allocation106_spill] sm:$0xff]  ;;  %v8807_v4 = vld [vmem:[#allocation108_spill] sm:$0xff]  ;;  %3354 = vst [vmem:[%s7603_s4 + $0x138] sm:$0xff] %v3210_v44  ;;  %vm2953_vm8 = vcmp.ge.f32.partialorder %v5757_v62, 0.0 }
 0x442   :  { %8795 = vst [vmem:[#allocation109_spill] sm:$0xff] %v6721_v25  ;;  %8797 = vst [vmem:[#allocation98_spill] sm:$0xff] %v6724_v32  ;;  %v8801_v32 = vld [vmem:[#allocation103_spill] sm:$0xff]  ;;  %v6744_v18 = vmul.f32 0.3, %v8803_v39  ;;  %v8805_v21 = vld [vmem:[#allocation46_spill] sm:$0xff]  ;;  %v3211_v17 = vsel %vm2923_vm9, %v8718_v49, %v8807_v4 }
 0x443   :  { %v6741_v25 = vmul.f32 0.3, %v8801_v32  ;;  %v6747_v6 = vmul.f32 0.3, %v8805_v21  ;;  %v8812_v39 = vld [vmem:[#allocation56_spill] sm:$0xff]  ;;  %v8814_v4 = vld [vmem:[#allocation110_spill] sm:$0xff] }
 0x444   :  { %8804 = vst [vmem:[#allocation103_spill] sm:$0xff] %v6744_v18  ;;  %v8808_v18 = vld [vmem:[#allocation47_spill] sm:$0xff]  ;;  %v6767_v49 = vmul.f32 0.3, %v8812_v39  ;;  %v3212_v44 = vsel %vm2924_vm10, %v8621_v12, %v8814_v4  ;;  %3355 = vst [vmem:[%s7603_s4 + $0x140] sm:$0xff] %v3211_v17  ;;  %vm2957_vm9 = vcmp.ge.f32.partialorder %v5773_v37, 0.0 }
 0x445   :  { %8802 = vst [vmem:[#allocation111_spill] sm:$0xff] %v6741_v25  ;;  %8806 = vst [vmem:[#allocation138_spill] sm:$0xff] %v6747_v6  ;;  %v6761_v25 = vmul.f32 0.3, %v8808_v18  ;;  %v8810_v6 = vld [vmem:[#allocation53_spill] sm:$0xff]  ;;  %vm2961_vm10 = vcmp.ge.f32.partialorder %v8682_v8, 0.0 }
 0x446   :  { %v6764_v21 = vmul.f32 0.3, %v8810_v6  ;;  %8813 = vst [vmem:[#allocation139_spill] sm:$0xff] %v6767_v49  ;;  %v8817_v49 = vld [vmem:[#allocation54_spill] sm:$0xff]  ;;  %v8819_v6 = vld [vmem:[#allocation61_spill] sm:$0xff]  ;;  %3356 = vst [vmem:[%s7603_s4 + $0x148] sm:$0xff] %v3212_v44 }
 0x447   :  { %8809 = vst [vmem:[#allocation108_spill] sm:$0xff] %v6761_v25  ;;  %v6784_v39 = vmul.f32 0.3, %v8817_v49  ;;  %v6787_v12 = vmul.f32 0.3, %v8819_v6  ;;  %v8821_v4 = vld [vmem:[#allocation113_spill] sm:$0xff] }
 0x448   :  { %8811 = vst [vmem:[#allocation47_spill] sm:$0xff] %v6764_v21  ;;  %v8815_v21 = vld [vmem:[#allocation52_spill] sm:$0xff]  ;;  %v3213_v17 = vsel %vm2925_vm11, %v8623_v45, %v8821_v4  ;;  %v8826_v49 = vld [vmem:[#allocation62_spill] sm:$0xff]  ;;  %v8828_v4 = vld [vmem:[#allocation115_spill] sm:$0xff]  ;;  %vm2965_vm11 = vcmp.ge.f32.partialorder %v8691_v43, 0.0 }
 0x449   :  { %v6781_v25 = vmul.f32 0.3, %v8815_v21  ;;  %8818 = vst [vmem:[#allocation140_spill] sm:$0xff] %v6784_v39  ;;  %8820 = vst [vmem:[#allocation141_spill] sm:$0xff] %v6787_v12  ;;  %v8822_v39 = vld [vmem:[#allocation64_spill] sm:$0xff]  ;;  %v3214_v44 = vsel %vm2926_vm12, %v8625_v3, %v8828_v4  ;;  %v8835_v4 = vld [vmem:[#allocation114_spill] sm:$0xff] }
 0x44a   :  { %v8824_v12 = vld [vmem:[#allocation60_spill] sm:$0xff]  ;;  %v6807_v45 = vmul.f32 0.3, %v8826_v49  ;;  %3357 = vst [vmem:[%s7603_s4 + $0x150] sm:$0xff] %v3213_v17  ;;  %v3215_v17 = vsel %vm2927_vm13, %v8747_v54, %v8835_v4  ;;  %3358 = vst [vmem:[%s7603_s4 + $0x158] sm:$0xff] %v3214_v44  ;;  %v8843_v21 = vld [vmem:[#allocation117_spill] sm:$0xff] }
 0x44b   :  { %8816 = vst [vmem:[#allocation110_spill] sm:$0xff] %v6781_v25  ;;  %v6801_v25 = vmul.f32 0.3, %v8822_v39  ;;  %v6804_v6 = vmul.f32 0.3, %v8824_v12  ;;  %v8833_v12 = vld [vmem:[#allocation68_spill] sm:$0xff] }
 0x44c   :  { %8827 = vst [vmem:[#allocation143_spill] sm:$0xff] %v6807_v45  ;;  %v8831_v45 = vld [vmem:[#allocation72_spill] sm:$0xff]  ;;  %v6827_v3 = vmul.f32 0.3, %v8833_v12  ;;  %v8836_v39 = vld [vmem:[#allocation34_spill] sm:$0xff]  ;;  %3359 = vst [vmem:[%s7603_s4 + $0x160] sm:$0xff] %v3215_v17 }
 0x44d   :  { %8823 = vst [vmem:[#allocation113_spill] sm:$0xff] %v6801_v25  ;;  %8825 = vst [vmem:[#allocation142_spill] sm:$0xff] %v6804_v6  ;;  %v8829_v6 = vld [vmem:[#allocation69_spill] sm:$0xff]  ;;  %v6824_v49 = vmul.f32 0.3, %v8831_v45  ;;  %vm2969_vm12 = vcmp.ge.f32.partialorder %v8836_v39, 0.0 }
 0x44e   :  { %v6821_v25 = vmul.f32 0.3, %v8829_v6  ;;  %8834 = vst [vmem:[#allocation145_spill] sm:$0xff] %v6827_v3  ;;  %v8841_v3 = vld [vmem:[#allocation116_spill] sm:$0xff]  ;;  %v6847_v54 = vmul.f32 0.3, %v8843_v21 }
 0x44f   :  { %8832 = vst [vmem:[#allocation144_spill] sm:$0xff] %v6824_v49  ;;  %v8839_v49 = vld [vmem:[#allocation70_spill] sm:$0xff]  ;;  %v6844_v6 = vmul.f32 0.3, %v8841_v3  ;;  %v8845_v4 = vld [vmem:[#allocation80_spill] sm:$0xff]  ;;  %vm8853_vm13 = vcmp.ge.f32.partialorder %v8635_v30, 0.0 }
 0x450   :  { %8830 = vst [vmem:[#allocation115_spill] sm:$0xff] %v6821_v25  ;;  %v6841_v12 = vmul.f32 0.3, %v8839_v49  ;;  %8844 = vst [vmem:[#allocation146_spill] sm:$0xff] %v6847_v54  ;;  %v3216_v44 = vsel %vm2928_vm14, %v8629_v2, %v8845_v4  ;;  %v8846_v25 = vld [vmem:[#allocation38_spill] sm:$0xff]  ;;  %v8847_v45 = vld [vmem:[#allocation40_spill] sm:$0xff] }
 0x451   :  { %8842 = vst [vmem:[#allocation34_spill] sm:$0xff] %v6844_v6  ;;  %v8849_v6 = vld [vmem:[#allocation14_spill] sm:$0xff]  ;;  %vm8851_vm14 = vcmp.ge.f32.partialorder %v8762_v58, 0.0  ;;  %v8852_v4 = vld [vmem:[#allocation3_spill] sm:$0xff]  ;;  %v8854_v3 = vld [vmem:[#allocation5_spill] sm:$0xff] }
 0x452   :  { %8840 = vst [vmem:[#allocation114_spill] sm:$0xff] %v6841_v12  ;;  %v8848_v12 = vld [vmem:[#allocation43_spill] sm:$0xff]  ;;  %v3217_v54 = vsel %vm2929_vm15, %v8631_v23, %v8849_v6  ;;  %v8850_v21 = vld [vmem:[#allocation10_spill] sm:$0xff]  ;;  %v3219_v17 = vsel %vm8853_vm13, %v8635_v30, %v8852_v4  ;;  %v3220_v49 = vsel %vm8855_vm1, %v8637_v42, %v8854_v3  ;;  %3360 = vst [vmem:[%s7603_s4 + $0x168] sm:$0xff] %v3216_v44  ;;  %vm8861_vm1 = vcmp.ge.f32.partialorder %v8641_v5, 0.0 }
 0x453   :  { %v3218_v2 = vsel %vm8851_vm14, %v8762_v58, %v8850_v21  ;;  %v8856_v23 = vld [vmem:[#allocation42_spill] sm:$0xff]  ;;  %v8857_v6 = vld [vmem:[#allocation44_spill] sm:$0xff]  ;;  %v8860_v4 = vld [vmem:[#allocation7_spill] sm:$0xff]  ;;  %vm8863_vm13 = vcmp.ge.f32.partialorder %v8643_v40, 0.0  ;;  %vm8865_vm14 = vcmp.ge.f32.partialorder %v8771_v13, 0.0  ;;  %3361 = vst [vmem:[%s7603_s4 + $0x170] sm:$0xff] %v3217_v54 }
 0x454   :  { %vm2977_vm15 = vcmp.ge.f32.partialorder %v8856_v23, 0.0  ;;  %vm2978_vm0 = vcmp.ge.f32.partialorder %v8857_v6, 0.0  ;;  %v8859_v21 = vld [vmem:[#allocation2_spill] sm:$0xff]  ;;  %v3222_v42 = vsel %vm8861_vm1, %v8641_v5, %v8860_v4  ;;  %v8862_v3 = vld [vmem:[#allocation9_spill] sm:$0xff]  ;;  %v8864_v6 = vld [vmem:[#allocation8_spill] sm:$0xff]  ;;  %3362 = vst [vmem:[%s7603_s4 + $0x178] sm:$0xff] %v3218_v2 }
 0x455   :  { %v3221_v30 = vsel %vm2933_vm3, %v8770_v7, %v8859_v21  ;;  %v3223_v44 = vsel %vm8863_vm13, %v8643_v40, %v8862_v3  ;;  %v3224_v58 = vsel %vm8865_vm14, %v8771_v13, %v8864_v6  ;;  %3363 = vst [vmem:[%s7603_s4 + $0x180] sm:$0xff] %v3219_v17  ;;  %3364 = vst [vmem:[%s7603_s4 + $0x188] sm:$0xff] %v3220_v49  ;;  %v8866_v40 = vld [vmem:[#allocation48_spill] sm:$0xff]  ;;  %vm2982_vm14 = vcmp.ge.f32.partialorder %v8733_v33, 0.0  ;;  %v8867_v5 = vld [vmem:[#allocation57_spill] sm:$0xff] }
 0x456   :  { %v8868_v7 = vld [vmem:[#allocation59_spill] sm:$0xff]  ;;  %v8870_v2 = vld [vmem:[#allocation13_spill] sm:$0xff]  ;;  %v8872_v6 = vld [vmem:[#allocation16_spill] sm:$0xff]  ;;  %vm8873_vm3 = vcmp.ge.f32.partialorder %v8779_v35, 0.0  ;;  %vm8875_vm1 = vcmp.ge.f32.partialorder %v8653_v1, 0.0  ;;  %3365 = vst [vmem:[%s7603_s4 + $0x190] sm:$0xff] %v3221_v30 }
 0x457   :  { %v8869_v13 = vld [vmem:[#allocation15_spill] sm:$0xff]  ;;  %v3226_v17 = vsel %vm8871_vm2, %v8649_v60, %v8870_v2  ;;  %v3227_v49 = vsel %vm8873_vm3, %v8779_v35, %v8872_v6  ;;  %v8874_v21 = vld [vmem:[#allocation21_spill] sm:$0xff]  ;;  %3366 = vst [vmem:[%s7603_s4 + $0x198] sm:$0xff] %v3222_v42  ;;  %3367 = vst [vmem:[%s7603_s4 + $0x1a0] sm:$0xff] %v3223_v44  ;;  %vm8881_vm13 = vcmp.ge.f32.partialorder %v8657_v36, 0.0  ;;  %vm8883_vm2 = vcmp.ge.f32.partialorder %v5717_v51, 0.0 }
 0x458   :  { %v3225_v54 = vsel %vm2937_vm4, %v8647_v20, %v8869_v13  ;;  %v3228_v4 = vsel %vm8875_vm1, %v8653_v1, %v8874_v21  ;;  %3368 = vst [vmem:[%s7603_s4 + $0x1a8] sm:$0xff] %v3224_v58  ;;  %v8876_v60 = vld [vmem:[#allocation55_spill] sm:$0xff]  ;;  %v8877_v20 = vld [vmem:[#allocation58_spill] sm:$0xff]  ;;  %v8878_v1 = vld [vmem:[#allocation65_spill] sm:$0xff]  ;;  %vm8885_vm3 = vcmp.ge.f32.partialorder %v5721_v27, 0.0  ;;  %vm8891_vm1 = vcmp.ge.f32.partialorder %v5729_v0, 0.0 }
 0x459   :  { %vm2986_vm4 = vcmp.ge.f32.partialorder %v8877_v20, 0.0  ;;  %v8879_v35 = vld [vmem:[#allocation18_spill] sm:$0xff]  ;;  %v8880_v42 = vld [vmem:[#allocation23_spill] sm:$0xff]  ;;  %v8882_v44 = vld [vmem:[#allocation25_spill] sm:$0xff]  ;;  %3369 = vst [vmem:[%s7603_s4 + $0x1b0] sm:$0xff] %v3225_v54 }
 0x45a   :  { %v3229_v30 = vsel %vm2941_vm5, %v8655_v11, %v8879_v35  ;;  %v3230_v3 = vsel %vm8881_vm13, %v8657_v36, %v8880_v42  ;;  %v3231_v58 = vsel %vm8883_vm2, %v5717_v51, %v8882_v44  ;;  %v8884_v13 = vld [vmem:[#allocation22_spill] sm:$0xff]  ;;  %3370 = vst [vmem:[%s7603_s4 + $0x1b8] sm:$0xff] %v3226_v17  ;;  %3371 = vst [vmem:[%s7603_s4 + $0x1c0] sm:$0xff] %v3227_v49  ;;  %v8886_v51 = vld [vmem:[#allocation63_spill] sm:$0xff]  ;;  %vm8893_vm5 = vcmp.ge.f32.partialorder %v5733_v46, 0.0 }
 0x45b   :  { %v3232_v2 = vsel %vm8885_vm3, %v5721_v27, %v8884_v13  ;;  %3372 = vst [vmem:[%s7603_s4 + $0x1c8] sm:$0xff] %v3228_v4  ;;  %v8887_v36 = vld [vmem:[#allocation66_spill] sm:$0xff]  ;;  %v8888_v27 = vld [vmem:[#allocation75_spill] sm:$0xff]  ;;  %v8892_v49 = vld [vmem:[#allocation120_spill] sm:$0xff]  ;;  %vm8895_vm2 = vcmp.ge.f32.partialorder %v5737_v22, 0.0  ;;  %vm8902_vm3 = vcmp.ge.f32.partialorder %v5745_v52, 0.0 }
 0x45c   :  { %vm2990_vm13 = vcmp.ge.f32.partialorder %v8887_v36, 0.0  ;;  %v8889_v11 = vld [vmem:[#allocation118_spill] sm:$0xff]  ;;  %v8890_v17 = vld [vmem:[#allocation119_spill] sm:$0xff]  ;;  %v3235_v21 = vsel %vm8893_vm5, %v5733_v46, %v8892_v49  ;;  %v8894_v4 = vld [vmem:[#allocation121_spill] sm:$0xff]  ;;  %3373 = vst [vmem:[%s7603_s4 + $0x1d0] sm:$0xff] %v3229_v30  ;;  %vm8906_vm5 = vcmp.ge.f32.partialorder %v5753_v24, 0.0 }
 0x45d   :  { %v3233_v54 = vsel %vm2945_vm6, %v5725_v34, %v8889_v11  ;;  %v3234_v6 = vsel %vm8891_vm1, %v5729_v0, %v8890_v17  ;;  %v3236_v35 = vsel %vm8895_vm2, %v5737_v22, %v8894_v4  ;;  %3374 = vst [vmem:[%s7603_s4 + $0x1d8] sm:$0xff] %v3230_v3  ;;  %3375 = vst [vmem:[%s7603_s4 + $0x1e0] sm:$0xff] %v3231_v58  ;;  %v8896_v34 = vld [vmem:[#allocation71_spill] sm:$0xff]  ;;  %v8897_v0 = vld [vmem:[#allocation74_spill] sm:$0xff]  ;;  %vm8904_vm6 = vcmp.ge.f32.partialorder %v5749_v16, 0.0 }
 0x45e   :  { %3376 = vst [vmem:[%s7603_s4 + $0x1e8] sm:$0xff] %v3232_v2  ;;  %vm2994_vm1 = vcmp.ge.f32.partialorder %v8897_v0, 0.0  ;;  %v8898_v46 = vld [vmem:[#allocation81_spill] sm:$0xff]  ;;  %v8899_v22 = vld [vmem:[#allocation83_spill] sm:$0xff]  ;;  %v8900_v30 = vld [vmem:[#allocation122_spill] sm:$0xff]  ;;  %vm8912_vm2 = vcmp.ge.f32.partialorder %v5761_v9, 0.0 }
 0x45f   :  { %v3237_v42 = vsel %vm2949_vm7, %v5741_v28, %v8900_v30  ;;  %v8901_v3 = vld [vmem:[#allocation123_spill] sm:$0xff]  ;;  %v8903_v58 = vld [vmem:[#allocation124_spill] sm:$0xff]  ;;  %v8905_v2 = vld [vmem:[#allocation125_spill] sm:$0xff]  ;;  %3377 = vst [vmem:[%s7603_s4 + $0x1f0] sm:$0xff] %v3233_v54  ;;  %vm8914_vm7 = vcmp.ge.f32.partialorder %v5765_v38, 0.0 }
 0x460   :  { %v3238_v44 = vsel %vm8902_vm3, %v5745_v52, %v8901_v3  ;;  %v3239_v13 = vsel %vm8904_vm6, %v5749_v16, %v8903_v58  ;;  %v3240_v11 = vsel %vm8906_vm5, %v5753_v24, %v8905_v2  ;;  %3378 = vst [vmem:[%s7603_s4 + $0x1f8] sm:$0xff] %v3234_v6  ;;  %3379 = vst [vmem:[%s7603_s4 + $0x200] sm:$0xff] %v3235_v21  ;;  %v8907_v28 = vld [vmem:[#allocation79_spill] sm:$0xff]  ;;  %v8908_v52 = vld [vmem:[#allocation82_spill] sm:$0xff]  ;;  %vm8916_vm6 = vcmp.ge.f32.partialorder %v5769_v31, 0.0 }
 0x461   :  { %3380 = vst [vmem:[%s7603_s4 + $0x208] sm:$0xff] %v3236_v35  ;;  %vm2998_vm3 = vcmp.ge.f32.partialorder %v8908_v52, 0.0  ;;  %v8909_v16 = vld [vmem:[#allocation89_spill] sm:$0xff]  ;;  %v8910_v24 = vld [vmem:[#allocation126_spill] sm:$0xff]  ;;  %v8911_v17 = vld [vmem:[#allocation127_spill] sm:$0xff]  ;;  %vm8922_vm5 = vcmp.ge.f32.partialorder %v8675_v41, 0.0 }
 0x462   :  { %v3241_v54 = vsel %vm2953_vm8, %v5757_v62, %v8910_v24  ;;  %v3242_v6 = vsel %vm8912_vm2, %v5761_v9, %v8911_v17  ;;  %v8913_v49 = vld [vmem:[#allocation128_spill] sm:$0xff]  ;;  %v8915_v4 = vld [vmem:[#allocation129_spill] sm:$0xff]  ;;  %3381 = vst [vmem:[%s7603_s4 + $0x210] sm:$0xff] %v3237_v42  ;;  %3382 = vst [vmem:[%s7603_s4 + $0x218] sm:$0xff] %v3238_v44  ;;  %vm8924_vm8 = vcmp.ge.f32.partialorder %v8677_v47, 0.0 }
 0x463   :  { %v3243_v21 = vsel %vm8914_vm7, %v5765_v38, %v8913_v49  ;;  %v3244_v35 = vsel %vm8916_vm6, %v5769_v31, %v8915_v4  ;;  %3383 = vst [vmem:[%s7603_s4 + $0x220] sm:$0xff] %v3239_v13  ;;  %3384 = vst [vmem:[%s7603_s4 + $0x228] sm:$0xff] %v3240_v11  ;;  %v8917_v62 = vld [vmem:[#allocation87_spill] sm:$0xff]  ;;  %v8918_v9 = vld [vmem:[#allocation90_spill] sm:$0xff]  ;;  %vm8926_vm7 = vcmp.ge.f32.partialorder %v8679_v14, 0.0  ;;  %vm8932_vm6 = vcmp.ge.f32.partialorder %v8684_v53, 0.0 }
 0x464   :  { %vm3002_vm2 = vcmp.ge.f32.partialorder %v8918_v9, 0.0  ;;  %v8919_v38 = vld [vmem:[#allocation99_spill] sm:$0xff]  ;;  %v8920_v31 = vld [vmem:[#allocation130_spill] sm:$0xff]  ;;  %v8921_v42 = vld [vmem:[#allocation112_spill] sm:$0xff]  ;;  %3385 = vst [vmem:[%s7603_s4 + $0x230] sm:$0xff] %v3241_v54 }
 0x465   :  { %v3245_v30 = vsel %vm2957_vm9, %v5773_v37, %v8920_v31  ;;  %v3246_v3 = vsel %vm8922_vm5, %v8675_v41, %v8921_v42  ;;  %v8923_v44 = vld [vmem:[#allocation24_spill] sm:$0xff]  ;;  %v8925_v13 = vld [vmem:[#allocation27_spill] sm:$0xff]  ;;  %3386 = vst [vmem:[%s7603_s4 + $0x238] sm:$0xff] %v3242_v6  ;;  %3387 = vst [vmem:[%s7603_s4 + $0x240] sm:$0xff] %v3243_v21  ;;  %vm3006_vm5 = vcmp.ge.f32.partialorder %v8794_v48, 0.0  ;;  %vm8934_vm9 = vcmp.ge.f32.partialorder %v8686_v10, 0.0 }
 0x466   :  { %v3247_v58 = vsel %vm8924_vm8, %v8677_v47, %v8923_v44  ;;  %v3248_v2 = vsel %vm8926_vm7, %v8679_v14, %v8925_v13  ;;  %3388 = vst [vmem:[%s7603_s4 + $0x248] sm:$0xff] %v3244_v35  ;;  %v8927_v37 = vld [vmem:[#allocation95_spill] sm:$0xff]  ;;  %v8928_v47 = vld [vmem:[#allocation105_spill] sm:$0xff]  ;;  %v8933_v17 = vld [vmem:[#allocation26_spill] sm:$0xff]  ;;  %vm8936_vm8 = vcmp.ge.f32.partialorder %v8689_v55, 0.0  ;;  %vm8941_vm7 = vcmp.ge.f32.partialorder %v8693_v61, 0.0 }
 0x467   :  { %v8929_v14 = vld [vmem:[#allocation107_spill] sm:$0xff]  ;;  %v8930_v41 = vld [vmem:[#allocation29_spill] sm:$0xff]  ;;  %v3251_v6 = vsel %vm8934_vm9, %v8686_v10, %v8933_v17  ;;  %v8935_v49 = vld [vmem:[#allocation28_spill] sm:$0xff]  ;;  %3389 = vst [vmem:[%s7603_s4 + $0x250] sm:$0xff] %v3245_v30  ;;  %vm8945_vm9 = vcmp.ge.f32.partialorder %v8699_v50, 0.0 }
 0x468   :  { %v3249_v11 = vsel %vm2961_vm10, %v8682_v8, %v8930_v41  ;;  %v8931_v24 = vld [vmem:[#allocation77_spill] sm:$0xff]  ;;  %v3252_v21 = vsel %vm8936_vm8, %v8689_v55, %v8935_v49  ;;  %3390 = vst [vmem:[%s7603_s4 + $0x258] sm:$0xff] %v3246_v3  ;;  %3391 = vst [vmem:[%s7603_s4 + $0x260] sm:$0xff] %v3247_v58  ;;  %v8938_v10 = vld [vmem:[#allocation46_spill] sm:$0xff]  ;;  %vm8943_vm10 = vcmp.ge.f32.partialorder %v8697_v19, 0.0  ;;  %vm8952_vm8 = vcmp.ge.f32.partialorder %v8704_v15, 0.0 }
 0x469   :  { %v3250_v54 = vsel %vm8932_vm6, %v8684_v53, %v8931_v24  ;;  %3392 = vst [vmem:[%s7603_s4 + $0x268] sm:$0xff] %v3248_v2  ;;  %v8937_v53 = vld [vmem:[#allocation106_spill] sm:$0xff]  ;;  %v8939_v8 = vld [vmem:[#allocation31_spill] sm:$0xff]  ;;  %v8940_v4 = vld [vmem:[#allocation76_spill] sm:$0xff] }
 0x46a   :  { %vm3010_vm6 = vcmp.ge.f32.partialorder %v8937_v53, 0.0  ;;  %v3253_v55 = vsel %vm2965_vm11, %v8691_v43, %v8939_v8  ;;  %v3254_v35 = vsel %vm8941_vm7, %v8693_v61, %v8940_v4  ;;  %v8942_v31 = vld [vmem:[#allocation33_spill] sm:$0xff]  ;;  %v8944_v42 = vld [vmem:[#allocation30_spill] sm:$0xff]  ;;  %3393 = vst [vmem:[%s7603_s4 + $0x270] sm:$0xff] %v3249_v11  ;;  %3394 = vst [vmem:[%s7603_s4 + $0x278] sm:$0xff] %v3250_v54  ;;  %vm8966_vm7 = vcmp.ge.f32.partialorder %v8847_v45, 0.0 }
 0x46b   :  { %v3255_v30 = vsel %vm8943_vm10, %v8697_v19, %v8942_v31  ;;  %v3256_v3 = vsel %vm8945_vm9, %v8699_v50, %v8944_v42  ;;  %3395 = vst [vmem:[%s7603_s4 + $0x280] sm:$0xff] %v3251_v6  ;;  %3396 = vst [vmem:[%s7603_s4 + $0x288] sm:$0xff] %v3252_v21  ;;  %v8946_v61 = vld [vmem:[#allocation53_spill] sm:$0xff]  ;;  %v8947_v43 = vld [vmem:[#allocation56_spill] sm:$0xff]  ;;  %vm8964_vm9 = vcmp.ge.f32.partialorder %v8846_v25, 0.0 }
 0x46c   :  { %v8948_v50 = vld [vmem:[#allocation52_spill] sm:$0xff]  ;;  %v8949_v19 = vld [vmem:[#allocation54_spill] sm:$0xff]  ;;  %v8953_v41 = vld [vmem:[#allocation11_spill] sm:$0xff]  ;;  %3397 = vst [vmem:[%s7603_s4 + $0x290] sm:$0xff] %v3253_v55 }
 0x46d   :  { %v8950_v44 = vld [vmem:[#allocation32_spill] sm:$0xff]  ;;  %v8951_v13 = vld [vmem:[#allocation78_spill] sm:$0xff]  ;;  %v8954_v11 = vld [vmem:[#allocation39_spill] sm:$0xff]  ;;  %3398 = vst [vmem:[%s7603_s4 + $0x298] sm:$0xff] %v3254_v35 }
 0x46e   :  { %v3257_v58 = vsel %vm2969_vm12, %v8836_v39, %v8950_v44  ;;  %v3258_v2 = vsel %vm8952_vm8, %v8704_v15, %v8951_v13  ;;  %vm8955_vm11 = vcmp.ge.f32.partialorder %v8954_v11, 0.0  ;;  %v8956_v54 = vld [vmem:[#allocation35_spill] sm:$0xff]  ;;  %v8957_v17 = vld [vmem:[#allocation41_spill] sm:$0xff]  ;;  %3399 = vst [vmem:[%s7603_s4 + $0x2a0] sm:$0xff] %v3255_v30  ;;  %3400 = vst [vmem:[%s7603_s4 + $0x2a8] sm:$0xff] %v3256_v3  ;;  %vm8968_vm12 = vcmp.ge.f32.partialorder %v8848_v12, 0.0 }
 0x46f   :  { %v3259_v24 = vsel %vm8955_vm11, %v8954_v11, %v8953_v41  ;;  %vm8958_vm10 = vcmp.ge.f32.partialorder %v8957_v17, 0.0  ;;  %v8959_v15 = vld [vmem:[#allocation61_spill] sm:$0xff]  ;;  %v8960_v39 = vld [vmem:[#allocation64_spill] sm:$0xff]  ;;  %v8962_v21 = vld [vmem:[#allocation62_spill] sm:$0xff]  ;;  %vm8970_vm11 = vcmp.ge.f32.partialorder %v8719_v57, 0.0  ;;  %3401 = vst [vmem:[%s7603_s4 + $0x2b0] sm:$0xff] %v3257_v58 }
 0x470   :  { %v3260_v6 = vsel %vm8958_vm10, %v8957_v17, %v8956_v54  ;;  %vm3018_vm8 = vcmp.ge.f32.partialorder %v8960_v39, 0.0  ;;  %v8961_v49 = vld [vmem:[#allocation60_spill] sm:$0xff]  ;;  %vm3020_vm10 = vcmp.ge.f32.partialorder %v8962_v21, 0.0  ;;  %v8963_v8 = vld [vmem:[#allocation37_spill] sm:$0xff]  ;;  %3402 = vst [vmem:[%s7603_s4 + $0x2b8] sm:$0xff] %v3258_v2  ;;  %3403 = vst [vmem:[%s7603_s4 + $0x2c0] sm:$0xff] %v3259_v24 }
 0x471   :  { %v3261_v55 = vsel %vm8964_vm9, %v8846_v25, %v8963_v8  ;;  %v8965_v4 = vld [vmem:[#allocation85_spill] sm:$0xff]  ;;  %v8967_v31 = vld [vmem:[#allocation36_spill] sm:$0xff]  ;;  %3404 = vst [vmem:[%s7603_s4 + $0x2c8] sm:$0xff] %v3260_v6  ;;  %v8980_v54 = vld [vmem:[#allocation86_spill] sm:$0xff] }
 0x472   :  { %v3262_v35 = vsel %vm8966_vm7, %v8847_v45, %v8965_v4  ;;  %v3263_v30 = vsel %vm8968_vm12, %v8848_v12, %v8967_v31  ;;  %v8969_v42 = vld [vmem:[#allocation88_spill] sm:$0xff]  ;;  %v8971_v25 = vld [vmem:[#allocation69_spill] sm:$0xff]  ;;  %v8974_v45 = vld [vmem:[#allocation70_spill] sm:$0xff]  ;;  %vm8979_vm7 = vcmp.ge.f32.partialorder %v8726_v59, 0.0  ;;  %3405 = vst [vmem:[%s7603_s4 + $0x2d0] sm:$0xff] %v3261_v55 }
 0x473   :  { %v3264_v3 = vsel %vm8970_vm11, %v8719_v57, %v8969_v42  ;;  %v8972_v12 = vld [vmem:[#allocation72_spill] sm:$0xff]  ;;  %vm3024_vm11 = vcmp.ge.f32.partialorder %v8974_v45, 0.0  ;;  %v8978_v11 = vld [vmem:[#allocation45_spill] sm:$0xff]  ;;  %v8981_v17 = vld [vmem:[#allocation51_spill] sm:$0xff]  ;;  %3406 = vst [vmem:[%s7603_s4 + $0x2d8] sm:$0xff] %v3262_v35 }
 0x474   :  { %vm3022_vm9 = vcmp.ge.f32.partialorder %v8972_v12, 0.0  ;;  %v8973_v57 = vld [vmem:[#allocation68_spill] sm:$0xff]  ;;  %v3267_v24 = vsel %vm8979_vm7, %v8726_v59, %v8978_v11  ;;  %vm8982_vm12 = vcmp.ge.f32.partialorder %v8981_v17, 0.0  ;;  %3407 = vst [vmem:[%s7603_s4 + $0x2e0] sm:$0xff] %v3263_v30  ;;  %3408 = vst [vmem:[%s7603_s4 + $0x2e8] sm:$0xff] %v3264_v3  ;;  %v8985_v8 = vld [vmem:[#allocation49_spill] sm:$0xff] }
 0x475   :  { %v8975_v44 = vld [vmem:[#allocation84_spill] sm:$0xff]  ;;  %v3268_v6 = vsel %vm8982_vm12, %v8981_v17, %v8980_v54  ;;  %vm8986_vm7 = vcmp.ge.f32.partialorder %v8866_v40, 0.0  ;;  %v8987_v4 = vld [vmem:[#allocation93_spill] sm:$0xff]  ;;  %v8988_v31 = vld [vmem:[#allocation50_spill] sm:$0xff]  ;;  %vm8989_vm12 = vcmp.ge.f32.partialorder %v8867_v5, 0.0  ;;  %3411 = vst [vmem:[%s7603_s4 + $0x300] sm:$0xff] %v3267_v24 }
 0x476   :  { %v3265_v58 = vsel %vm2977_vm15, %v8856_v23, %v8975_v44  ;;  %v8976_v13 = vld [vmem:[#allocation12_spill] sm:$0xff]  ;;  %v8984_v23 = vld [vmem:[#allocation117_spill] sm:$0xff]  ;;  %v3269_v55 = vsel %vm8986_vm7, %v8866_v40, %v8985_v8  ;;  %v3270_v35 = vsel %vm2982_vm14, %v8733_v33, %v8987_v4  ;;  %v3271_v30 = vsel %vm8989_vm12, %v8867_v5, %v8988_v31  ;;  %v8990_v42 = vld [vmem:[#allocation131_spill] sm:$0xff]  ;;  %3412 = vst [vmem:[%s7603_s4 + $0x308] sm:$0xff] %v3268_v6 }
 0x477   :  { %v8977_v2 = vld [vmem:[#allocation44_spill] sm:$0xff]  ;;  %vm3026_vm15 = vcmp.ge.f32.partialorder %v8984_v23, 0.0  ;;  %3409 = vst [vmem:[%s7603_s4 + $0x2f0] sm:$0xff] %v3265_v58  ;;  %vm8993_vm14 = vcmp.ge.f32.partialorder %v8876_v60, 0.0  ;;  %v8995_v44 = vld [vmem:[#allocation133_spill] sm:$0xff]  ;;  %vm8998_vm7 = vcmp.ge.f32.partialorder %v8748_v29, 0.0 }
 0x478   :  { %v3266_v41 = vsel %vm2978_vm0, %v8977_v2, %v8976_v13  ;;  %v8983_v59 = vld [vmem:[#allocation116_spill] sm:$0xff]  ;;  %vm8991_vm0 = vcmp.ge.f32.partialorder %v8868_v7, 0.0  ;;  %3413 = vst [vmem:[%s7603_s4 + $0x310] sm:$0xff] %v3269_v55  ;;  %3414 = vst [vmem:[%s7603_s4 + $0x318] sm:$0xff] %v3270_v35  ;;  %vm9003_vm12 = vcmp.ge.f32.partialorder %v8755_v63, 0.0  ;;  %v9004_v24 = vld [vmem:[#allocation73_spill] sm:$0xff] }
 0x479   :  { %v3272_v3 = vsel %vm8991_vm0, %v8868_v7, %v8990_v42  ;;  %3410 = vst [vmem:[%s7603_s4 + $0x2f8] sm:$0xff] %v3266_v41  ;;  %v8992_v33 = vld [vmem:[#allocation96_spill] sm:$0xff]  ;;  %vm8996_vm0 = vcmp.ge.f32.partialorder %v8878_v1, 0.0  ;;  %3415 = vst [vmem:[%s7603_s4 + $0x320] sm:$0xff] %v3271_v30  ;;  %v9002_v41 = vld [vmem:[#allocation94_spill] sm:$0xff] }
 0x47a   :  { %v3273_v40 = vsel %vm8993_vm14, %v8876_v60, %v8992_v33  ;;  %v8994_v5 = vld [vmem:[#allocation132_spill] sm:$0xff]  ;;  %v3275_v58 = vsel %vm8996_vm0, %v8878_v1, %v8995_v44  ;;  %3416 = vst [vmem:[%s7603_s4 + $0x328] sm:$0xff] %v3272_v3  ;;  %v3279_v11 = vsel %vm9003_vm12, %v8755_v63, %v9002_v41  ;;  %vm9005_vm14 = vcmp.ge.f32.partialorder %v8888_v27, 0.0  ;;  %v9006_v63 = vld [vmem:[#allocation134_spill] sm:$0xff]  ;;  %v9011_v8 = vld [vmem:[#allocation135_spill] sm:$0xff] }
 0x47b   :  { %v3274_v7 = vsel %vm2986_vm4, %v8877_v20, %v8994_v5  ;;  %v8997_v13 = vld [vmem:[#allocation92_spill] sm:$0xff]  ;;  %vm9000_vm4 = vcmp.ge.f32.partialorder %v8886_v51, 0.0  ;;  %v9001_v20 = vld [vmem:[#allocation67_spill] sm:$0xff]  ;;  %v3280_v54 = vsel %vm9005_vm14, %v8888_v27, %v9004_v24  ;;  %3417 = vst [vmem:[%s7603_s4 + $0x330] sm:$0xff] %v3273_v40  ;;  %3419 = vst [vmem:[%s7603_s4 + $0x340] sm:$0xff] %v3275_v58  ;;  %vm9010_vm0 = vcmp.ge.f32.partialorder %v8898_v46, 0.0 }
 0x47c   :  { %v3276_v2 = vsel %vm8998_vm7, %v8748_v29, %v8997_v13  ;;  %v8999_v60 = vld [vmem:[#allocation4_spill] sm:$0xff]  ;;  %v3278_v1 = vsel %vm2990_vm13, %v8887_v36, %v9001_v20  ;;  %3418 = vst [vmem:[%s7603_s4 + $0x338] sm:$0xff] %v3274_v7  ;;  %vm9007_vm13 = vcmp.ge.f32.partialorder %v8896_v34, 0.0  ;;  %v9008_v36 = vld [vmem:[#allocation101_spill] sm:$0xff]  ;;  %v9009_v17 = vld [vmem:[#allocation6_spill] sm:$0xff]  ;;  %vm9012_vm7 = vcmp.ge.f32.partialorder %v8899_v22, 0.0 }
 0x47d   :  { %v3277_v29 = vsel %vm9000_vm4, %v8886_v51, %v8999_v60  ;;  %3420 = vst [vmem:[%s7603_s4 + $0x348] sm:$0xff] %v3276_v2  ;;  %v3281_v51 = vsel %vm9007_vm13, %v8896_v34, %v9006_v63  ;;  %v3282_v27 = vsel %vm2994_vm1, %v8897_v0, %v9008_v36  ;;  %v3283_v6 = vsel %vm9010_vm0, %v8898_v46, %v9009_v17  ;;  %v9013_v34 = vld [vmem:[#allocation104_spill] sm:$0xff]  ;;  %v9015_v46 = vld [vmem:[#allocation17_spill] sm:$0xff]  ;;  %v9016_v4 = vld [vmem:[#allocation19_spill] sm:$0xff] }
 0x47e   :  { %v3284_v55 = vsel %vm9012_vm7, %v8899_v22, %v9011_v8  ;;  %3421 = vst [vmem:[%s7603_s4 + $0x350] sm:$0xff] %v3277_v29  ;;  %3422 = vst [vmem:[%s7603_s4 + $0x358] sm:$0xff] %v3278_v1  ;;  %vm9014_vm1 = vcmp.ge.f32.partialorder %v8907_v28, 0.0  ;;  %v3286_v22 = vsel %vm2998_vm3, %v8908_v52, %v9015_v46  ;;  %vm9017_vm4 = vcmp.ge.f32.partialorder %v8909_v16, 0.0  ;;  %v9018_v31 = vld [vmem:[#allocation100_spill] sm:$0xff]  ;;  %v9022_v52 = vld [vmem:[#allocation91_spill] sm:$0xff] }
 0x47f   :  { %3423 = vst [vmem:[%s7603_s4 + $0x360] sm:$0xff] %v3279_v11  ;;  %3424 = vst [vmem:[%s7603_s4 + $0x368] sm:$0xff] %v3280_v54  ;;  %v3285_v0 = vsel %vm9014_vm1, %v8907_v28, %v9013_v34  ;;  %v3287_v35 = vsel %vm9017_vm4, %v8909_v16, %v9016_v4  ;;  %vm9019_vm12 = vcmp.ge.f32.partialorder %v8780_v26, 0.0  ;;  %v9020_v28 = vld [vmem:[#allocation20_spill] sm:$0xff]  ;;  %vm9021_vm3 = vcmp.ge.f32.partialorder %v8917_v62, 0.0  ;;  %v9023_v42 = vld [vmem:[#allocation102_spill] sm:$0xff] }
 0x480   :  { %v3288_v30 = vsel %vm9019_vm12, %v8780_v26, %v9018_v31  ;;  %3425 = vst [vmem:[%s7603_s4 + $0x370] sm:$0xff] %v3281_v51  ;;  %3426 = vst [vmem:[%s7603_s4 + $0x378] sm:$0xff] %v3282_v27  ;;  %v3289_v26 = vsel %vm9021_vm3, %v8917_v62, %v9020_v28  ;;  %v3290_v16 = vsel %vm3002_vm2, %v8918_v9, %v9022_v52  ;;  %vm9024_vm14 = vcmp.ge.f32.partialorder %v8787_v56, 0.0  ;;  %v9025_v33 = vld [vmem:[#allocation97_spill] sm:$0xff]  ;;  %v9030_v5 = vld [vmem:[#allocation98_spill] sm:$0xff] }
 0x481   :  { %3427 = vst [vmem:[%s7603_s4 + $0x380] sm:$0xff] %v3283_v6  ;;  %3428 = vst [vmem:[%s7603_s4 + $0x388] sm:$0xff] %v3284_v55  ;;  %v3291_v3 = vsel %vm9024_vm14, %v8787_v56, %v9023_v42  ;;  %vm9026_vm13 = vcmp.ge.f32.partialorder %v8919_v38, 0.0  ;;  %v9027_v56 = vld [vmem:[#allocation136_spill] sm:$0xff]  ;;  %vm9028_vm2 = vcmp.ge.f32.partialorder %v8927_v37, 0.0  ;;  %v9029_v9 = vld [vmem:[#allocation109_spill] sm:$0xff] }
 0x482   :  { %v3292_v40 = vsel %vm9026_vm13, %v8919_v38, %v9025_v33  ;;  %3429 = vst [vmem:[%s7603_s4 + $0x390] sm:$0xff] %v3285_v0  ;;  %3430 = vst [vmem:[%s7603_s4 + $0x398] sm:$0xff] %v3286_v22  ;;  %v3293_v62 = vsel %vm9028_vm2, %v8927_v37, %v9027_v56  ;;  %v3294_v38 = vsel %vm3006_vm5, %v8794_v48, %v9029_v9  ;;  %vm9031_vm0 = vcmp.ge.f32.partialorder %v8928_v47, 0.0  ;;  %v9032_v44 = vld [vmem:[#allocation137_spill] sm:$0xff]  ;;  %v9034_v48 = vld [vmem:[#allocation111_spill] sm:$0xff] }
 0x483   :  { %3431 = vst [vmem:[%s7603_s4 + $0x3a0] sm:$0xff] %v3287_v35  ;;  %3432 = vst [vmem:[%s7603_s4 + $0x3a8] sm:$0xff] %v3288_v30  ;;  %v3295_v7 = vsel %vm9031_vm0, %v8928_v47, %v9030_v5  ;;  %vm9033_vm7 = vcmp.ge.f32.partialorder %v8929_v14, 0.0  ;;  %vm9035_vm5 = vcmp.ge.f32.partialorder %v8801_v32, 0.0  ;;  %v9036_v47 = vld [vmem:[#allocation103_spill] sm:$0xff]  ;;  %v9037_v13 = vld [vmem:[#allocation138_spill] sm:$0xff] }
 0x484   :  { %v3296_v58 = vsel %vm9033_vm7, %v8929_v14, %v9032_v44  ;;  %3433 = vst [vmem:[%s7603_s4 + $0x3b0] sm:$0xff] %v3289_v26  ;;  %3434 = vst [vmem:[%s7603_s4 + $0x3b8] sm:$0xff] %v3290_v16  ;;  %v3297_v37 = vsel %vm9035_vm5, %v8801_v32, %v9034_v48  ;;  %v3298_v14 = vsel %vm3010_vm6, %v8937_v53, %v9036_v47  ;;  %vm9038_vm1 = vcmp.ge.f32.partialorder %v8938_v10, 0.0  ;;  %v9039_v60 = vld [vmem:[#allocation108_spill] sm:$0xff]  ;;  %v9041_v32 = vld [vmem:[#allocation47_spill] sm:$0xff] }
 0x485   :  { %3435 = vst [vmem:[%s7603_s4 + $0x3c0] sm:$0xff] %v3291_v3  ;;  %3436 = vst [vmem:[%s7603_s4 + $0x3c8] sm:$0xff] %v3292_v40  ;;  %v3299_v2 = vsel %vm9038_vm1, %v8938_v10, %v9037_v13  ;;  %vm9040_vm4 = vcmp.ge.f32.partialorder %v8808_v18, 0.0  ;;  %vm9042_vm6 = vcmp.ge.f32.partialorder %v8946_v61, 0.0  ;;  %v9043_v53 = vld [vmem:[#allocation139_spill] sm:$0xff]  ;;  %vm9044_vm12 = vcmp.ge.f32.partialorder %v8947_v43, 0.0 }
 0x486   :  { %v3300_v29 = vsel %vm9040_vm4, %v8808_v18, %v9039_v60  ;;  %3437 = vst [vmem:[%s7603_s4 + $0x3d0] sm:$0xff] %v3293_v62  ;;  %3438 = vst [vmem:[%s7603_s4 + $0x3d8] sm:$0xff] %v3294_v38  ;;  %v3301_v18 = vsel %vm9042_vm6, %v8946_v61, %v9041_v32  ;;  %v3302_v10 = vsel %vm9044_vm12, %v8947_v43, %v9043_v53  ;;  %v9045_v20 = vld [vmem:[#allocation110_spill] sm:$0xff]  ;;  %vm9046_vm3 = vcmp.ge.f32.partialorder %v8948_v50, 0.0  ;;  %v9047_v41 = vld [vmem:[#allocation140_spill] sm:$0xff] }
 0x487   :  { %3439 = vst [vmem:[%s7603_s4 + $0x3e0] sm:$0xff] %v3295_v7  ;;  %3440 = vst [vmem:[%s7603_s4 + $0x3e8] sm:$0xff] %v3296_v58  ;;  %v3303_v1 = vsel %vm9046_vm3, %v8948_v50, %v9045_v20  ;;  %vm9048_vm14 = vcmp.ge.f32.partialorder %v8949_v19, 0.0  ;;  %v9049_v61 = vld [vmem:[#allocation141_spill] sm:$0xff]  ;;  %vm9050_vm13 = vcmp.ge.f32.partialorder %v8959_v15, 0.0  ;;  %v9052_v24 = vld [vmem:[#allocation142_spill] sm:$0xff] }
 0x488   :  { %v3304_v11 = vsel %vm9048_vm14, %v8949_v19, %v9047_v41  ;;  %3441 = vst [vmem:[%s7603_s4 + $0x3f0] sm:$0xff] %v3297_v37  ;;  %3442 = vst [vmem:[%s7603_s4 + $0x3f8] sm:$0xff] %v3298_v14  ;;  %v3305_v43 = vsel %vm9050_vm13, %v8959_v15, %v9049_v61  ;;  %v9051_v50 = vld [vmem:[#allocation113_spill] sm:$0xff]  ;;  %vm9053_vm2 = vcmp.ge.f32.partialorder %v8961_v49, 0.0  ;;  %v9054_v63 = vld [vmem:[#allocation143_spill] sm:$0xff] }
 0x489   :  { %3443 = vst [vmem:[%s7603_s4 + $0x400] sm:$0xff] %v3299_v2  ;;  %3444 = vst [vmem:[%s7603_s4 + $0x408] sm:$0xff] %v3300_v29  ;;  %v3306_v19 = vsel %vm3018_vm8, %v8960_v39, %v9051_v50  ;;  %v3307_v54 = vsel %vm9053_vm2, %v8961_v49, %v9052_v24  ;;  %v3308_v51 = vsel %vm3020_vm10, %v8962_v21, %v9054_v63  ;;  %v9055_v15 = vld [vmem:[#allocation115_spill] sm:$0xff]  ;;  %vm9056_vm8 = vcmp.ge.f32.partialorder %v8971_v25, 0.0  ;;  %v9057_v49 = vld [vmem:[#allocation144_spill] sm:$0xff] }
 0x48a   :  { %3445 = vst [vmem:[%s7603_s4 + $0x410] sm:$0xff] %v3301_v18  ;;  %3446 = vst [vmem:[%s7603_s4 + $0x418] sm:$0xff] %v3302_v10  ;;  %v3309_v39 = vsel %vm9056_vm8, %v8971_v25, %v9055_v15  ;;  %v3310_v21 = vsel %vm3022_vm9, %v8972_v12, %v9057_v49  ;;  %v9058_v36 = vld [vmem:[#allocation145_spill] sm:$0xff]  ;;  %vm9059_vm10 = vcmp.ge.f32.partialorder %v8973_v57, 0.0  ;;  %v9060_v17 = vld [vmem:[#allocation114_spill] sm:$0xff]  ;;  %vm9062_vm9 = vcmp.ge.f32.partialorder %v8983_v59, 0.0 }
 0x48b   :  { %3447 = vst [vmem:[%s7603_s4 + $0x420] sm:$0xff] %v3303_v1  ;;  %3448 = vst [vmem:[%s7603_s4 + $0x428] sm:$0xff] %v3304_v11  ;;  %v3311_v27 = vsel %vm9059_vm10, %v8973_v57, %v9058_v36  ;;  %v3312_v6 = vsel %vm3024_vm11, %v8974_v45, %v9060_v17  ;;  %v9061_v25 = vld [vmem:[#allocation34_spill] sm:$0xff] }
 0x48c   :  { %3449 = vst [vmem:[%s7603_s4 + $0x430] sm:$0xff] %v3305_v43  ;;  %3450 = vst [vmem:[%s7603_s4 + $0x438] sm:$0xff] %v3306_v19  ;;  %v3313_v12 = vsel %vm9062_vm9, %v8983_v59, %v9061_v25  ;;  %v9063_v57 = vld [vmem:[#allocation146_spill] sm:$0xff] }
 0x48d   :  { %3451 = vst [vmem:[%s7603_s4 + $0x440] sm:$0xff] %v3307_v54  ;;  %3452 = vst [vmem:[%s7603_s4 + $0x448] sm:$0xff] %v3308_v51  ;;  %v3314_v45 = vsel %vm3026_vm15, %v8984_v23, %v9063_v57 }
 0x48e   :  { %3453 = vst [vmem:[%s7603_s4 + $0x450] sm:$0xff] %v3309_v39  ;;  %3454 = vst [vmem:[%s7603_s4 + $0x458] sm:$0xff] %v3310_v21 }
 0x48f   :  { %3455 = vst [vmem:[%s7603_s4 + $0x460] sm:$0xff] %v3311_v27  ;;  %3456 = vst [vmem:[%s7603_s4 + $0x468] sm:$0xff] %v3312_v6 }
 0x490   :  { %3457 = vst [vmem:[%s7603_s4 + $0x470] sm:$0xff] %v3313_v12  ;;  %3458 = vst [vmem:[%s7603_s4 + $0x478] sm:$0xff] %v3314_v45 }

</bundles_post_ra>
